<compile_context>
chip_gen: v6e
topology: v6e:2x2x1
jax: 0.10.0
libtpu: 0.0.40
codegen_flags: <defaults>
</compile_context>

<pallas_src>
import functools

import numpy as np

import jax
import jax.numpy as jnp
from jax import lax
from jax.experimental import pallas as pl
from jax.experimental.pallas import tpu as pltpu


# ----------------------------------------------------------------------------
# helpers
# ----------------------------------------------------------------------------
def _pick_strip_rows(H, W, target=8):
    """Strip height that divides H and keeps strip_h*(W+2) a multiple of 8."""
    Wp = W + 2
    for th in (target, 16, 8, 4, 2, 1):
        if th <= H and H % th == 0 and (th * Wp) % 8 == 0:
            return th
    return H


def _pick_tile_rows(M, target=256):
    for tm in (target, 512, 256, 128, 64, 32, 16, 8):
        if tm <= M and M % tm == 0:
            return tm
    return M


def _fold_bn(gamma, beta, mean, var, eps=1e-5):
    scale = gamma / jnp.sqrt(var + eps)
    return scale, beta - mean * scale


# ----------------------------------------------------------------------------
# Fused Bottleneck kernel
# ----------------------------------------------------------------------------
def _bottleneck_kernel(x_ref, ring_ref, w1_ref, s1_ref, b1_ref,
                       w2_ref, s2_ref, b2_ref, w3_ref, s3_ref, b3_ref,
                       o_ref, *, strip_h, img_w):
    Wp = img_w + 2
    n_out = strip_h * Wp               # output rows of this strip (flat layout)
    n_src = (strip_h + 2) * Wp + 2     # halo'd input rows (+2 tail, see wrapper)
    cdt = w1_ref.dtype                 # MXU operand dtype (bf16 on v6e/v7x)
    planes = w2_ref.shape[1]

    h = pl.program_id(1)
    row_step = strip_h * Wp
    flat0 = h * row_step
    if row_step % 8 == 0:
        flat0 = pl.multiple_of(flat0, 8)   # sublane-aligned dynamic slice start

    # Halo'd input strip in the flat "padded rows" layout:
    # row q <-> padded pixel (h*strip_h + q // Wp, q % Wp).
    xs = x_ref[0, pl.ds(flat0, n_src), :]              # (n_src, Cin)  f32
    ring = ring_ref[pl.ds(flat0, n_src), :]            # (n_src, 1)    f32

    # ---- stage 1: 1x1 conv + BN + ReLU; zero conv2's zero-padding ring ----
    t1 = jnp.dot(xs.astype(cdt), w1_ref[...], preferred_element_type=jnp.float32)
    t1 = jnp.maximum(t1 * s1_ref[...] + b1_ref[...], 0.0) * ring

    # ---- stage 2: 3x3 conv (stride 1, pad 1) as 9 row-window matmuls ------
    # Tap (dh, dw) of output row p is t1[p + dh*Wp + dw]: a contiguous row
    # window of the flat buffer -> no per-tap 3-D strided slice/reshape.
    acc = jnp.zeros((n_out, planes), jnp.float32)
    for dh in range(3):
        for dw in range(3):
            off = dh * Wp + dw                         # static Python offset
            tap = t1[off:off + n_out, :].astype(cdt)
            acc = acc + jnp.dot(tap, w2_ref[dh * 3 + dw],
                                preferred_element_type=jnp.float32)
    t2 = jnp.maximum(acc * s2_ref[...] + b2_ref[...], 0.0)

    # ---- stage 3: 1x1 conv + BN + identity shortcut + ReLU -----------------
    res = xs[Wp + 1:Wp + 1 + n_out, :]                 # exact f32 residual rows
    y = jnp.dot(t2.astype(cdt), w3_ref[...], preferred_element_type=jnp.float32)
    y = jnp.maximum(y * s3_ref[...] + b3_ref[...] + res, 0.0)
    o_ref[0] = y.astype(o_ref.dtype)


def bottleneck_block(x_nhwc, p, *, compute_dtype=jnp.bfloat16, strip_rows=8):
    """Fused Bottleneck forward (eval-mode BN folded into scale/bias)."""
    N, H, W, Cin = x_nhwc.shape
    planes = p["w1"].shape[1]
    Cout = p["w3"].shape[1]
    assert Cin == Cout, "identity shortcut needs inplanes == planes * expansion"

    Hp, Wp = H + 2, W + 2
    TH = _pick_strip_rows(H, W, strip_rows)
    nH = H // TH
    flat_rows = Hp * Wp + 2     # +2 tail rows so the dh=2 taps never read OOB

    # Zero-padded input, flattened to (padded rows, Cin); channels stay on lanes.
    x_pad = jnp.pad(x_nhwc, ((0, 0), (1, 1), (1, 1), (0, 0)))
    x_flat = jnp.pad(x_pad.reshape(N, Hp * Wp, Cin), ((0, 0), (0, 2), (0, 0)))

    # 1.0 at interior pixels, 0.0 on conv2's zero-padding ring / tail rows.
    rr = jnp.arange(Hp)
    cc = jnp.arange(Wp)
    interior = (((rr > 0) & (rr < Hp - 1))[:, None]
                & ((cc > 0) & (cc < Wp - 1))[None, :])
    ring = jnp.pad(interior.astype(jnp.float32).reshape(Hp * Wp, 1),
                   ((0, 2), (0, 0)))

    w1 = p["w1"].astype(compute_dtype)                              # (Cin, P)
    w2 = p["w2"].reshape(9, planes, planes).astype(compute_dtype)   # HWIO -> (9,P,P)
    w3 = p["w3"].astype(compute_dtype)                              # (P, Cout)
    s1 = p["s1"].reshape(1, planes).astype(jnp.float32)
    b1 = p["b1"].reshape(1, planes).astype(jnp.float32)
    s2 = p["s2"].reshape(1, planes).astype(jnp.float32)
    b2 = p["b2"].reshape(1, planes).astype(jnp.float32)
    s3 = p["s3"].reshape(1, Cout).astype(jnp.float32)
    b3 = p["b3"].reshape(1, Cout).astype(jnp.float32)

    itemsize = np.dtype(compute_dtype).itemsize
    n_out = TH * Wp
    n_src = (TH + 2) * Wp + 2
    w_bytes = (Cin * planes + 9 * planes * planes + planes * Cout) * itemsize
    flops = (2 * N * nH * n_src * Cin * planes
             + 2 * N * nH * 9 * n_out * planes * planes
             + 2 * N * nH * n_out * planes * Cout)
    bytes_accessed = (N * flat_rows * (Cin * 4 + 4) + w_bytes
                      + N * H * Wp * Cout * 4)
    block_bytes = (flat_rows * (Cin * 4 + 4) + w_bytes + n_out * Cout * 4
                   + 4 * n_src * planes * 4)          # in-kernel temporaries
    vmem_limit = int(min(64 * 2 ** 20, max(16 * 2 ** 20, 4 * block_bytes)))

    const2 = lambda n, h: (0, 0)

    out_flat = pl.pallas_call(
        functools.partial(_bottleneck_kernel, strip_h=TH, img_w=W),
        out_shape=jax.ShapeDtypeStruct((N, H * Wp, Cout), x_nhwc.dtype),
        grid=(N, nH),
        in_specs=[
            pl.BlockSpec((1, flat_rows, Cin), lambda n, h: (n, 0, 0)),
            pl.BlockSpec((flat_rows, 1), const2),
            pl.BlockSpec((Cin, planes), const2),
            pl.BlockSpec((1, planes), const2),
            pl.BlockSpec((1, planes), const2),
            pl.BlockSpec((9, planes, planes), lambda n, h: (0, 0, 0)),
            pl.BlockSpec((1, planes), const2),
            pl.BlockSpec((1, planes), const2),
            pl.BlockSpec((planes, Cout), const2),
            pl.BlockSpec((1, Cout), const2),
            pl.BlockSpec((1, Cout), const2),
        ],
        out_specs=pl.BlockSpec((1, n_out, Cout), lambda n, h: (n, h, 0)),
        compiler_params=pltpu.CompilerParams(
            dimension_semantics=("parallel", "parallel"),
            vmem_limit_bytes=vmem_limit),
        cost_estimate=pl.CostEstimate(flops=int(flops), transcendentals=0,
                                      bytes_accessed=int(bytes_accessed)),
    )(x_flat, ring, w1, s1, b1, w2, s2, b2, w3, s3, b3)

    # Drop the two wrap-around garbage columns kept for contiguous stores.
    return out_flat.reshape(N, H, Wp, Cout)[:, :, :W, :]


# ----------------------------------------------------------------------------
# Heatmap fusion kernel:  x * heatmap_conv(heatmap * (visibility >= 0))
# ----------------------------------------------------------------------------
def _heatmap_fuse_kernel(x_ref, hm_ref, wh_ref, o_ref):
    pose = jnp.dot(hm_ref[...], wh_ref[...], preferred_element_type=jnp.float32)
    o_ref[...] = (x_ref[...].astype(jnp.float32) * pose).astype(o_ref.dtype)


def heatmap_fusion(x_nhwc, heatmap_nhwc, visibility, w_heatmap, *, tile_rows=256):
    N, H, W, C = x_nhwc.shape
    K = heatmap_nhwc.shape[-1]
    vis = (visibility >= 0.0).astype(heatmap_nhwc.dtype)            # (N, K)
    hm = heatmap_nhwc * vis[:, None, None, :]
    M = N * H * W
    TM = _pick_tile_rows(M, tile_rows)
    out = pl.pallas_call(
        _heatmap_fuse_kernel,
        out_shape=jax.ShapeDtypeStruct((M, C), x_nhwc.dtype),
        grid=(M // TM,),
        in_specs=[pl.BlockSpec((TM, C), lambda i: (i, 0)),
                  pl.BlockSpec((TM, K), lambda i: (i, 0)),
                  pl.BlockSpec((K, C), lambda i: (0, 0))],
        out_specs=pl.BlockSpec((TM, C), lambda i: (i, 0)),
        compiler_params=pltpu.CompilerParams(
            dimension_semantics=("parallel",),
            vmem_limit_bytes=32 * 2 ** 20),
        cost_estimate=pl.CostEstimate(
            flops=int(2 * M * K * C), transcendentals=0,
            bytes_accessed=int(4 * (2 * M * C + M * K + K * C))),
    )(x_nhwc.reshape(M, C), hm.reshape(M, K), w_heatmap)
    return out.reshape(N, H, W, C)


# ----------------------------------------------------------------------------
# PoseResNet branch step (NCHW in / NCHW out, like the PyTorch module)
# ----------------------------------------------------------------------------
def pose_branch_forward(img_feat_nchw, heatmap_nchw, visibility, params,
                        *, compute_dtype=jnp.bfloat16):
    """Global-branch bottleneck on x, heatmap fusion, local-branch bottleneck
    on x * heatmap_conv(heatmap * vis) — one step of PoseResNet.forward."""
    x = jnp.transpose(img_feat_nchw, (0, 2, 3, 1))
    hm = jnp.transpose(heatmap_nchw, (0, 2, 3, 1))
    global_x = bottleneck_block(x, params["global_block"],
                                compute_dtype=compute_dtype)
    x_fused = heatmap_fusion(x, hm, visibility, params["w_heatmap"])
    local_x = bottleneck_block(x_fused, params["local_block"],
                               compute_dtype=compute_dtype)
    nchw = lambda t: jnp.transpose(t, (0, 3, 1, 2))
    return nchw(global_x), nchw(local_x)


# ----------------------------------------------------------------------------
# Parameters & pure-JAX reference
# ----------------------------------------------------------------------------
def make_bottleneck_params(key, inplanes, planes, expansion=4):
    outplanes = planes * expansion
    ks = jax.random.split(key, 6)

    def bn(k, c):
        kg, kb, km, kv = jax.random.split(k, 4)
        gamma = 1.0 + 0.1 * jax.random.normal(kg, (c,), jnp.float32)
        beta = 0.1 * jax.random.normal(kb, (c,), jnp.float32)
        mean = 0.1 * jax.random.normal(km, (c,), jnp.float32)
        var = jnp.abs(1.0 + 0.1 * jax.random.normal(kv, (c,), jnp.float32))
        return _fold_bn(gamma, beta, mean, var)

    s1, b1 = bn(ks[1], planes)
    s2, b2 = bn(ks[3], planes)
    s3, b3 = bn(ks[5], outplanes)
    return {
        # conv1 (planes, inplanes, 1, 1)     -> matmul weight (inplanes, planes)
        "w1": 0.1 * jax.random.normal(ks[0], (inplanes, planes), jnp.float32),
        "s1": s1, "b1": b1,
        # conv2 (planes, planes, 3, 3)       -> HWIO (3, 3, planes, planes)
        "w2": 0.1 * jax.random.normal(ks[2], (3, 3, planes, planes), jnp.float32),
        "s2": s2, "b2": b2,
        # conv3 (outplanes, planes, 1, 1)    -> matmul weight (planes, outplanes)
        "w3": 0.1 * jax.random.normal(ks[4], (planes, outplanes), jnp.float32),
        "s3": s3, "b3": b3,
    }


_HI = lax.Precision.HIGHEST


def _bottleneck_reference_nhwc(x, p):
    out = jnp.einsum("nhwc,cd->nhwd", x, p["w1"], precision=_HI) * p["s1"] + p["b1"]
    out = jnp.maximum(out, 0.0)
    out = lax.conv_general_dilated(
        out, p["w2"], window_strides=(1, 1), padding="SAME",
        dimension_numbers=("NHWC", "HWIO", "NHWC"), precision=_HI)
    out = jnp.maximum(out * p["s2"] + p["b2"], 0.0)
    out = (jnp.einsum("nhwc,cd->nhwd", out, p["w3"], precision=_HI)
           * p["s3"] + p["b3"] + x)
    return jnp.maximum(out, 0.0)


def pose_branch_reference(img_feat_nchw, heatmap_nchw, visibility, params):
    x = jnp.transpose(img_feat_nchw, (0, 2, 3, 1))
    hm = jnp.transpose(heatmap_nchw, (0, 2, 3, 1))
    g = _bottleneck_reference_nhwc(x, params["global_block"])
    vis = (visibility >= 0.0).astype(x.dtype)[:, None, None, :]
    pose = jnp.einsum("nhwk,kc->nhwc", hm * vis, params["w_heatmap"], precision=_HI)
    l = _bottleneck_reference_nhwc(x * pose, params["local_block"])
    nchw = lambda t: jnp.transpose(t, (0, 3, 1, 2))
    return nchw(g), nchw(l)


# ----------------------------------------------------------------------------
# self-test
# ----------------------------------------------------------------------------
if __name__ == "__main__":
    N, H, W = 2, 16, 16
    planes, expansion, n_kpts = 8, 4, 17
    C = planes * expansion        # 32 -> identity-shortcut bottleneck config

    root = jax.random.PRNGKey(0)
    kx, kh, kv, kg, kl, kw = jax.random.split(root, 6)
    img_feat = jax.random.normal(kx, (N, C, H, W), jnp.float32)      # NCHW features
    heatmap = jax.random.normal(kh, (N, n_kpts, H, W), jnp.float32)  # NCHW heatmaps
    visibility = jax.random.normal(kv, (N, n_kpts), jnp.float32)     # mixed signs
    params = {
        "global_block": make_bottleneck_params(kg, C, planes, expansion),
        "local_block": make_bottleneck_params(kl, C, planes, expansion),
        # heatmap_conv (256, 17, 1, 1) in the module -> (n_kpts, C) matmul weight
        "w_heatmap": 0.1 * jax.random.normal(kw, (n_kpts, C), jnp.float32),
    }

    fwd = jax.jit(pose_branch_forward)
    g_out, l_out = jax.block_until_ready(fwd(img_feat, heatmap, visibility, params))
    g_ref, l_ref = pose_branch_reference(img_feat, heatmap, visibility, params)

    assert g_out.shape == (N, C, H, W) and l_out.shape == (N, C, H, W)
    # Tolerance (deliberately derived for bf16 MXU operands): operand rounding
    # is ~2^-8 relative, the per-output accumulated |contribution| through the
    # three chained matmuls is O(1) at these magnitudes, giving an expected
    # worst-case max-abs error of ~1e-2; assert with ~4x margin.
    err_g = float(jnp.max(jnp.abs(g_out - g_ref)))
    err_l = float(jnp.max(jnp.abs(l_out - l_ref)))
    assert err_g < 4e-2 and err_l < 4e-2, (err_g, err_l)
    print("KERNEL_OK")
</pallas_src>

<mosaic_0001>
module attributes {stable_mosaic.version = 11 : i64} {
  func.func @_heatmap_fuse_kernel(%arg0: i32, %arg1: memref<256x32xf32, #tpu.memory_space<vmem>>, %arg2: memref<256x17xf32, #tpu.memory_space<vmem>>, %arg3: memref<17x32xf32, #tpu.memory_space<vmem>>, %arg4: memref<256x32xf32, #tpu.memory_space<vmem>>) attributes {dimension_semantics = [#tpu.dimension_semantics<parallel>], iteration_bounds = array<i64: 2>, scalar_prefetch = 0 : i64, scratch_operands = 0 : i64, tpu.core_type = #tpu.core_type<tc>, window_params = [{transform_indices = @transform_0, window_bounds = array<i64: 256, 32>}, {transform_indices = @transform_1, window_bounds = array<i64: 256, 17>}, {pipeline_mode = #tpu.pipeline_mode<synchronous>, transform_indices = @transform_2, window_bounds = array<i64: 17, 32>}, {transform_indices = @transform_3, window_bounds = array<i64: 256, 32>}]} {
    %c0 = arith.constant 0 : index
    %c0_0 = arith.constant 0 : index
    %0 = vector.load %arg2[%c0, %c0_0] : memref<256x17xf32, #tpu.memory_space<vmem>>, vector<256x17xf32>
    %c0_1 = arith.constant 0 : index
    %c0_2 = arith.constant 0 : index
    %1 = vector.load %arg3[%c0_1, %c0_2] : memref<17x32xf32, #tpu.memory_space<vmem>>, vector<17x32xf32>
    %cst = arith.constant dense<0.000000e+00> : vector<256x32xf32>
    %2 = tpu.matmul %0, %1, %cst {dimension_numbers = #tpu.dot_dimension_numbers<[1], [0], [0], [1], [0, 0, 1, 1], [], []>} : vector<256x17xf32>, vector<17x32xf32>, vector<256x32xf32> -> vector<256x32xf32>
    %c0_3 = arith.constant 0 : index
    %c0_4 = arith.constant 0 : index
    %3 = vector.load %arg1[%c0_3, %c0_4] : memref<256x32xf32, #tpu.memory_space<vmem>>, vector<256x32xf32>
    %4 = arith.mulf %3, %2 : vector<256x32xf32>
    %c0_5 = arith.constant 0 : index
    %c0_6 = arith.constant 0 : index
    %5 = vector.load %arg4[%c0_5, %c0_6] : memref<256x32xf32, #tpu.memory_space<vmem>>, vector<256x32xf32>
    tpu.vector_store %arg4[%c0_5, %c0_6], %4 {strides = array<i32>} : memref<256x32xf32, #tpu.memory_space<vmem>>, vector<256x32xf32>,
    return
  }
  func.func @transform_0(%arg0: i32) -> (i32, i32) {
    %c0_i32 = arith.constant 0 : i32
    %c0_i32_0 = arith.constant 0 : i32
    return %arg0, %c0_i32 : i32, i32
  }
  func.func @transform_1(%arg0: i32) -> (i32, i32) {
    %c0_i32 = arith.constant 0 : i32
    %c0_i32_0 = arith.constant 0 : i32
    return %arg0, %c0_i32 : i32, i32
  }
  func.func @transform_2(%arg0: i32) -> (i32, i32) {
    %c0_i32 = arith.constant 0 : i32
    %c0_i32_0 = arith.constant 0 : i32
    %c0_i32_1 = arith.constant 0 : i32
    return %c0_i32, %c0_i32_0 : i32, i32
  }
  func.func @transform_3(%arg0: i32) -> (i32, i32) {
    %c0_i32 = arith.constant 0 : i32
    %c0_i32_0 = arith.constant 0 : i32
    return %arg0, %c0_i32 : i32, i32
  }
}

module attributes {stable_mosaic.version = 11 : i64} {
  func.func @_bottleneck_kernel(%arg0: i32, %arg1: i32, %arg2: memref<1x326x32xf32, #tpu.memory_space<vmem>>, %arg3: memref<326x1xf32, #tpu.memory_space<vmem>>, %arg4: memref<32x8xbf16, #tpu.memory_space<vmem>>, %arg5: memref<1x8xf32, #tpu.memory_space<vmem>>, %arg6: memref<1x8xf32, #tpu.memory_space<vmem>>, %arg7: memref<9x8x8xbf16, #tpu.memory_space<vmem>>, %arg8: memref<1x8xf32, #tpu.memory_space<vmem>>, %arg9: memref<1x8xf32, #tpu.memory_space<vmem>>, %arg10: memref<8x32xbf16, #tpu.memory_space<vmem>>, %arg11: memref<1x32xf32, #tpu.memory_space<vmem>>, %arg12: memref<1x32xf32, #tpu.memory_space<vmem>>, %arg13: memref<1x144x32xf32, #tpu.memory_space<vmem>>) attributes {dimension_semantics = [#tpu.dimension_semantics<parallel>, #tpu.dimension_semantics<parallel>], iteration_bounds = array<i64: 2, 2>, scalar_prefetch = 0 : i64, scratch_operands = 0 : i64, tpu.core_type = #tpu.core_type<tc>, window_params = [{transform_indices = @transform_0, window_bounds = array<i64: 1, 326, 32>}, {pipeline_mode = #tpu.pipeline_mode<synchronous>, transform_indices = @transform_1, window_bounds = array<i64: 326, 1>}, {pipeline_mode = #tpu.pipeline_mode<synchronous>, transform_indices = @transform_2, window_bounds = array<i64: 32, 8>}, {pipeline_mode = #tpu.pipeline_mode<synchronous>, transform_indices = @transform_3, window_bounds = array<i64: 1, 8>}, {pipeline_mode = #tpu.pipeline_mode<synchronous>, transform_indices = @transform_4, window_bounds = array<i64: 1, 8>}, {pipeline_mode = #tpu.pipeline_mode<synchronous>, transform_indices = @transform_5, window_bounds = array<i64: 9, 8, 8>}, {pipeline_mode = #tpu.pipeline_mode<synchronous>, transform_indices = @transform_6, window_bounds = array<i64: 1, 8>}, {pipeline_mode = #tpu.pipeline_mode<synchronous>, transform_indices = @transform_7, window_bounds = array<i64: 1, 8>}, {pipeline_mode = #tpu.pipeline_mode<synchronous>, transform_indices = @transform_8, window_bounds = array<i64: 8, 32>}, {pipeline_mode = #tpu.pipeline_mode<synchronous>, transform_indices = @transform_9, window_bounds = array<i64: 1, 32>}, {pipeline_mode = #tpu.pipeline_mode<synchronous>, transform_indices = @transform_10, window_bounds = array<i64: 1, 32>}, {transform_indices = @transform_11, window_bounds = array<i64: 1, 144, 32>}]} {
    %c144_i32 = arith.constant 144 : i32
    %0 = arith.muli %arg1, %c144_i32 : i32
    %1 = tpu.assume_multiple %0, 8 : i32
    %c0 = arith.constant 0 : index
    %2 = arith.index_cast %1 : i32 to index
    %c0_0 = arith.constant 0 : index
    %3 = vector.load %arg2[%c0, %2, %c0_0] : memref<1x326x32xf32, #tpu.memory_space<vmem>>, vector<1x182x32xf32>
    %4 = vector.shape_cast %3 : vector<1x182x32xf32> to vector<182x32xf32>
    %5 = arith.index_cast %1 : i32 to index
    %c0_1 = arith.constant 0 : index
    %6 = vector.load %arg3[%5, %c0_1] : memref<326x1xf32, #tpu.memory_space<vmem>>, vector<182x1xf32>
    %7 = arith.truncf %4 : vector<182x32xf32> to vector<182x32xbf16>
    %c0_2 = arith.constant 0 : index
    %c0_3 = arith.constant 0 : index
    %8 = vector.load %arg4[%c0_2, %c0_3] : memref<32x8xbf16, #tpu.memory_space<vmem>>, vector<32x8xbf16>
    %cst = arith.constant dense<0.000000e+00> : vector<182x8xf32>
    %9 = tpu.matmul %7, %8, %cst {dimension_numbers = #tpu.dot_dimension_numbers<[1], [0], [0], [1], [0, 0, 1, 1], [], []>} : vector<182x32xbf16>, vector<32x8xbf16>, vector<182x8xf32> -> vector<182x8xf32>
    %c0_4 = arith.constant 0 : index
    %c0_5 = arith.constant 0 : index
    %10 = vector.load %arg5[%c0_4, %c0_5] : memref<1x8xf32, #tpu.memory_space<vmem>>, vector<1x8xf32>
    %11 = vector.broadcast %10 : vector<1x8xf32> to vector<182x8xf32>
    %12 = arith.mulf %9, %11 : vector<182x8xf32>
    %c0_6 = arith.constant 0 : index
    %c0_7 = arith.constant 0 : index
    %13 = vector.load %arg6[%c0_6, %c0_7] : memref<1x8xf32, #tpu.memory_space<vmem>>, vector<1x8xf32>
    %14 = vector.broadcast %13 : vector<1x8xf32> to vector<182x8xf32>
    %15 = arith.addf %12, %14 : vector<182x8xf32>
    %cst_8 = arith.constant 0.000000e+00 : f32
    %16 = vector.broadcast %cst_8 : f32 to vector<182x8xf32>
    %17 = arith.maximumf %15, %16 : vector<182x8xf32>
    %18 = vector.broadcast %6 : vector<182x1xf32> to vector<182x8xf32>
    %19 = arith.mulf %17, %18 : vector<182x8xf32>
    %cst_9 = arith.constant 0.000000e+00 : f32
    %20 = vector.broadcast %cst_9 : f32 to vector<144x8xf32>
    %21 = vector.extract_strided_slice %19 {offsets = [0, 0], sizes = [144, 8], strides = [1, 1]} : vector<182x8xf32> to vector<144x8xf32>
    %22 = arith.truncf %21 : vector<144x8xf32> to vector<144x8xbf16>
    %c0_10 = arith.constant 0 : index
    %c0_11 = arith.constant 0 : index
    %c0_12 = arith.constant 0 : index
    %23 = vector.load %arg7[%c0_10, %c0_11, %c0_12] : memref<9x8x8xbf16, #tpu.memory_space<vmem>>, vector<1x8x8xbf16>
    %24 = vector.shape_cast %23 : vector<1x8x8xbf16> to vector<8x8xbf16>
    %cst_13 = arith.constant dense<0.000000e+00> : vector<144x8xf32>
    %25 = tpu.matmul %22, %24, %cst_13 {dimension_numbers = #tpu.dot_dimension_numbers<[1], [0], [0], [1], [0, 0, 1, 1], [], []>} : vector<144x8xbf16>, vector<8x8xbf16>, vector<144x8xf32> -> vector<144x8xf32>
    %26 = arith.addf %20, %25 : vector<144x8xf32>
    %27 = vector.extract_strided_slice %19 {offsets = [1, 0], sizes = [144, 8], strides = [1, 1]} : vector<182x8xf32> to vector<144x8xf32>
    %28 = arith.truncf %27 : vector<144x8xf32> to vector<144x8xbf16>
    %c1 = arith.constant 1 : index
    %c0_14 = arith.constant 0 : index
    %c0_15 = arith.constant 0 : index
    %29 = vector.load %arg7[%c1, %c0_14, %c0_15] : memref<9x8x8xbf16, #tpu.memory_space<vmem>>, vector<1x8x8xbf16>
    %30 = vector.shape_cast %29 : vector<1x8x8xbf16> to vector<8x8xbf16>
    %cst_16 = arith.constant dense<0.000000e+00> : vector<144x8xf32>
    %31 = tpu.matmul %28, %30, %cst_16 {dimension_numbers = #tpu.dot_dimension_numbers<[1], [0], [0], [1], [0, 0, 1, 1], [], []>} : vector<144x8xbf16>, vector<8x8xbf16>, vector<144x8xf32> -> vector<144x8xf32>
    %32 = arith.addf %26, %31 : vector<144x8xf32>
    %33 = vector.extract_strided_slice %19 {offsets = [2, 0], sizes = [144, 8], strides = [1, 1]} : vector<182x8xf32> to vector<144x8xf32>
    %34 = arith.truncf %33 : vector<144x8xf32> to vector<144x8xbf16>
    %c2 = arith.constant 2 : index
    %c0_17 = arith.constant 0 : index
    %c0_18 = arith.constant 0 : index
    %35 = vector.load %arg7[%c2, %c0_17, %c0_18] : memref<9x8x8xbf16, #tpu.memory_space<vmem>>, vector<1x8x8xbf16>
    %36 = vector.shape_cast %35 : vector<1x8x8xbf16> to vector<8x8xbf16>
    %cst_19 = arith.constant dense<0.000000e+00> : vector<144x8xf32>
    %37 = tpu.matmul %34, %36, %cst_19 {dimension_numbers = #tpu.dot_dimension_numbers<[1], [0], [0], [1], [0, 0, 1, 1], [], []>} : vector<144x8xbf16>, vector<8x8xbf16>, vector<144x8xf32> -> vector<144x8xf32>
    %38 = arith.addf %32, %37 : vector<144x8xf32>
    %39 = vector.extract_strided_slice %19 {offsets = [18, 0], sizes = [144, 8], strides = [1, 1]} : vector<182x8xf32> to vector<144x8xf32>
    %40 = arith.truncf %39 : vector<144x8xf32> to vector<144x8xbf16>
    %c3 = arith.constant 3 : index
    %c0_20 = arith.constant 0 : index
    %c0_21 = arith.constant 0 : index
    %41 = vector.load %arg7[%c3, %c0_20, %c0_21] : memref<9x8x8xbf16, #tpu.memory_space<vmem>>, vector<1x8x8xbf16>
    %42 = vector.shape_cast %41 : vector<1x8x8xbf16> to vector<8x8xbf16>
    %cst_22 = arith.constant dense<0.000000e+00> : vector<144x8xf32>
    %43 = tpu.matmul %40, %42, %cst_22 {dimension_numbers = #tpu.dot_dimension_numbers<[1], [0], [0], [1], [0, 0, 1, 1], [], []>} : vector<144x8xbf16>, vector<8x8xbf16>, vector<144x8xf32> -> vector<144x8xf32>
    %44 = arith.addf %38, %43 : vector<144x8xf32>
    %45 = vector.extract_strided_slice %19 {offsets = [19, 0], sizes = [144, 8], strides = [1, 1]} : vector<182x8xf32> to vector<144x8xf32>
    %46 = arith.truncf %45 : vector<144x8xf32> to vector<144x8xbf16>
    %c4 = arith.constant 4 : index
    %c0_23 = arith.constant 0 : index
    %c0_24 = arith.constant 0 : index
    %47 = vector.load %arg7[%c4, %c0_23, %c0_24] : memref<9x8x8xbf16, #tpu.memory_space<vmem>>, vector<1x8x8xbf16>
    %48 = vector.shape_cast %47 : vector<1x8x8xbf16> to vector<8x8xbf16>
    %cst_25 = arith.constant dense<0.000000e+00> : vector<144x8xf32>
    %49 = tpu.matmul %46, %48, %cst_25 {dimension_numbers = #tpu.dot_dimension_numbers<[1], [0], [0], [1], [0, 0, 1, 1], [], []>} : vector<144x8xbf16>, vector<8x8xbf16>, vector<144x8xf32> -> vector<144x8xf32>
    %50 = arith.addf %44, %49 : vector<144x8xf32>
    %51 = vector.extract_strided_slice %19 {offsets = [20, 0], sizes = [144, 8], strides = [1, 1]} : vector<182x8xf32> to vector<144x8xf32>
    %52 = arith.truncf %51 : vector<144x8xf32> to vector<144x8xbf16>
    %c5 = arith.constant 5 : index
    %c0_26 = arith.constant 0 : index
    %c0_27 = arith.constant 0 : index
    %53 = vector.load %arg7[%c5, %c0_26, %c0_27] : memref<9x8x8xbf16, #tpu.memory_space<vmem>>, vector<1x8x8xbf16>
    %54 = vector.shape_cast %53 : vector<1x8x8xbf16> to vector<8x8xbf16>
    %cst_28 = arith.constant dense<0.000000e+00> : vector<144x8xf32>
    %55 = tpu.matmul %52, %54, %cst_28 {dimension_numbers = #tpu.dot_dimension_numbers<[1], [0], [0], [1], [0, 0, 1, 1], [], []>} : vector<144x8xbf16>, vector<8x8xbf16>, vector<144x8xf32> -> vector<144x8xf32>
    %56 = arith.addf %50, %55 : vector<144x8xf32>
    %57 = vector.extract_strided_slice %19 {offsets = [36, 0], sizes = [144, 8], strides = [1, 1]} : vector<182x8xf32> to vector<144x8xf32>
    %58 = arith.truncf %57 : vector<144x8xf32> to vector<144x8xbf16>
    %c6 = arith.constant 6 : index
    %c0_29 = arith.constant 0 : index
    %c0_30 = arith.constant 0 : index
    %59 = vector.load %arg7[%c6, %c0_29, %c0_30] : memref<9x8x8xbf16, #tpu.memory_space<vmem>>, vector<1x8x8xbf16>
    %60 = vector.shape_cast %59 : vector<1x8x8xbf16> to vector<8x8xbf16>
    %cst_31 = arith.constant dense<0.000000e+00> : vector<144x8xf32>
    %61 = tpu.matmul %58, %60, %cst_31 {dimension_numbers = #tpu.dot_dimension_numbers<[1], [0], [0], [1], [0, 0, 1, 1], [], []>} : vector<144x8xbf16>, vector<8x8xbf16>, vector<144x8xf32> -> vector<144x8xf32>
    %62 = arith.addf %56, %61 : vector<144x8xf32>
    %63 = vector.extract_strided_slice %19 {offsets = [37, 0], sizes = [144, 8], strides = [1, 1]} : vector<182x8xf32> to vector<144x8xf32>
    %64 = arith.truncf %63 : vector<144x8xf32> to vector<144x8xbf16>
    %c7 = arith.constant 7 : index
    %c0_32 = arith.constant 0 : index
    %c0_33 = arith.constant 0 : index
    %65 = vector.load %arg7[%c7, %c0_32, %c0_33] : memref<9x8x8xbf16, #tpu.memory_space<vmem>>, vector<1x8x8xbf16>
    %66 = vector.shape_cast %65 : vector<1x8x8xbf16> to vector<8x8xbf16>
    %cst_34 = arith.constant dense<0.000000e+00> : vector<144x8xf32>
    %67 = tpu.matmul %64, %66, %cst_34 {dimension_numbers = #tpu.dot_dimension_numbers<[1], [0], [0], [1], [0, 0, 1, 1], [], []>} : vector<144x8xbf16>, vector<8x8xbf16>, vector<144x8xf32> -> vector<144x8xf32>
    %68 = arith.addf %62, %67 : vector<144x8xf32>
    %69 = vector.extract_strided_slice %19 {offsets = [38, 0], sizes = [144, 8], strides = [1, 1]} : vector<182x8xf32> to vector<144x8xf32>
    %70 = arith.truncf %69 : vector<144x8xf32> to vector<144x8xbf16>
    %c8 = arith.constant 8 : index
    %c0_35 = arith.constant 0 : index
    %c0_36 = arith.constant 0 : index
    %71 = vector.load %arg7[%c8, %c0_35, %c0_36] : memref<9x8x8xbf16, #tpu.memory_space<vmem>>, vector<1x8x8xbf16>
    %72 = vector.shape_cast %71 : vector<1x8x8xbf16> to vector<8x8xbf16>
    %cst_37 = arith.constant dense<0.000000e+00> : vector<144x8xf32>
    %73 = tpu.matmul %70, %72, %cst_37 {dimension_numbers = #tpu.dot_dimension_numbers<[1], [0], [0], [1], [0, 0, 1, 1], [], []>} : vector<144x8xbf16>, vector<8x8xbf16>, vector<144x8xf32> -> vector<144x8xf32>
    %74 = arith.addf %68, %73 : vector<144x8xf32>
    %c0_38 = arith.constant 0 : index
    %c0_39 = arith.constant 0 : index
    %75 = vector.load %arg8[%c0_38, %c0_39] : memref<1x8xf32, #tpu.memory_space<vmem>>, vector<1x8xf32>
    %76 = vector.broadcast %75 : vector<1x8xf32> to vector<144x8xf32>
    %77 = arith.mulf %74, %76 : vector<144x8xf32>
    %c0_40 = arith.constant 0 : index
    %c0_41 = arith.constant 0 : index
    %78 = vector.load %arg9[%c0_40, %c0_41] : memref<1x8xf32, #tpu.memory_space<vmem>>, vector<1x8xf32>
    %79 = vector.broadcast %78 : vector<1x8xf32> to vector<144x8xf32>
    %80 = arith.addf %77, %79 : vector<144x8xf32>
    %cst_42 = arith.constant 0.000000e+00 : f32
    %81 = vector.broadcast %cst_42 : f32 to vector<144x8xf32>
    %82 = arith.maximumf %80, %81 : vector<144x8xf32>
    %83 = vector.extract_strided_slice %4 {offsets = [19, 0], sizes = [144, 32], strides = [1, 1]} : vector<182x32xf32> to vector<144x32xf32>
    %84 = arith.truncf %82 : vector<144x8xf32> to vector<144x8xbf16>
    %c0_43 = arith.constant 0 : index
    %c0_44 = arith.constant 0 : index
    %85 = vector.load %arg10[%c0_43, %c0_44] : memref<8x32xbf16, #tpu.memory_space<vmem>>, vector<8x32xbf16>
    %cst_45 = arith.constant dense<0.000000e+00> : vector<144x32xf32>
    %86 = tpu.matmul %84, %85, %cst_45 {dimension_numbers = #tpu.dot_dimension_numbers<[1], [0], [0], [1], [0, 0, 1, 1], [], []>} : vector<144x8xbf16>, vector<8x32xbf16>, vector<144x32xf32> -> vector<144x32xf32>
    %c0_46 = arith.constant 0 : index
    %c0_47 = arith.constant 0 : index
    %87 = vector.load %arg11[%c0_46, %c0_47] : memref<1x32xf32, #tpu.memory_space<vmem>>, vector<1x32xf32>
    %88 = vector.broadcast %87 : vector<1x32xf32> to vector<144x32xf32>
    %89 = arith.mulf %86, %88 : vector<144x32xf32>
    %c0_48 = arith.constant 0 : index
    %c0_49 = arith.constant 0 : index
    %90 = vector.load %arg12[%c0_48, %c0_49] : memref<1x32xf32, #tpu.memory_space<vmem>>, vector<1x32xf32>
    %91 = vector.broadcast %90 : vector<1x32xf32> to vector<144x32xf32>
    %92 = arith.addf %89, %91 : vector<144x32xf32>
    %93 = arith.addf %92, %83 : vector<144x32xf32>
    %cst_50 = arith.constant 0.000000e+00 : f32
    %94 = vector.broadcast %cst_50 : f32 to vector<144x32xf32>
    %95 = arith.maximumf %93, %94 : vector<144x32xf32>
    %c0_51 = arith.constant 0 : index
    %c0_52 = arith.constant 0 : index
    %c0_53 = arith.constant 0 : index
    %96 = vector.load %arg13[%c0_51, %c0_52, %c0_53] : memref<1x144x32xf32, #tpu.memory_space<vmem>>, vector<1x144x32xf32>
    %97 = vector.shape_cast %96 : vector<1x144x32xf32> to vector<144x32xf32>
    %98 = vector.shape_cast %95 : vector<144x32xf32> to vector<1x144x32xf32>
    tpu.vector_store %arg13[%c0_51, %c0_52, %c0_53], %98 {strides = array<i32>} : memref<1x144x32xf32, #tpu.memory_space<vmem>>, vector<1x144x32xf32>,
    return
  }
  func.func @transform_0(%arg0: i32, %arg1: i32) -> (i32, i32, i32) {
    %c0_i32 = arith.constant 0 : i32
    %c0_i32_0 = arith.constant 0 : i32
    %c0_i32_1 = arith.constant 0 : i32
    return %arg0, %c0_i32, %c0_i32_0 : i32, i32, i32
  }
  func.func @transform_1(%arg0: i32, %arg1: i32) -> (i32, i32) {
    %c0_i32 = arith.constant 0 : i32
    %c0_i32_0 = arith.constant 0 : i32
    %c0_i32_1 = arith.constant 0 : i32
    return %c0_i32, %c0_i32_0 : i32, i32
  }
  func.func @transform_2(%arg0: i32, %arg1: i32) -> (i32, i32) {
    %c0_i32 = arith.constant 0 : i32
    %c0_i32_0 = arith.constant 0 : i32
    %c0_i32_1 = arith.constant 0 : i32
    return %c0_i32, %c0_i32_0 : i32, i32
  }
  func.func @transform_3(%arg0: i32, %arg1: i32) -> (i32, i32) {
    %c0_i32 = arith.constant 0 : i32
    %c0_i32_0 = arith.constant 0 : i32
    %c0_i32_1 = arith.constant 0 : i32
    return %c0_i32, %c0_i32_0 : i32, i32
  }
  func.func @transform_4(%arg0: i32, %arg1: i32) -> (i32, i32) {
    %c0_i32 = arith.constant 0 : i32
    %c0_i32_0 = arith.constant 0 : i32
    %c0_i32_1 = arith.constant 0 : i32
    return %c0_i32, %c0_i32_0 : i32, i32
  }
  func.func @transform_5(%arg0: i32, %arg1: i32) -> (i32, i32, i32) {
    %c0_i32 = arith.constant 0 : i32
    %c0_i32_0 = arith.constant 0 : i32
    %c0_i32_1 = arith.constant 0 : i32
    %c0_i32_2 = arith.constant 0 : i32
    return %c0_i32, %c0_i32_0, %c0_i32_1 : i32, i32, i32
  }
  func.func @transform_6(%arg0: i32, %arg1: i32) -> (i32, i32) {
    %c0_i32 = arith.constant 0 : i32
    %c0_i32_0 = arith.constant 0 : i32
    %c0_i32_1 = arith.constant 0 : i32
    return %c0_i32, %c0_i32_0 : i32, i32
  }
  func.func @transform_7(%arg0: i32, %arg1: i32) -> (i32, i32) {
    %c0_i32 = arith.constant 0 : i32
    %c0_i32_0 = arith.constant 0 : i32
    %c0_i32_1 = arith.constant 0 : i32
    return %c0_i32, %c0_i32_0 : i32, i32
  }
  func.func @transform_8(%arg0: i32, %arg1: i32) -> (i32, i32) {
    %c0_i32 = arith.constant 0 : i32
    %c0_i32_0 = arith.constant 0 : i32
    %c0_i32_1 = arith.constant 0 : i32
    return %c0_i32, %c0_i32_0 : i32, i32
  }
  func.func @transform_9(%arg0: i32, %arg1: i32) -> (i32, i32) {
    %c0_i32 = arith.constant 0 : i32
    %c0_i32_0 = arith.constant 0 : i32
    %c0_i32_1 = arith.constant 0 : i32
    return %c0_i32, %c0_i32_0 : i32, i32
  }
  func.func @transform_10(%arg0: i32, %arg1: i32) -> (i32, i32) {
    %c0_i32 = arith.constant 0 : i32
    %c0_i32_0 = arith.constant 0 : i32
    %c0_i32_1 = arith.constant 0 : i32
    return %c0_i32, %c0_i32_0 : i32, i32
  }
  func.func @transform_11(%arg0: i32, %arg1: i32) -> (i32, i32, i32) {
    %c0_i32 = arith.constant 0 : i32
    %c0_i32_0 = arith.constant 0 : i32
    return %arg0, %arg1, %c0_i32 : i32, i32, i32
  }
}

</mosaic_0001>

<bundles_post_ra>
// kernel: pose_branch_forward.4
= control target key start
LH: loop header
LB: loop body
LE: loop exit
PB: predicated region body
PF: predicated region fallthrough
CT: control target
= control target key end

     0   :  { %s899_s12 = smov 0   ;;  %s1099_s0 = inlined_call_operand.vmem [shape: f32[512,32], index: 0, kind: input, shape index: {}]   ;;  %s1100_s1 = inlined_call_operand.vmem [shape: f32[512,17], index: 1, kind: input, shape index: {}]   ;;  %s1101_s2 = inlined_call_operand.vmem [shape: f32[17,32], index: 2, kind: input, shape index: {}]   ;;  %s1102_s3 = inlined_call_operand.vmem [shape: f32[512,32], index: 3, kind: output, shape index: {}]  }
   0x1 LB: > { %s722_s13 = sadd.s32 4294967295, %s877_s12   ;;  %p726_p0 = scmp.ge.s32.totalorder %s877_s12, 1  ;;  %s877_s12 = sphi %s899_s12, %s13_s12  }
   0x2   : > { %p149_p1 = scmp.lt.s32.totalorder %s877_s12, 3 }
   0x4   : > { %p150_p2 = pnand %p726_p0, %p149_p1 }
   0x5   : > { %s727_s18 = sshll.u32 (!%p150_p2), %s722_s13, 5 }
   0x6   : > { %153 = sbr.rel (%p150_p2) target bundleno = 245 (0xf5), region = 32  ;;  %p179_p3 = scmp.lt.s32.totalorder (!%p150_p2), %s727_s18, 63 }
   0xb   : > { %v230_v0 = vld [vmem:[%s1101_s2 + $0x10] sm:$0x1]  ;;  %vm328_vm0 = vcmask 1040384   ;;  %v229_v1 = vld [vmem:[%s1101_s2 + $0x8] sm:$0xff]  ;;  %v228_v2 = vld [vmem:[%s1101_s2] sm:$0xff]  ;;  %s1104_s18 = smov (!%p179_p3, %s727_s18), 63 }
   0xc   : > { %803 = vmatprep.subr.msk.mxu0 %vm328_vm0, %v230_v0  ;;  %857 = vmatprep.subr.msk.mxu1 %vm328_vm0, %v230_v0  ;;  %s916_s21 = sshll.u32 %s1104_s18, 3  ;;  %vm231_vm1 = vcmask 138240   ;;  %vm621_vm2 = vcmask 261120  }
   0xd   : > { %804 = vmatpush3.msk.msra.mxu0 %vm328_vm0, %v230_v0  ;;  %860 = vmatpush3.msk.msra.mxu1 %vm328_vm0, %v230_v0  ;;  %s922_s24 = scalar_lea.vmem %s1100_s1, %s916_s21  ;;  %s992_s27 = scalar_lea.vmem %s1099_s0, %s916_s21 }
   0xe   : > { %805 = vmatprep.subr.mxu0 %v229_v1  ;;  %858 = vmatprep.subr.mxu1 %v229_v1  ;;  %v196_v3 = vld [vmem:[%s922_s24] sm:$0xff]  ;;  %v197_v5 = vld [vmem:[%s922_s24 + $0x8] sm:$0xff]  ;;  %v198_v7 = vld [vmem:[%s922_s24 + $0x10] sm:$0xff]  ;;  %s1000_s30 = scalar_lea.vmem %s1102_s3, %s916_s21 }
   0xf   : > { %806 = vmatpush3.msra.mxu0 %v229_v1  ;;  %861 = vmatpush3.msra.mxu1 %v229_v1  ;;  %v212_v4 = vld [vmem:[%s922_s24 + $0x80] sm:$0xff]  ;;  %v213_v6 = vld [vmem:[%s922_s24 + $0x88] sm:$0xff]  ;;  %v214_v8 = vld [vmem:[%s922_s24 + $0x90] sm:$0xff] }
  0x10   : > { %807 = vmatprep.subr.mxu0 %v228_v2  ;;  %859 = vmatprep.subr.mxu1 %v228_v2  ;;  %v199_v9 = vld [vmem:[%s922_s24 + $0x18] sm:$0xff]  ;;  %v200_v11 = vld [vmem:[%s922_s24 + $0x20] sm:$0xff]  ;;  %v201_v13 = vld [vmem:[%s922_s24 + $0x28] sm:$0xff] }
  0x11   : > { %808 = vmatpush3.msra.mxu0 %v228_v2  ;;  %862 = vmatpush3.msra.mxu1 %v228_v2  ;;  %v215_v10 = vld [vmem:[%s922_s24 + $0x98] sm:$0xff]  ;;  %v216_v12 = vld [vmem:[%s922_s24 + $0xa0] sm:$0xff]  ;;  %v217_v14 = vld [vmem:[%s922_s24 + $0xa8] sm:$0xff] }
  0x12   : > { %809 = vmatprep.mubr.msk.f32.mxu0 %vm231_vm1, %v196_v3  ;;  %833 = vmatprep.mubr.msk.f32.mxu1 %vm231_vm1, %v212_v4  ;;  %v202_v15 = vld [vmem:[%s922_s24 + $0x30] sm:$0xff]  ;;  %v203_v17 = vld [vmem:[%s922_s24 + $0x38] sm:$0xff]  ;;  %v204_v19 = vld [vmem:[%s922_s24 + $0x40] sm:$0xff] }
  0x13   : > { %810 = vmatmul.mubr.msk.f32.vlgmr.msra.gmra.mxu0 %vm231_vm1, %v197_v5  ;;  %834 = vmatmul.mubr.msk.f32.vlgmr.msra.gmra.mxu1 %vm231_vm1, %v213_v6  ;;  %v218_v16 = vld [vmem:[%s922_s24 + $0xb0] sm:$0xff]  ;;  %v219_v18 = vld [vmem:[%s922_s24 + $0xb8] sm:$0xff]  ;;  %v220_v20 = vld [vmem:[%s922_s24 + $0xc0] sm:$0xff] }
  0x14   : > { %812 = vmatprep.mubr.msk.f32.mxu0 %vm231_vm1, %v198_v7  ;;  %836 = vmatprep.mubr.msk.f32.mxu1 %vm231_vm1, %v214_v8  ;;  %v205_v21 = vld [vmem:[%s922_s24 + $0x48] sm:$0xff]  ;;  %v206_v23 = vld [vmem:[%s922_s24 + $0x50] sm:$0xff]  ;;  %v207_v25 = vld [vmem:[%s922_s24 + $0x58] sm:$0xff] }
  0x15   : > { %v221_v22 = vld [vmem:[%s922_s24 + $0xc8] sm:$0xff]  ;;  %v222_v24 = vld [vmem:[%s922_s24 + $0xd0] sm:$0xff]  ;;  %v223_v26 = vld [vmem:[%s922_s24 + $0xd8] sm:$0xff] }
  0x16   : > { %v208_v27 = vld [vmem:[%s922_s24 + $0x60] sm:$0xff]  ;;  %v209_v29 = vld [vmem:[%s922_s24 + $0x68] sm:$0xff]  ;;  %v210_v31 = vld [vmem:[%s922_s24 + $0x70] sm:$0xff] }
  0x17   : > { %813 = vmatmul.mubr.msk.f32.gmra.mxu0 %vm231_vm1, %v199_v9  ;;  %837 = vmatmul.mubr.msk.f32.gmra.mxu1 %vm231_vm1, %v215_v10  ;;  %v224_v28 = vld [vmem:[%s922_s24 + $0xe0] sm:$0xff]  ;;  %v225_v30 = vld [vmem:[%s922_s24 + $0xe8] sm:$0xff]  ;;  %v226_v32 = vld [vmem:[%s922_s24 + $0xf0] sm:$0xff] }
  0x18   : > { %815 = vmatprep.mubr.msk.f32.mxu0 %vm231_vm1, %v200_v11  ;;  %839 = vmatprep.mubr.msk.f32.mxu1 %vm231_vm1, %v216_v12  ;;  %v211_v33 = vld [vmem:[%s922_s24 + $0x78] sm:$0xff]  ;;  %v558_v35 = vld [vmem:[%s992_s27 + $0x8] sm:$0xff]  ;;  %v557_v39 = vld [vmem:[%s992_s27] sm:$0xff] }
  0x19   : > { %v227_v34 = vld [vmem:[%s922_s24 + $0xf8] sm:$0xff]  ;;  %v574_v36 = vld [vmem:[%s992_s27 + $0x88] sm:$0xff]  ;;  %v573_v40 = vld [vmem:[%s992_s27 + $0x80] sm:$0xff] }
  0x1a   : > { %v560_v45 = vld [vmem:[%s992_s27 + $0x18] sm:$0xff]  ;;  %v559_v51 = vld [vmem:[%s992_s27 + $0x10] sm:$0xff]  ;;  %v562_v57 = vld [vmem:[%s992_s27 + $0x28] sm:$0xff] }
  0x1b   : > { %816 = vmatmul.mubr.msk.f32.gmra.mxu0 %vm231_vm1, %v201_v13  ;;  %840 = vmatmul.mubr.msk.f32.gmra.mxu1 %vm231_vm1, %v217_v14  ;;  %v576_v46 = vld [vmem:[%s992_s27 + $0x98] sm:$0xff]  ;;  %v575_v52 = vld [vmem:[%s992_s27 + $0x90] sm:$0xff]  ;;  %v578_v58 = vld [vmem:[%s992_s27 + $0xa8] sm:$0xff] }
  0x1c   : > { %818 = vmatprep.mubr.msk.f32.mxu0 %vm231_vm1, %v202_v15  ;;  %842 = vmatprep.mubr.msk.f32.mxu1 %vm231_vm1, %v218_v16  ;;  %v561_v63 = vld [vmem:[%s992_s27 + $0x20] sm:$0xff]  ;;  %v564_v5 = vld [vmem:[%s992_s27 + $0x38] sm:$0xff]  ;;  %v563_v11 = vld [vmem:[%s992_s27 + $0x30] sm:$0xff] }
  0x1d   : > { %v577_v0 = vld [vmem:[%s992_s27 + $0xa0] sm:$0xff]  ;;  %v580_v6 = vld [vmem:[%s992_s27 + $0xb8] sm:$0xff]  ;;  %v579_v12 = vld [vmem:[%s992_s27 + $0xb0] sm:$0xff] }
  0x1f   : > { %819 = vmatmul.mubr.msk.f32.gmra.mxu0 %vm231_vm1, %v203_v17  ;;  %843 = vmatmul.mubr.msk.f32.gmra.mxu1 %vm231_vm1, %v219_v18  ;;  %v566_v17 = vld [vmem:[%s992_s27 + $0x48] sm:$0xff] }
  0x20   : > { %821 = vmatprep.mubr.msk.f32.mxu0 %vm231_vm1, %v204_v19  ;;  %845 = vmatprep.mubr.msk.f32.mxu1 %vm231_vm1, %v220_v20  ;;  %v582_v18 = vld [vmem:[%s992_s27 + $0xc8] sm:$0xff] }
  0x23   : > { %822 = vmatmul.mubr.msk.f32.gmra.mxu0 %vm231_vm1, %v205_v21  ;;  %846 = vmatmul.mubr.msk.f32.gmra.mxu1 %vm231_vm1, %v221_v22 }
  0x24   : > { %824 = vmatprep.mubr.msk.f32.mxu0 %vm231_vm1, %v206_v23  ;;  %848 = vmatprep.mubr.msk.f32.mxu1 %vm231_vm1, %v222_v24  ;;  %v565_v23 = vld [vmem:[%s992_s27 + $0x40] sm:$0xff] }
  0x25   : > { %v581_v24 = vld [vmem:[%s992_s27 + $0xc0] sm:$0xff] }
  0x27   : > { %825 = vmatmul.mubr.msk.f32.gmra.mxu0 %vm231_vm1, %v207_v25  ;;  %849 = vmatmul.mubr.msk.f32.gmra.mxu1 %vm231_vm1, %v223_v26 }
  0x28   : > { %827 = vmatprep.mubr.msk.f32.mxu0 %vm231_vm1, %v208_v27  ;;  %851 = vmatprep.mubr.msk.f32.mxu1 %vm231_vm1, %v224_v28 }
  0x2b   : > { %828 = vmatmul.mubr.msk.f32.gmra.mxu0 %vm231_vm1, %v209_v29  ;;  %852 = vmatmul.mubr.msk.f32.gmra.mxu1 %vm231_vm1, %v225_v30  ;;  %v568_v29 = vld [vmem:[%s992_s27 + $0x58] sm:$0xff] }
  0x2c   : > { %830 = vmatprep.mubr.msk.f32.mxu0 %vm231_vm1, %v210_v31  ;;  %854 = vmatprep.mubr.msk.f32.mxu1 %vm231_vm1, %v226_v32  ;;  %v584_v30 = vld [vmem:[%s992_s27 + $0xd8] sm:$0xff] }
  0x2f   : > { %831 = vmatmul.mubr.msk.f32.gmra.mxu0 %vm231_vm1, %v211_v33  ;;  %855 = vmatmul.mubr.msk.f32.gmra.mxu1 %vm231_vm1, %v227_v34 }
  0xd3   : > { %v811_v37 = vpop.f32.mrf.mxu0  ;;  %v835_v38 = vpop.f32.mrf.mxu1 }
  0xd4   : > { %v590_v41 = vmul.f32 %v811_v37, %v558_v35  ;;  %v606_v42 = vmul.f32 %v835_v38, %v574_v36  ;;  %v567_v35 = vld [vmem:[%s992_s27 + $0x50] sm:$0xff] }
  0xd5   : > { %v398_v43 = vpop.f32.mrf.mxu0  ;;  %v478_v44 = vpop.f32.mrf.mxu1  ;;  %v583_v36 = vld [vmem:[%s992_s27 + $0xd0] sm:$0xff] }
  0xd6   : > { %623 = vst.msk [vmem:[%s1000_s30 + $0x8] sm:$0xff] %vm621_vm2, %v590_v41  ;;  %639 = vst.msk [vmem:[%s1000_s30 + $0x88] sm:$0xff] %vm621_vm2, %v606_v42  ;;  %v589_v47 = vmul.f32 %v557_v39, %v398_v43  ;;  %v605_v48 = vmul.f32 %v573_v40, %v478_v44  ;;  %v570_v41 = vld [vmem:[%s992_s27 + $0x68] sm:$0xff] }
  0xd7   : > { %v814_v49 = vpop.f32.mrf.mxu0  ;;  %v838_v50 = vpop.f32.mrf.mxu1  ;;  %v586_v42 = vld [vmem:[%s992_s27 + $0xe8] sm:$0xff] }
  0xd8   : > { %622 = vst.msk [vmem:[%s1000_s30] sm:$0xff] %vm621_vm2, %v589_v47  ;;  %638 = vst.msk [vmem:[%s1000_s30 + $0x80] sm:$0xff] %vm621_vm2, %v605_v48  ;;  %v592_v53 = vmul.f32 %v814_v49, %v560_v45  ;;  %v608_v54 = vmul.f32 %v838_v50, %v576_v46  ;;  %v569_v47 = vld [vmem:[%s992_s27 + $0x60] sm:$0xff] }
  0xd9   : > { %v408_v55 = vpop.f32.mrf.mxu0  ;;  %v488_v56 = vpop.f32.mrf.mxu1  ;;  %v585_v48 = vld [vmem:[%s992_s27 + $0xe0] sm:$0xff] }
  0xda   : > { %625 = vst.msk [vmem:[%s1000_s30 + $0x18] sm:$0xff] %vm621_vm2, %v592_v53  ;;  %641 = vst.msk [vmem:[%s1000_s30 + $0x98] sm:$0xff] %vm621_vm2, %v608_v54  ;;  %v591_v59 = vmul.f32 %v559_v51, %v408_v55  ;;  %v607_v60 = vmul.f32 %v575_v52, %v488_v56  ;;  %v572_v53 = vld [vmem:[%s992_s27 + $0x78] sm:$0xff] }
  0xdb   : > { %v817_v61 = vpop.f32.mrf.mxu0  ;;  %v841_v62 = vpop.f32.mrf.mxu1  ;;  %v588_v54 = vld [vmem:[%s992_s27 + $0xf8] sm:$0xff] }
  0xdc   : > { %624 = vst.msk [vmem:[%s1000_s30 + $0x10] sm:$0xff] %vm621_vm2, %v591_v59  ;;  %640 = vst.msk [vmem:[%s1000_s30 + $0x90] sm:$0xff] %vm621_vm2, %v607_v60  ;;  %v594_v1 = vmul.f32 %v817_v61, %v562_v57  ;;  %v610_v2 = vmul.f32 %v841_v62, %v578_v58  ;;  %v571_v59 = vld [vmem:[%s992_s27 + $0x70] sm:$0xff] }
  0xdd   : > { %v418_v3 = vpop.f32.mrf.mxu0  ;;  %v498_v4 = vpop.f32.mrf.mxu1  ;;  %v587_v60 = vld [vmem:[%s992_s27 + $0xf0] sm:$0xff] }
  0xde   : > { %627 = vst.msk [vmem:[%s1000_s30 + $0x28] sm:$0xff] %vm621_vm2, %v594_v1  ;;  %643 = vst.msk [vmem:[%s1000_s30 + $0xa8] sm:$0xff] %vm621_vm2, %v610_v2  ;;  %v593_v7 = vmul.f32 %v561_v63, %v418_v3  ;;  %v609_v8 = vmul.f32 %v577_v0, %v498_v4 }
  0xdf   : > { %v820_v9 = vpop.f32.mrf.mxu0  ;;  %v844_v10 = vpop.f32.mrf.mxu1 }
  0xe0   : > { %626 = vst.msk [vmem:[%s1000_s30 + $0x20] sm:$0xff] %vm621_vm2, %v593_v7  ;;  %642 = vst.msk [vmem:[%s1000_s30 + $0xa0] sm:$0xff] %vm621_vm2, %v609_v8  ;;  %v596_v13 = vmul.f32 %v820_v9, %v564_v5  ;;  %v612_v14 = vmul.f32 %v844_v10, %v580_v6 }
  0xe1   : > { %v428_v15 = vpop.f32.mrf.mxu0  ;;  %v508_v16 = vpop.f32.mrf.mxu1 }
  0xe2   : > { %629 = vst.msk [vmem:[%s1000_s30 + $0x38] sm:$0xff] %vm621_vm2, %v596_v13  ;;  %645 = vst.msk [vmem:[%s1000_s30 + $0xb8] sm:$0xff] %vm621_vm2, %v612_v14  ;;  %v595_v19 = vmul.f32 %v563_v11, %v428_v15  ;;  %v611_v20 = vmul.f32 %v579_v12, %v508_v16 }
  0xe3   : > { %v823_v21 = vpop.f32.mrf.mxu0  ;;  %v847_v22 = vpop.f32.mrf.mxu1 }
  0xe4   : > { %628 = vst.msk [vmem:[%s1000_s30 + $0x30] sm:$0xff] %vm621_vm2, %v595_v19  ;;  %644 = vst.msk [vmem:[%s1000_s30 + $0xb0] sm:$0xff] %vm621_vm2, %v611_v20  ;;  %v598_v25 = vmul.f32 %v823_v21, %v566_v17  ;;  %v614_v26 = vmul.f32 %v847_v22, %v582_v18 }
  0xe5   : > { %v438_v27 = vpop.f32.mrf.mxu0  ;;  %v518_v28 = vpop.f32.mrf.mxu1 }
  0xe6   : > { %631 = vst.msk [vmem:[%s1000_s30 + $0x48] sm:$0xff] %vm621_vm2, %v598_v25  ;;  %647 = vst.msk [vmem:[%s1000_s30 + $0xc8] sm:$0xff] %vm621_vm2, %v614_v26  ;;  %v597_v31 = vmul.f32 %v565_v23, %v438_v27  ;;  %v613_v32 = vmul.f32 %v581_v24, %v518_v28 }
  0xe7   : > { %v826_v33 = vpop.f32.mrf.mxu0  ;;  %v850_v34 = vpop.f32.mrf.mxu1 }
  0xe8   : > { %630 = vst.msk [vmem:[%s1000_s30 + $0x40] sm:$0xff] %vm621_vm2, %v597_v31  ;;  %646 = vst.msk [vmem:[%s1000_s30 + $0xc0] sm:$0xff] %vm621_vm2, %v613_v32  ;;  %v600_v37 = vmul.f32 %v826_v33, %v568_v29  ;;  %v616_v38 = vmul.f32 %v850_v34, %v584_v30 }
  0xe9   : > { %v448_v39 = vpop.f32.mrf.mxu0  ;;  %v528_v40 = vpop.f32.mrf.mxu1 }
  0xea   : > { %633 = vst.msk [vmem:[%s1000_s30 + $0x58] sm:$0xff] %vm621_vm2, %v600_v37  ;;  %649 = vst.msk [vmem:[%s1000_s30 + $0xd8] sm:$0xff] %vm621_vm2, %v616_v38  ;;  %v599_v43 = vmul.f32 %v567_v35, %v448_v39  ;;  %v615_v44 = vmul.f32 %v583_v36, %v528_v40 }
  0xeb   : > { %v829_v45 = vpop.f32.mrf.mxu0  ;;  %v853_v46 = vpop.f32.mrf.mxu1 }
  0xec   : > { %632 = vst.msk [vmem:[%s1000_s30 + $0x50] sm:$0xff] %vm621_vm2, %v599_v43  ;;  %648 = vst.msk [vmem:[%s1000_s30 + $0xd0] sm:$0xff] %vm621_vm2, %v615_v44  ;;  %v602_v49 = vmul.f32 %v829_v45, %v570_v41  ;;  %v618_v50 = vmul.f32 %v853_v46, %v586_v42 }
  0xed   : > { %v458_v51 = vpop.f32.mrf.mxu0  ;;  %v538_v52 = vpop.f32.mrf.mxu1 }
  0xee   : > { %635 = vst.msk [vmem:[%s1000_s30 + $0x68] sm:$0xff] %vm621_vm2, %v602_v49  ;;  %651 = vst.msk [vmem:[%s1000_s30 + $0xe8] sm:$0xff] %vm621_vm2, %v618_v50  ;;  %v601_v55 = vmul.f32 %v569_v47, %v458_v51  ;;  %v617_v56 = vmul.f32 %v585_v48, %v538_v52 }
  0xef   : > { %v832_v57 = vpop.f32.mrf.mxu0  ;;  %v856_v58 = vpop.f32.mrf.mxu1 }
  0xf0   : > { %634 = vst.msk [vmem:[%s1000_s30 + $0x60] sm:$0xff] %vm621_vm2, %v601_v55  ;;  %650 = vst.msk [vmem:[%s1000_s30 + $0xe0] sm:$0xff] %vm621_vm2, %v617_v56  ;;  %v604_v61 = vmul.f32 %v832_v57, %v572_v53  ;;  %v620_v62 = vmul.f32 %v856_v58, %v588_v54 }
  0xf1   : > { %v468_v63 = vpop.f32.mrf.mxu0  ;;  %v548_v0 = vpop.f32.mrf.mxu1 }
  0xf2   : > { %637 = vst.msk [vmem:[%s1000_s30 + $0x78] sm:$0xff] %vm621_vm2, %v604_v61  ;;  %653 = vst.msk [vmem:[%s1000_s30 + $0xf8] sm:$0xff] %vm621_vm2, %v620_v62  ;;  %v603_v1 = vmul.f32 %v571_v59, %v468_v63  ;;  %v619_v2 = vmul.f32 %v587_v60, %v548_v0 }
  0xf4   : > { %636 = vst.msk [vmem:[%s1000_s30 + $0x70] sm:$0xff] %vm621_vm2, %v603_v1  ;;  %652 = vst.msk [vmem:[%s1000_s30 + $0xf0] sm:$0xff] %vm621_vm2, %v619_v2 }
  0xf5 PF: > { %s13_s12 = sadd.s32 1, %s877_s12  }
  0xf6   : > { %p10_p4 = scmp.ge.s32.totalorder %s13_s12, 4  }
  0xf8   :  { %12 = sbr.rel (!%p10_p4) target bundleno = 1 (0x1), region = 65 }

// kernel: pose_branch_forward.5
= control target key start
LH: loop header
LB: loop body
LE: loop exit
PB: predicated region body
PF: predicated region fallthrough
CT: control target
= control target key end

     0   :  { %s3760_s17 = smov 0   ;;  %s3762_s18 = smov 0   ;;  %s5152_s0 = inlined_call_operand.vmem [shape: f32[2,326,32], index: 0, kind: input, shape index: {}]   ;;  %s5153_s1 = inlined_call_operand.vmem [shape: f32[326,1], index: 1, kind: input, shape index: {}]   ;;  %s5154_s2 = inlined_call_operand.vmem [shape: bf16[32,8], index: 2, kind: input, shape index: {}]   ;;  %s5155_s3 = inlined_call_operand.vmem [shape: f32[1,8], index: 3, kind: input, shape index: {}]   ;;  %s5156_s4 = inlined_call_operand.vmem [shape: f32[1,8], index: 4, kind: input, shape index: {}]   ;;  %s5157_s5 = inlined_call_operand.vmem [shape: bf16[9,8,8], index: 5, kind: input, shape index: {}]   ;;  %s5158_s6 = inlined_call_operand.vmem [shape: f32[1,8], index: 6, kind: input, shape index: {}]   ;;  %s5159_s7 = inlined_call_operand.vmem [shape: f32[1,8], index: 7, kind: input, shape index: {}]   ;;  %s5160_s8 = inlined_call_operand.vmem [shape: bf16[8,32], index: 8, kind: input, shape index: {}]   ;;  %s5161_s9 = inlined_call_operand.vmem [shape: f32[1,32], index: 9, kind: input, shape index: {}]   ;;  %s5162_s10 = inlined_call_operand.vmem [shape: f32[1,32], index: 10, kind: input, shape index: {}]   ;;  %s5163_s11 = inlined_call_operand.vmem [shape: f32[2,288,32], index: 11, kind: output, shape index: {}]  }
   0x1   :  { %s3764_s19 = smov 0   ;;  %s3766_s20 = smov 0  }
   0x2   :  { %s3768_s21 = smov 0  }
   0x3 LB: > { %s30_s22 = sadd.s32 1, %s3687_s19  ;;  %s33_s23 = sadd.s32 1, %s3691_s20  ;;  %s3695_s21 = sphi %s3768_s21, %s21_s21   ;;  %s3691_s20 = sphi %s3766_s20, %s5191_s20   ;;  %s3687_s19 = sphi %s3764_s19, %s5190_s19   ;;  %s3683_s18 = sphi %s3762_s18, %s5189_s18   ;;  %s3679_s17 = sphi %s3760_s17, %s5188_s17  }
   0x4   : > { %p31_p0 = scmp.ge.s32.totalorder %s30_s22, 2  ;;  %p2940_p1 = scmp.ge.s32.totalorder %s3695_s21, 1 }
   0x5   : > { %p351_p2 = scmp.lt.s32.totalorder %s3695_s21, 5 }
   0x6   : > { %s5193_s22 = smov (%p31_p0, %s30_s22), 0  ;;  %s5195_s23 = smov (!%p31_p0, %s33_s23), %s3691_s20 }
   0x7   : > { %p352_p3 = pnand %p2940_p1, %p351_p2  ;;  %p35_p4 = scmp.ge.s32.totalorder %s5195_s23, 2 }
   0x9   : > { %s5197_s23 = smov (%p35_p4, %s5195_s23), 0  ;;  %355 = sbr.rel (%p352_p3) target bundleno = 1014 (0x3f6), region = 64 }
   0xe   : > { %v3636_v0 = vld [vmem:[%s5154_s2 + $0x8] sm:$0xff]   ;;  %p395_p5 = scmp.lt.s32.totalorder %s3683_s18, 1  ;;  %v3637_v1 = vld [vmem:[%s5154_s2] sm:$0xff]   ;;  %s411_s28 = smul.u32 144, %s3679_s17  ;;  %v3697_v4 = vmov 0   ;;  %vm488_vm0 = vcmask 261120  }
   0xf   : > { %3177 = vmatprep.subr.bf16.mxu0 %v3636_v0  ;;  %3585 = vmatprep.subr.bf16.mxu1 %v3636_v0  ;;  %v5165_v56 = vmov 0.0   ;;  %v2959_v62 = vld [vmem:[%s5157_s5 + $0x4] sm:$0xf]  ;;  %vm992_vm1 = vcmask 1043456   ;;  %vm3699_vm2 = vmmov 0   ;;  %vm964_vm3 = vcmask 64512  }
  0x10   : > { %s5199_s18 = smov (!%p395_p5, %s3683_s18), 1  ;;  %3178 = vmatpush3.bf16.msra.mxu0 %v3636_v0  ;;  %3587 = vmatpush3.bf16.msra.mxu1 %v3636_v0  ;;  %s3804_s12 = scalar_lea.vmem %s5153_s1, %s411_s28  ;;  %v994_v63 = vsel %vm992_vm1, %v2959_v62, 0  ;;  %v883_v0 = vld [vmem:[%s5157_s5] sm:$0xf]  ;;  %vm887_vm4 = vsmask.f32 7424 }
  0x11   : > { %3179 = vmatprep.subr.bf16.mxu0 %v3637_v1  ;;  %3586 = vmatprep.subr.bf16.mxu1 %v3637_v1  ;;  %s3589_s13 = smul.u32 328, %s5199_s18  ;;  %v437_v2 = vld [vmem:[%s3804_s12] sm:$0xff]  ;;  %v439_v3 = vld [vmem:[%s3804_s12 + $0x10] sm:$0xff]  ;;  %v438_v5 = vld [vmem:[%s3804_s12 + $0x8] sm:$0xff]  ;;  %vm1239_vm5 = vcmask 1046528   ;;  %vm1761_vm6 = vcmask 1045504  }
  0x12   : > { %3634 = vset.pattern.permute.xlu0 %v3697_v4  ;;  %3635 = vset.pattern.permute.xlu1 %v3697_v4  ;;  %v440_v6 = vld [vmem:[%s3804_s12 + $0x18] sm:$0xff]  ;;  %v441_v25 = vld [vmem:[%s3804_s12 + $0x20] sm:$0xff]  ;;  %v442_v26 = vld [vmem:[%s3804_s12 + $0x28] sm:$0xff]  ;;  %vm1556_vm7 = vsmask.f32 6400  ;;  %vm2283_vm9 = vcmask 1044480  }
  0x13   : > { %s399_s16 = scalar_lea.vmem %s5152_s0, %s3589_s13  ;;  %738 = vperm.xlu0 %3634, %v437_v2   ;;  %748 = vperm.xlu1 %3635, %v439_v3   ;;  %v443_v36 = vld [vmem:[%s3804_s12 + $0x30] sm:$0xff]  ;;  %v444_v37 = vld [vmem:[%s3804_s12 + $0x38] sm:$0xff]  ;;  %v445_v41 = vld [vmem:[%s3804_s12 + $0x40] sm:$0xff]  ;;  %vm2078_vm8 = vsmask.f32 5376  ;;  %s3590_s13 = smul.u32 36, %s5199_s18 }
  0x14   : > { %3180 = vmatpush3.bf16.msra.mxu0 %v3637_v1  ;;  %3588 = vmatpush3.bf16.msra.mxu1 %v3637_v1  ;;  %s3812_s24 = scalar_lea.vmem %s399_s16, %s411_s28  ;;  %v446_v42 = vld [vmem:[%s3804_s12 + $0x48] sm:$0xff]  ;;  %v447_v47 = vld [vmem:[%s3804_s12 + $0x50] sm:$0xff]  ;;  %v448_v48 = vld [vmem:[%s3804_s12 + $0x58] sm:$0xff]  ;;  %v1120_v1 = vsel %vm992_vm1, %v883_v0, 0 }
  0x15   : > { %v413_v7 = vld [vmem:[%s3812_s24] sm:$0xff]  ;;  %v414_v8 = vld [vmem:[%s3812_s24 + $0x8] sm:$0xff]  ;;  %v415_v12 = vld [vmem:[%s3812_s24 + $0x10] sm:$0xff]  ;;  %3205 = vmatprep.subr.bf16.mxu1 %v5165_v56  ;;  %3243 = vmatprep.subr.bf16.mxu0 %v5165_v56 }
  0x16   : > { %v425_v9 = vld [vmem:[%s3812_s24 + $0x60] sm:$0xff]  ;;  %v460_v10 = vpack.c.bf16 %v414_v8, %v413_v7  ;;  %v426_v11 = vld [vmem:[%s3812_s24 + $0x68] sm:$0xff]  ;;  %v416_v13 = vld [vmem:[%s3812_s24 + $0x18] sm:$0xff] }
  0x17   : > { %v466_v14 = vpack.c.bf16 %v426_v11, %v425_v9  ;;  %v461_v15 = vpack.c.bf16 %v416_v13, %v415_v12  ;;  %v427_v16 = vld [vmem:[%s3812_s24 + $0x70] sm:$0xff]  ;;  %v428_v17 = vld [vmem:[%s3812_s24 + $0x78] sm:$0xff]  ;;  %v417_v18 = vld [vmem:[%s3812_s24 + $0x20] sm:$0xff]  ;;  %743 = vperm.xlu0 %3634, %v438_v5   ;;  %753 = vperm.xlu1 %3635, %v440_v6  }
  0x18   : > { %3181 = vmatprep.mubr.msk.bf16.mxu0 %vm488_vm0, %v460_v10  ;;  %v467_v19 = vpack.c.bf16 %v428_v17, %v427_v16  ;;  %v418_v20 = vld [vmem:[%s3812_s24 + $0x28] sm:$0xff]  ;;  %v429_v21 = vld [vmem:[%s3812_s24 + $0x80] sm:$0xff]  ;;  %v419_v27 = vld [vmem:[%s3812_s24 + $0x30] sm:$0xff] }
  0x19   : > { %v430_v22 = vld [vmem:[%s3812_s24 + $0x88] sm:$0xff]  ;;  %3193 = vmatprep.mubr.msk.bf16.mxu1 %vm488_vm0, %v466_v14  ;;  %3182 = vmatmul.mubr.msk.bf16.vlgmr.msra.gmra.mxu0 %vm488_vm0, %v461_v15  ;;  %v462_v23 = vpack.c.bf16 %v418_v20, %v417_v18  ;;  %v420_v28 = vld [vmem:[%s3812_s24 + $0x38] sm:$0xff]  ;;  %v431_v29 = vld [vmem:[%s3812_s24 + $0x90] sm:$0xff] }
  0x1a   : > { %v468_v24 = vpack.c.bf16 %v430_v22, %v429_v21  ;;  %3194 = vmatmul.mubr.msk.bf16.vlgmr.msra.gmra.mxu1 %vm488_vm0, %v467_v19  ;;  %v432_v30 = vld [vmem:[%s3812_s24 + $0x98] sm:$0xff]  ;;  %v421_v31 = vld [vmem:[%s3812_s24 + $0x40] sm:$0xff]  ;;  %v422_v32 = vld [vmem:[%s3812_s24 + $0x48] sm:$0xff]  ;;  %v463_v35 = vpack.c.bf16 %v420_v28, %v419_v27  ;;  %3244 = vmatpush3.bf16.msra.mxu0 %v1120_v1 }
  0x1b   : > { %3185 = vmatprep.mubr.msk.bf16.mxu0 %vm488_vm0, %v462_v23  ;;  %v433_v33 = vld [vmem:[%s3812_s24 + $0xa0] sm:$0xff]  ;;  %v434_v34 = vld [vmem:[%s3812_s24 + $0xa8] sm:$0xff]  ;;  %758 = vperm.xlu0 %3634, %v441_v25   ;;  %v469_v38 = vpack.c.bf16 %v432_v30, %v431_v29  ;;  %v464_v39 = vpack.c.bf16 %v422_v32, %v421_v31  ;;  %v423_v43 = vld [vmem:[%s3812_s24 + $0x50] sm:$0xff] }
  0x1c   : > { %3197 = vmatprep.mubr.msk.bf16.mxu1 %vm488_vm0, %v468_v24  ;;  %763 = vperm.xlu1 %3635, %v442_v26   ;;  %v470_v40 = vpack.c.bf16 %v434_v34, %v433_v33  ;;  %v424_v44 = vld [vmem:[%s3812_s24 + $0x58] sm:$0xff]  ;;  %v435_v45 = vld [vmem:[%s3812_s24 + $0xb0] sm:$0x3f]  ;;  %v449_v50 = vld [vmem:[%s3804_s12 + $0x60] sm:$0xff] }
  0x1d   : > { %v465_v46 = vpack.c.bf16 %v424_v44, %v423_v43  ;;  %v471_v49 = vpack.c.bf16 %v435_v45, %v435_v45  ;;  %v450_v51 = vld [vmem:[%s3804_s12 + $0x68] sm:$0xff]  ;;  %v451_v52 = vld [vmem:[%s3804_s12 + $0x70] sm:$0xff]  ;;  %v452_v53 = vld [vmem:[%s3804_s12 + $0x78] sm:$0xff]  ;;  %3206 = vmatpush3.bf16.msra.mxu1 %v994_v63  ;;  %3319 = vmatprep.subr.bf16.mxu0 %v5165_v56 }
  0x1e   : > { %v453_v54 = vld [vmem:[%s3804_s12 + $0x80] sm:$0xff]  ;;  %v454_v55 = vld [vmem:[%s3804_s12 + $0x88] sm:$0xff]  ;;  %v455_v57 = vld [vmem:[%s3804_s12 + $0x90] sm:$0xff]  ;;  %3281 = vmatprep.subr.bf16.mxu1 %v5165_v56 }
  0x1f   : > { %768 = vperm.xlu0 %3634, %v443_v36   ;;  %v456_v58 = vld [vmem:[%s3804_s12 + $0x98] sm:$0xff]  ;;  %v457_v59 = vld [vmem:[%s3804_s12 + $0xa0] sm:$0xff]  ;;  %v458_v60 = vld [vmem:[%s3804_s12 + $0xa8] sm:$0xff] }
  0x20   : > { %773 = vperm.xlu1 %3635, %v444_v37   ;;  %v459_v61 = vld [vmem:[%s3804_s12 + $0xb0] sm:$0x3f]  ;;  %v3907_v15 = vld [vmem:[%s5155_s3] ss:$0 sm:$0xff]  ;;  %s400_s12 = smul.u32 18, %s3679_s17 }
  0x21   : > { %3186 = vmatmul.mubr.msk.bf16.gmra.mxu0 %vm488_vm0, %v463_v35  ;;  %v3918_v23 = vld [vmem:[%s5156_s4] ss:$0 sm:$0xff] }
  0x22   : > { %3198 = vmatmul.mubr.msk.bf16.gmra.mxu1 %vm488_vm0, %v469_v38  ;;  %3189 = vmatprep.mubr.msk.bf16.mxu0 %vm488_vm0, %v464_v39  ;;  %p403_p6 = scmp.lt.s32.totalorder %s400_s12, 35 }
  0x23   : > { %3201 = vmatprep.mubr.msk.bf16.mxu1 %vm488_vm0, %v470_v40  ;;  %778 = vperm.xlu0 %3634, %v445_v41  }
  0x24   : > { %783 = vperm.xlu1 %3635, %v446_v42   ;;  %s5201_s12 = smov (!%p403_p6, %s400_s12), 35 }
  0x25   : > { %s406_s16 = sadd.s32 %s3590_s13, %s5201_s12 }
  0x26   : > { %s2942_s26 = sshll.u32 %s406_s16, 3 }
  0x27   : > { %788 = vperm.xlu0 %3634, %v447_v47   ;;  %s5049_s27 = scalar_lea.vmem %s5163_s11, %s2942_s26 }
  0x28   : > { %793 = vperm.xlu1 %3635, %v448_v48  }
  0x29   : > { %3190 = vmatmul.mubr.msk.bf16.gmra.mxu0 %vm488_vm0, %v465_v46 }
  0x2a   : > { %3202 = vmatmul.mubr.msk.bf16.gmra.mxu1 %vm488_vm0, %v471_v49  ;;  %3245 = vmatprep.mubr.msk.bf16.mxu0 %vm3699_vm2, %v5165_v56 }
  0x2b   : > { %798 = vperm.xlu0 %3634, %v449_v50   ;;  %3207 = vmatprep.mubr.msk.bf16.mxu1 %vm3699_vm2, %v5165_v56  ;;  %v2978_v50 = vld [vmem:[%s5157_s5 + $0x8] sm:$0xf] }
  0x2c   : > { %803 = vperm.xlu1 %3635, %v450_v51   ;;  %v2988_v51 = vld [vmem:[%s5157_s5 + $0xc] sm:$0xf] }
  0x2f   : > { %808 = vperm.xlu0 %3634, %v451_v52  }
  0x30   : > { %813 = vperm.xlu1 %3635, %v452_v53  }
  0x33   : > { %818 = vperm.xlu0 %3634, %v453_v54  }
  0x34   : > { %823 = vperm.xlu1 %3635, %v454_v55  }
  0x37   : > { %828 = vperm.xlu0 %3634, %v455_v57  }
  0x38   : > { %833 = vperm.xlu1 %3635, %v456_v58  }
  0x3b   : > { %838 = vperm.xlu0 %3634, %v457_v59  }
  0x3c   : > { %843 = vperm.xlu1 %3635, %v458_v60  }
  0x3f   : > { %848 = vperm.xlu0 %3634, %v459_v61  }
  0x8e   : > { %v739_v2 = vpop.permute.xlu0 %738  ;;  %v3886_v3 = vpop.permute.xlu1 %748 }
  0x92   : > { %v744_v4 = vpop.permute.xlu0 %743  ;;  %v754_v5 = vpop.permute.xlu1 %753 }
  0x96   : > { %v3888_v6 = vpop.permute.xlu0 %758 }
  0x97   : > { %v3890_v7 = vpop.permute.xlu1 %763 }
  0x9a   : > { %v3892_v8 = vpop.permute.xlu0 %768 }
  0x9b   : > { %v3894_v9 = vpop.permute.xlu1 %773 }
  0x9e   : > { %v3896_v10 = vpop.permute.xlu0 %778 }
  0x9f   : > { %v3898_v11 = vpop.permute.xlu1 %783 }
  0xa2   : > { %v3900_v12 = vpop.permute.xlu0 %788 }
  0xa3   : > { %v3902_v13 = vpop.permute.xlu1 %793 }
  0xa6   : > { %v3909_v17 = vpop.permute.xlu0 %798 }
  0xa7   : > { %v3911_v19 = vpop.permute.xlu1 %803 }
  0xaa   : > { %v3926_v34 = vpop.permute.xlu0 %808 }
  0xab   : > { %v3928_v36 = vpop.permute.xlu1 %813 }
  0xae   : > { %v819_v63 = vpop.permute.xlu0 %818 }
  0xd9   : > { %v3183_v14 = vpop.f32.mrf.mxu0 }
  0xda   : > { %v3195_v16 = vpop.f32.mrf.mxu1  ;;  %v662_v20 = vmul.f32 %v3183_v14, %v3907_v15 }
  0xdb   : > { %v559_v18 = vpop.f32.mrf.mxu0  ;;  %v674_v28 = vmul.f32 %v3195_v16, %v3907_v15  ;;  %v3954_v16 = vsel %vm992_vm1, %v2978_v50, 0 }
  0xdc   : > { %v660_v21 = vmul.f32 %v3907_v15, %v559_v18  ;;  %v607_v22 = vpop.f32.mrf.mxu1  ;;  %v692_v30 = vadd.f32 %v3918_v23, %v662_v20  ;;  %v1429_v18 = vsel %vm992_vm1, %v2988_v51, 0 }
  0xdd   : > { %v3184_v24 = vpop.f32.mrf.mxu0  ;;  %v3933_v42 = vadd.f32 %v3918_v23, %v674_v28  ;;  %v672_v46 = vmul.f32 %v3907_v15, %v607_v22 }
  0xde   : > { %v690_v25 = vadd.f32 %v3918_v23, %v660_v21  ;;  %v663_v26 = vmul.f32 %v3184_v24, %v3907_v15  ;;  %v3196_v27 = vpop.f32.mrf.mxu1  ;;  %v715_v45 = vmax.f32 %v692_v30, 0.0 }
  0xdf   : > { %v562_v29 = vpop.f32.mrf.mxu0  ;;  %v675_v47 = vmul.f32 %v3196_v27, %v3907_v15  ;;  %v727_v0 = vmax.f32 %v3933_v42, 0.0 }
  0xe0   : > { %v693_v31 = vadd.f32 %v3918_v23, %v663_v26  ;;  %v661_v32 = vmul.f32 %v3907_v15, %v562_v29  ;;  %v610_v33 = vpop.f32.mrf.mxu1  ;;  %v713_v37 = vmax.f32 %v690_v25, 0.0  ;;  %v853_v20 = vmul.f32 %v3886_v3, %v715_v45 }
  0xe1   : > { %v3187_v35 = vpop.f32.mrf.mxu0  ;;  %v673_v40 = vmul.f32 %v3907_v15, %v610_v33  ;;  %v3965_v24 = vadd.f32 %v3918_v23, %v675_v47 }
  0xe2   : > { %v716_v38 = vmax.f32 %v693_v31, 0.0  ;;  %v691_v39 = vadd.f32 %v3918_v23, %v661_v32  ;;  %v3199_v41 = vpop.f32.mrf.mxu1  ;;  %v666_v52 = vmul.f32 %v3187_v35, %v3907_v15  ;;  %v851_v58 = vmul.f32 %v739_v2, %v713_v37  ;;  %v824_v2 = vpop.permute.xlu1 %823 }
  0xe3   : > { %v678_v43 = vmul.f32 %v3199_v41, %v3907_v15  ;;  %v575_v44 = vpop.f32.mrf.mxu0  ;;  %v3949_v61 = vadd.f32 %v3918_v23, %v673_v40 }
  0xe4   : > { %v714_v48 = vmax.f32 %v691_v39, 0.0  ;;  %v623_v49 = vpop.f32.mrf.mxu1  ;;  %v664_v54 = vmul.f32 %v3907_v15, %v575_v44  ;;  %v854_v59 = vmul.f32 %v754_v5, %v716_v38  ;;  %v696_v25 = vadd.f32 %v3918_v23, %v666_v52 }
  0xe5   : > { %v708_v53 = vadd.f32 %v3918_v23, %v678_v43  ;;  %v676_v55 = vmul.f32 %v3907_v15, %v623_v49  ;;  %v3188_v57 = vpop.f32.mrf.mxu0  ;;  %v726_v29 = vmax.f32 %v3949_v61, 0.0 }
  0xe6   : > { %v852_v60 = vmul.f32 %v744_v4, %v714_v48  ;;  %v3200_v62 = vpop.f32.mrf.mxu1  ;;  %v3959_v4 = vadd.f32 %v3918_v23, %v672_v46  ;;  %v667_v21 = vmul.f32 %v3188_v57, %v3907_v15  ;;  %v694_v26 = vadd.f32 %v3918_v23, %v664_v54  ;;  %v829_v46 = vpop.permute.xlu0 %828 }
  0xe7   : > { %v706_v1 = vadd.f32 %v3918_v23, %v676_v55  ;;  %v578_v14 = vpop.f32.mrf.mxu0  ;;  %v679_v27 = vmul.f32 %v3200_v62, %v3907_v15  ;;  %v3970_v3 = vpack.c.bf16 %v854_v59, %v853_v20  ;;  %v731_v33 = vmax.f32 %v708_v53, 0.0  ;;  %v834_v52 = vpop.permute.xlu1 %833 }
  0xe8   : > { %v3961_v5 = vpack.c.bf16 %v852_v60, %v851_v58  ;;  %v626_v22 = vpop.f32.mrf.mxu1  ;;  %v665_v30 = vmul.f32 %v3907_v15, %v578_v14  ;;  %v697_v40 = vadd.f32 %v3918_v23, %v667_v21  ;;  %v719_v47 = vmax.f32 %v696_v25, 0.0 }
  0xe9   : > { %v3191_v28 = vpop.f32.mrf.mxu0  ;;  %v677_v31 = vmul.f32 %v3907_v15, %v626_v22  ;;  %v729_v35 = vmax.f32 %v706_v1, 0.0  ;;  %v709_v37 = vadd.f32 %v3918_v23, %v679_v27  ;;  %v717_v48 = vmax.f32 %v694_v26, 0.0 }
  0xea   : > { %v3203_v32 = vpop.f32.mrf.mxu1  ;;  %3246 = vmatmul.mubr.msk.bf16.vlgmr.msra.gmra.mxu0 %vm964_vm3, %v3961_v5  ;;  %v670_v38 = vmul.f32 %v3191_v28, %v3907_v15  ;;  %v695_v41 = vadd.f32 %v3918_v23, %v665_v30  ;;  %v3991_v59 = vmul.f32 %v829_v46, %v731_v33  ;;  %v720_v14 = vmax.f32 %v697_v40, 0.0 }
  0xeb   : > { %v591_v39 = vpop.f32.mrf.mxu0  ;;  %3249 = vmatprep.mubr.msk.bf16.mxu0 %vm3699_vm2, %v5165_v56  ;;  %v707_v43 = vadd.f32 %v3918_v23, %v677_v31  ;;  %v682_v44 = vmul.f32 %v3203_v32, %v3907_v15  ;;  %3320 = vmatpush3.bf16.msra.mxu0 %v1429_v18  ;;  %v732_v49 = vmax.f32 %v709_v37, 0.0  ;;  %v867_v1 = vmul.f32 %v819_v63, %v729_v35  ;;  %v839_v35 = vpop.permute.xlu0 %838 }
  0xec   : > { %v639_v45 = vpop.f32.mrf.mxu1  ;;  %3395 = vmatprep.subr.bf16.mxu0 %v5165_v56  ;;  %v718_v53 = vmax.f32 %v695_v41, 0.0  ;;  %v668_v57 = vmul.f32 %v3907_v15, %v591_v39  ;;  %v700_v61 = vadd.f32 %v3918_v23, %v670_v38  ;;  %v725_v25 = vmax.f32 %v3959_v4, 0.0 }
  0xed   : > { %v680_v50 = vmul.f32 %v3907_v15, %v639_v45  ;;  %v3192_v51 = vpop.f32.mrf.mxu0  ;;  %v730_v54 = vmax.f32 %v707_v43, 0.0  ;;  %v3988_v55 = vadd.f32 %v3918_v23, %v682_v44  ;;  %v870_v60 = vmul.f32 %v834_v52, %v732_v49 }
  0xee   : > { %v3204_v58 = vpop.f32.mrf.mxu1  ;;  %v856_v18 = vmul.f32 %v3890_v7, %v718_v53  ;;  %v728_v26 = vmax.f32 %v3965_v24, 0.0  ;;  %v864_v27 = vmul.f32 %v3911_v19, %v726_v29  ;;  %v855_v30 = vmul.f32 %v3888_v6, %v717_v48 }
  0xef   : > { %v710_v62 = vadd.f32 %v3918_v23, %v680_v50  ;;  %v868_v20 = vmul.f32 %v824_v2, %v730_v54  ;;  %v594_v21 = vpop.f32.mrf.mxu0  ;;  %v4000_v28 = vpack.c.bf16 %v870_v60, %v3991_v59  ;;  %v698_v63 = vadd.f32 %v3918_v23, %v668_v57  ;;  %v849_v60 = vpop.permute.xlu0 %848 }
  0xf0   : > { %v642_v22 = vpop.f32.mrf.mxu1  ;;  %v671_v7 = vmul.f32 %v3192_v51, %v3907_v15  ;;  %v857_v2 = vmul.f32 %v3892_v8, %v719_v47  ;;  %v723_v4 = vmax.f32 %v700_v61, 0.0  ;;  %v669_v24 = vmul.f32 %v3907_v15, %v594_v21  ;;  %v844_v47 = vpop.permute.xlu1 %843 }
  0xf1   : > { %v4003_v31 = vpack.c.bf16 %v868_v20, %v867_v1  ;;  %v681_v19 = vmul.f32 %v3907_v15, %v642_v22  ;;  %v858_v6 = vmul.f32 %v3894_v9, %v720_v14  ;;  %v4015_v29 = vpack.c.bf16 %v856_v18, %v855_v30 }
  0xf2   : > { %3250 = vmatmul.mubr.msk.bf16.gmra.mxu0 %vm964_vm3, %v3970_v3  ;;  %v701_v32 = vadd.f32 %v3918_v23, %v671_v7  ;;  %v891_v33 = vshll.u32 %v3961_v5, 16  ;;  %v733_v37 = vmax.f32 %v710_v62, 0.0  ;;  %v699_v8 = vadd.f32 %v3918_v23, %v669_v24 }
  0xf3   : > { %3253 = vmatprep.mubr.msk.bf16.mxu0 %vm3699_vm2, %v5165_v56  ;;  %v711_v38 = vadd.f32 %v3918_v23, %v681_v19  ;;  %v896_v39 = vshll.u32 %v3970_v3, 16  ;;  %v721_v15 = vmax.f32 %v698_v63, 0.0  ;;  %v889_v41 = vshrl.u32 %v3961_v5, 16 }
  0xf4   : > { %v724_v40 = vmax.f32 %v701_v32, 0.0  ;;  %v893_v43 = vrot.slane %v891_v33, 1  ;;  %v861_v9 = vmul.f32 %v3900_v12, %v723_v4  ;;  %v735_v44 = vmax.f32 %v3988_v55, 0.0 }
  0xf5   : > { %v722_v45 = vmax.f32 %v699_v8, 0.0  ;;  %v734_v46 = vmax.f32 %v711_v38, 0.0  ;;  %v898_v23 = vrot.slane %v896_v39, 1  ;;  %v4029_v50 = vshll.u32 %v4015_v29, 16 }
  0xf6   : > { %v862_v48 = vmul.f32 %v3902_v13, %v724_v40  ;;  %v894_v49 = vor.u32 %v893_v43, %v889_v41  ;;  %v4031_v51 = vpack.c.bf16 %v858_v6, %v857_v2  ;;  %v871_v52 = vmul.f32 %v839_v35, %v733_v37 }
  0xf7   : > { %v860_v53 = vmul.f32 %v3898_v11, %v722_v45  ;;  %v872_v12 = vmul.f32 %v844_v47, %v734_v46  ;;  %v859_v54 = vmul.f32 %v3896_v10, %v721_v15  ;;  %v863_v13 = vmul.f32 %v3909_v17, %v725_v25 }
  0xf8   : > { %v4035_v55 = vpack.c.bf16 %v862_v48, %v861_v9  ;;  %v899_v57 = vsel %vm887_vm4, %v894_v49, %v898_v23  ;;  %v866_v58 = vmul.f32 %v3928_v36, %v728_v26  ;;  %v865_v10 = vmul.f32 %v3926_v34, %v727_v0 }
  0xf9   : > { %v4042_v61 = vpack.c.bf16 %v872_v12, %v871_v52  ;;  %3208 = vmatmul.mubr.msk.bf16.vlgmr.msra.gmra.mxu1 %vm964_vm3, %v899_v57  ;;  %v873_v11 = vmul.f32 %v849_v60, %v735_v44  ;;  %v4050_v62 = vpack.c.bf16 %v860_v53, %v859_v54  ;;  %v906_v17 = vrot.slane %v4029_v50, 1 }
  0xfa   : > { %3254 = vmatmul.mubr.msk.bf16.gmra.mxu0 %vm964_vm3, %v4015_v29  ;;  %3282 = vmatpush3.bf16.msra.mxu1 %v3954_v16  ;;  %v4056_v36 = vpack.c.bf16 %v864_v27, %v863_v13  ;;  %v900_v1 = vshrl.u32 %v3970_v3, 16  ;;  %v4060_v14 = vshll.u32 %v4031_v51, 16  ;;  %v4063_v42 = vshll.u32 %v4035_v55, 16 }
  0xfb   : > { %3257 = vmatprep.mubr.msk.bf16.mxu0 %vm3699_vm2, %v5165_v56  ;;  %3211 = vmatprep.mubr.msk.bf16.mxu1 %vm3699_vm2, %v5165_v56  ;;  %v884_v34 = vpack.c.bf16 %v3991_v59, %v3991_v59  ;;  %v4069_v0 = vshrl.u32 %v4015_v29, 16  ;;  %v4071_v16 = vpack.c.bf16 %v866_v58, %v865_v10  ;;  %v4073_v20 = vpack.c.bf16 %v873_v11, %v873_v11 }
  0xfc   : > { %3357 = vmatprep.subr.bf16.mxu1 %v5165_v56  ;;  %v902_v18 = vor.u32 %v900_v1, %v898_v23  ;;  %v4077_v22 = vshll.u32 %v4050_v62, 16  ;;  %v4080_v25 = vshll.u32 %v4003_v31, 16  ;;  %v914_v59 = vrot.slane %v4060_v14, 1 }
  0xfd   : > { %v910_v21 = vor.u32 %v4069_v0, %v906_v17  ;;  %v930_v27 = vrot.slane %v4063_v42, 1  ;;  %v4086_v30 = vshll.u32 %v4056_v36, 16  ;;  %v4091_v63 = vshrl.u32 %v4031_v51, 16 }
  0xfe   : > { %v907_v26 = vsel %vm887_vm4, %v902_v18, %v906_v17  ;;  %v5164_v7 = vrot.slane %v4080_v25, 1  ;;  %v4095_v2 = vshrl.u32 %v4003_v31, 16  ;;  %v960_v4 = vshll.u32 %v884_v34, 16 }
  0xff   : > { %v4097_v24 = vpack.c.bf16 %v871_v52, %v871_v52  ;;  %v1557_v19 = vrot.slane %v900_v1, 1  ;;  %v4104_v32 = vshrl.u32 %v4035_v55, 16  ;;  %v922_v35 = vrot.slane %v4077_v22, 1 }
 0x100   : > { %v958_v37 = vor.u32 %v4095_v2, %v5164_v7  ;;  %v962_v8 = vrot.slane %v960_v4, 1  ;;  %v4115_v15 = vshrl.u32 %v4050_v62, 16  ;;  %v938_v41 = vrot.slane %v4086_v30, 1 }
 0x101   : > { %3212 = vmatmul.mubr.msk.bf16.gmra.mxu1 %vm964_vm3, %v907_v26  ;;  %v934_v40 = vor.u32 %v4104_v32, %v930_v27  ;;  %v915_v43 = vsel %vm887_vm4, %v910_v21, %v914_v59  ;;  %v918_v9 = vor.u32 %v4091_v63, %v914_v59  ;;  %v4126_v46 = vshrl.u32 %v4056_v36, 16 }
 0x102   : > { %3258 = vmatmul.mubr.msk.bf16.gmra.mxu0 %vm964_vm3, %v4031_v51  ;;  %3215 = vmatprep.mubr.msk.bf16.mxu1 %vm3699_vm2, %v5165_v56  ;;  %v4123_v45 = vsel %vm887_vm4, %v958_v37, %v962_v8  ;;  %v4129_v47 = vshll.u32 %v4071_v16, 16  ;;  %v4132_v48 = vshrl.u32 %v4071_v16, 16  ;;  %v4135_v49 = vrot.slane %v4003_v31, 1 }
 0x103   : > { %3261 = vmatprep.mubr.msk.bf16.mxu0 %vm3699_vm2, %v5165_v56  ;;  %v923_v23 = vsel %vm887_vm4, %v918_v9, %v922_v35  ;;  %v926_v52 = vor.u32 %v4115_v15, %v922_v35  ;;  %v1418_v53 = vrot.slane %v4000_v28, 1  ;;  %v1420_v12 = vrot.slane %v4097_v24, 1 }
 0x104   : > { %v4142_v54 = vsel %vm887_vm4, %v934_v40, %v938_v41  ;;  %v4145_v57 = vor.u32 %v4126_v46, %v938_v41  ;;  %v1257_v13 = vrot.slane %v884_v34, 1  ;;  %v1762_v58 = vrot.slane %v3970_v3, 2 }
 0x105   : > { %v4152_v60 = vsel %vm1239_vm5, %v4135_v49, %v1418_v53  ;;  %v4155_v10 = vsel %vm1239_vm5, %v1418_v53, %v1420_v12  ;;  %v1763_v11 = vrot.slane %v4015_v29, 2  ;;  %v1558_v17 = vrot.slane %v896_v39, 2 }
 0x106   : > { %v4165_v1 = vsel %vm1239_vm5, %v4135_v49, %v1257_v13  ;;  %v1560_v34 = vrot.slane %v4069_v0, 1  ;;  %v1561_v18 = vrot.slane %v4029_v50, 2  ;;  %v1765_v21 = vrot.slane %v4031_v51, 2 }
 0x107   : > { %v4173_v39 = vsel %vm887_vm4, %v926_v52, %v930_v27  ;;  %v4176_v26 = vsel %vm1761_vm6, %v1762_v58, %v1763_v11  ;;  %v1559_v59 = vor.u32 %v1558_v17, %v1557_v19  ;;  %v1564_v4 = vrot.slane %v4091_v63, 1 }
 0x108   : > { %v1562_v35 = vor.u32 %v1561_v18, %v1560_v34  ;;  %v4180_v37 = vsel %vm1761_vm6, %v1763_v11, %v1765_v21  ;;  %v1565_v8 = vrot.slane %v4060_v14, 2  ;;  %v1767_v40 = vrot.slane %v4050_v62, 2 }
 0x109   : > { %3216 = vmatmul.mubr.msk.bf16.gmra.mxu1 %vm964_vm3, %v915_v43  ;;  %v1568_v41 = vrot.slane %v4115_v15, 1  ;;  %v1569_v43 = vrot.slane %v4077_v22, 2  ;;  %v1769_v27 = vrot.slane %v4035_v55, 2  ;;  %v1572_v9 = vrot.slane %v4104_v32, 1 }
 0x10a   : > { %3262 = vmatmul.mubr.msk.bf16.gmra.mxu0 %vm964_vm3, %v4050_v62  ;;  %3219 = vmatprep.mubr.msk.bf16.mxu1 %vm3699_vm2, %v5165_v56  ;;  %v4189_v19 = vsel %vm1556_vm7, %v1559_v59, %v1562_v35  ;;  %v1566_v52 = vor.u32 %v1565_v8, %v1564_v4  ;;  %v4192_v53 = vsel %vm1761_vm6, %v1765_v21, %v1767_v40  ;;  %v1573_v12 = vrot.slane %v4063_v42, 2 }
 0x10b   : > { %3265 = vmatprep.mubr.msk.bf16.mxu0 %vm3699_vm2, %v5165_v56  ;;  %v1570_v13 = vor.u32 %v1569_v43, %v1568_v41  ;;  %v4196_v58 = vsel %vm1761_vm6, %v1767_v40, %v1769_v27  ;;  %v1771_v11 = vrot.slane %v4056_v36, 2  ;;  %v1576_v17 = vrot.slane %v4126_v46, 1 }
 0x10c   : > { %v4201_v34 = vsel %vm1556_vm7, %v1562_v35, %v1566_v52  ;;  %v1574_v18 = vor.u32 %v1573_v12, %v1572_v9  ;;  %v1577_v59 = vrot.slane %v4086_v30, 2  ;;  %v1773_v4 = vrot.slane %v4071_v16, 2 }
 0x10d   : > { %v4208_v21 = vsel %vm1556_vm7, %v1566_v52, %v1570_v13  ;;  %v4211_v8 = vsel %vm1761_vm6, %v1769_v27, %v1771_v11  ;;  %v1580_v40 = vrot.slane %v4132_v48, 1  ;;  %v1581_v35 = vrot.slane %v4129_v47, 2 }
 0x10e   : > { %v4219_v41 = vsel %vm1556_vm7, %v1570_v13, %v1574_v18  ;;  %v1578_v43 = vor.u32 %v1577_v59, %v1576_v17  ;;  %v4222_v9 = vsel %vm1761_vm6, %v1771_v11, %v1773_v4  ;;  %v1775_v52 = vrot.slane %v4003_v31, 2 }
 0x10f   : > { %5170 = vst [vmem:[#allocation2_spill] sm:$0xff] %v4219_v41  ;;  %5171 = vst [vmem:[#allocation3_spill] sm:$0xff] %v4222_v9  ;;  %v1582_v27 = vor.u32 %v1581_v35, %v1580_v40  ;;  %v1584_v12 = vrot.slane %v4095_v2, 1  ;;  %v1777_v7 = vrot.slane %v4000_v28, 2  ;;  %v1589_v11 = vshrl.u32 %v4000_v28, 16 }
 0x110   : > { %v4231_v38 = vsel %vm1556_vm7, %v1574_v18, %v1578_v43  ;;  %v4234_v13 = vsel %vm1761_vm6, %v1773_v4, %v1775_v52  ;;  %v1592_v17 = vshll.u32 %v4000_v28, 16  ;;  %v1598_v18 = vshrl.u32 %v4097_v24, 16 }
 0x111   : > { %3220 = vmatmul.mubr.msk.bf16.gmra.mxu1 %vm964_vm3, %v923_v23  ;;  %v1585_v23 = vrot.slane %v4080_v25, 2  ;;  %5172 = vst [vmem:[#allocation4_spill] sm:$0xff] %v4231_v38  ;;  %5173 = vst [vmem:[#allocation5_spill] sm:$0xff] %v4234_v13  ;;  %v4239_v59 = vsel %vm1556_vm7, %v1578_v43, %v1582_v27  ;;  %v4242_v35 = vsel %vm1761_vm6, %v1775_v52, %v1777_v7  ;;  %v1591_v44 = vrot.slane %v1589_v11, 1 }
 0x112   : > { %3266 = vmatmul.mubr.msk.bf16.gmra.mxu0 %vm964_vm3, %v4035_v55  ;;  %3223 = vmatprep.mubr.msk.bf16.mxu1 %vm3699_vm2, %v5165_v56  ;;  %5174 = vst [vmem:[#allocation6_spill] sm:$0xff] %v4239_v59  ;;  %5175 = vst [vmem:[#allocation7_spill] sm:$0xff] %v4242_v35  ;;  %v1594_v6 = vrot.slane %v1592_v17, 2  ;;  %v1601_v4 = vshll.u32 %v4097_v24, 16  ;;  %v5176_v43 = vrot.slane %v4069_v0, 2  ;;  %v5179_v59 = vrot.slane %v4060_v14, 3 }
 0x113   : > { %3269 = vmatprep.mubr.msk.bf16.mxu0 %vm3699_vm2, %v5165_v56  ;;  %v1586_v40 = vor.u32 %v1585_v23, %v1584_v12  ;;  %v1779_v56 = vrot.slane %v4097_v24, 2  ;;  %v5177_v12 = vrot.slane %v4029_v50, 3  ;;  %v5178_v23 = vrot.slane %v4091_v63, 2 }
 0x114   : > { %v1595_v13 = vor.u32 %v1594_v6, %v1591_v44  ;;  %v1600_v41 = vrot.slane %v1598_v18, 1  ;;  %v1603_v9 = vrot.slane %v1601_v4, 2  ;;  %v2086_v24 = vrot.slane %v4115_v15, 2 }
 0x115   : > { %v4248_v33 = vsel %vm1556_vm7, %v1582_v27, %v1586_v40  ;;  %v4251_v38 = vsel %vm1761_vm6, %v1777_v7, %v1779_v56  ;;  %v2081_v52 = vor.u32 %v5177_v12, %v5176_v43  ;;  %v2084_v35 = vor.u32 %v5179_v59, %v5178_v23 }
 0x116   : > { %v2087_v0 = vrot.slane %v4077_v22, 3  ;;  %v2090_v50 = vrot.slane %v4104_v32, 2  ;;  %v2091_v63 = vrot.slane %v4063_v42, 3  ;;  %v5180_v14 = vmov 0.0  }
 0x117   : > { %v4265_v56 = vsel %vm2078_vm8, %v2081_v52, %v2084_v35  ;;  %v4275_v6 = vsel %vm1556_vm7, %v1586_v40, %v1595_v13  ;;  %v1604_v15 = vor.u32 %v1603_v9, %v1600_v41  ;;  %v2094_v44 = vrot.slane %v4126_v46, 2 }
 0x118   : > { %v2095_v27 = vrot.slane %v4086_v30, 3  ;;  %v2088_v22 = vor.u32 %v2087_v0, %v2086_v24  ;;  %v2092_v32 = vor.u32 %v2091_v63, %v2090_v50  ;;  %v2098_v42 = vrot.slane %v4132_v48, 2 }
 0x119   : > { %3224 = vmatmul.mubr.msk.bf16.gmra.mxu1 %vm964_vm3, %v4173_v39  ;;  %v2099_v39 = vrot.slane %v4129_v47, 3  ;;  %v4284_v59 = vsel %vm1556_vm7, %v1595_v13, %v1604_v15  ;;  %v2102_v41 = vrot.slane %v4095_v2, 2  ;;  %v2103_v46 = vrot.slane %v4080_v25, 3 }
 0x11a   : > { %3270 = vmatmul.mubr.msk.bf16.gmra.mxu0 %vm964_vm3, %v4056_v36  ;;  %3227 = vmatprep.mubr.msk.bf16.mxu1 %vm3699_vm2, %v5180_v14  ;;  %v2096_v40 = vor.u32 %v2095_v27, %v2094_v44  ;;  %v4289_v30 = vsel %vm2078_vm8, %v2084_v35, %v2088_v22  ;;  %v4292_v9 = vsel %vm2078_vm8, %v2088_v22, %v2092_v32  ;;  %v2106_v4 = vrot.slane %v1589_v11, 2 }
 0x11b   : > { %3273 = vmatprep.mubr.msk.bf16.mxu0 %vm3699_vm2, %v5180_v14  ;;  %v2100_v18 = vor.u32 %v2099_v39, %v2098_v42  ;;  %v2104_v12 = vor.u32 %v2103_v46, %v2102_v41  ;;  %v2107_v52 = vrot.slane %v1592_v17, 3  ;;  %v2111_v13 = vshrl.u32 %v4042_v61, 16 }
 0x11c   : > { %v4295_v43 = vsel %vm2078_vm8, %v2092_v32, %v2096_v40  ;;  %v2114_v2 = vshll.u32 %v4042_v61, 16  ;;  %v1940_v35 = vrot.slane %v4042_v61, 2  ;;  %v2120_v24 = vshrl.u32 %v4073_v20, 16 }
 0x11d   : > { %v4299_v23 = vsel %vm2078_vm8, %v2096_v40, %v2100_v18  ;;  %v4305_v0 = vsel %vm2078_vm8, %v2100_v18, %v2104_v12  ;;  %v2108_v11 = vor.u32 %v2107_v52, %v2106_v4  ;;  %v2113_v50 = vrot.slane %v2111_v13, 2 }
 0x11e   : > { %v2123_v63 = vshll.u32 %v4073_v20, 16  ;;  %v2116_v17 = vrot.slane %v2114_v2, 3  ;;  %v4311_v15 = vsel %vm1761_vm6, %v1777_v7, %v1940_v35  ;;  %v2122_v44 = vrot.slane %v2120_v24, 2 }
 0x11f   : > { %v1942_v27 = vrot.slane %v4073_v20, 2  ;;  %v4319_v22 = vsel %vm2078_vm8, %v2104_v12, %v2108_v11  ;;  %v2284_v42 = vrot.slane %v4015_v29, 3  ;;  %v2285_v39 = vrot.slane %v4031_v51, 3 }
 0x120   : > { %v2125_v32 = vrot.slane %v2123_v63, 3  ;;  %v2117_v7 = vor.u32 %v2116_v17, %v2113_v50  ;;  %v2289_v41 = vrot.slane %v4035_v55, 3  ;;  %v2291_v4 = vrot.slane %v4056_v36, 3 }
 0x121   : > { %3228 = vmatmul.mubr.msk.bf16.gmra.mxu1 %vm964_vm3, %v4142_v54  ;;  %v4326_v40 = vsel %vm1761_vm6, %v1940_v35, %v1942_v27  ;;  %v2287_v54 = vrot.slane %v4050_v62, 3  ;;  %v4331_v18 = vsel %vm2283_vm9, %v2284_v42, %v2285_v39  ;;  %v2293_v12 = vrot.slane %v4071_v16, 3 }
 0x122   : > { %3274 = vmatmul.mubr.msk.bf16.gmra.mxu0 %vm964_vm3, %v4071_v16  ;;  %3231 = vmatprep.mubr.msk.bf16.mxu1 %vm3699_vm2, %v5180_v14  ;;  %v2126_v46 = vor.u32 %v2125_v32, %v2122_v44  ;;  %v4336_v52 = vsel %vm2078_vm8, %v2108_v11, %v2117_v7  ;;  %v2295_v35 = vrot.slane %v4003_v31, 3  ;;  %v4349_v50 = vsel %vm2283_vm9, %v2289_v41, %v2291_v4 }
 0x123   : > { %3277 = vmatprep.mubr.msk.bf16.mxu0 %vm3699_vm2, %v5180_v14  ;;  %v4339_v13 = vsel %vm2283_vm9, %v2285_v39, %v2287_v54  ;;  %v4342_v2 = vsel %vm2283_vm9, %v2287_v54, %v2289_v41  ;;  %v4352_v63 = vsel %vm2283_vm9, %v2291_v4, %v2293_v12  ;;  %v2297_v11 = vrot.slane %v4000_v28, 3 }
 0x124   : > { %v4346_v24 = vsel %vm2078_vm8, %v2117_v7, %v2126_v46  ;;  %v946_v17 = vrot.slane %v4129_v47, 1  ;;  %v4357_v44 = vsel %vm2283_vm9, %v2293_v12, %v2295_v35  ;;  %v2299_v27 = vrot.slane %v4042_v61, 3 }
 0x125   : > { %v2301_v32 = vrot.slane %v4073_v20, 3  ;;  %v4362_v42 = vsel %vm2283_vm9, %v2295_v35, %v2297_v11  ;;  %v1243_v61 = vrot.slane %v4015_v29, 1  ;;  %v1241_v20 = vrot.slane %v3970_v3, 1 }
 0x126   : > { %v947_v39 = vsel %vm887_vm4, %v4145_v57, %v946_v17  ;;  %v4369_v28 = vsel %vm2283_vm9, %v2297_v11, %v2299_v27  ;;  %v950_v57 = vor.u32 %v4132_v48, %v946_v17  ;;  %v5181_v41 = vrot.slane %v4080_v25, 1 }
 0x127   : > { %v4372_v47 = vsel %vm2283_vm9, %v2299_v27, %v2301_v32  ;;  %v1244_v7 = vsel %vm1239_vm5, %v1241_v20, %v1243_v61  ;;  %v1245_v3 = vrot.slane %v4031_v51, 1  ;;  %v1247_v25 = vrot.slane %v4050_v62, 1  ;;  %v2998_v51 = vld [vmem:[%s5157_s5 + $0x10] sm:$0xf] }
 0x128   : > { %v955_v46 = vsel %vm887_vm4, %v950_v57, %v5181_v41  ;;  %v1240_v48 = vrot.slane %v3961_v5, 1  ;;  %v1634_v4 = vsel %vm992_vm1, %v2998_v51, 0  ;;  %v1249_v5 = vrot.slane %v4035_v55, 1 }
 0x129   : > { %3232 = vmatmul.mubr.msk.bf16.gmra.mxu1 %vm964_vm3, %v947_v39  ;;  %v1246_v29 = vsel %vm1239_vm5, %v1243_v61, %v1245_v3  ;;  %v1248_v12 = vsel %vm1239_vm5, %v1245_v3, %v1247_v25  ;;  %v1251_v35 = vrot.slane %v4056_v36, 1  ;;  %v1253_v55 = vrot.slane %v4071_v16, 1  ;;  %v3028_v16 = vld [vmem:[%s5157_s5 + $0x1c] sm:$0xf] }
 0x12a   : > { %3278 = vmatmul.mubr.msk.bf16.gmra.mxu0 %vm964_vm3, %v4003_v31  ;;  %3235 = vmatprep.mubr.msk.bf16.mxu1 %vm3699_vm2, %v5180_v14  ;;  %v3008_v31 = vld [vmem:[%s5157_s5 + $0x14] sm:$0xf]  ;;  %v1250_v62 = vsel %vm1239_vm5, %v1247_v25, %v1249_v5 }
 0x12b   : > { %3321 = vmatprep.mubr.msk.bf16.mxu0 %vm3699_vm2, %v5180_v14  ;;  %v1809_v54 = vsel %vm992_vm1, %v3008_v31, 0  ;;  %v1252_v11 = vsel %vm1239_vm5, %v1249_v5, %v1251_v35  ;;  %v1254_v17 = vsel %vm1239_vm5, %v1251_v35, %v1253_v55  ;;  %v1256_v36 = vsel %vm1239_vm5, %v1253_v55, %v4135_v49  ;;  %v5186_v31 = vld [vmem:[#allocation7_spill] sm:$0xff] }
 0x12c   : > { %v2156_v49 = vsel %vm992_vm1, %v3028_v16, 0 }
 0x131   : > { %3236 = vmatmul.mubr.msk.bf16.gmra.mxu1 %vm964_vm3, %v955_v46 }
 0x132   : > { %3322 = vmatmul.mubr.msk.bf16.vlgmr.msra.gmra.mxu0 %vm964_vm3, %v1244_v7  ;;  %3239 = vmatprep.mubr.msk.bf16.mxu1 %vm3699_vm2, %v5180_v14 }
 0x133   : > { %3325 = vmatprep.mubr.msk.bf16.mxu0 %vm3699_vm2, %v5180_v14  ;;  %3396 = vmatpush3.bf16.msra.mxu0 %v1809_v54 }
 0x134   : > { %3471 = vmatprep.subr.bf16.mxu0 %v5180_v14 }
 0x139   : > { %3240 = vmatmul.mubr.msk.bf16.gmra.mxu1 %vm964_vm3, %v4123_v45  ;;  %v1242_v45 = vsel %vm1239_vm5, %v1240_v48, %v1241_v20  ;;  %v5187_v20 = vld [vmem:[#allocation6_spill] sm:$0xff] }
 0x13a   : > { %3326 = vmatmul.mubr.msk.bf16.gmra.mxu0 %vm964_vm3, %v1246_v29  ;;  %3283 = vmatprep.mubr.msk.bf16.mxu1 %vm3699_vm2, %v5180_v14 }
 0x13b   : > { %3329 = vmatprep.mubr.msk.bf16.mxu0 %vm3699_vm2, %v5180_v14 }
 0x141   : > { %3284 = vmatmul.mubr.msk.bf16.vlgmr.msra.gmra.mxu1 %vm964_vm3, %v1242_v45 }
 0x142   : > { %3330 = vmatmul.mubr.msk.bf16.gmra.mxu0 %vm964_vm3, %v1248_v12  ;;  %3358 = vmatpush3.bf16.msra.mxu1 %v1634_v4 }
 0x143   : > { %3333 = vmatprep.mubr.msk.bf16.mxu0 %vm3699_vm2, %v5180_v14  ;;  %3287 = vmatprep.mubr.msk.bf16.mxu1 %vm3699_vm2, %v5180_v14 }
 0x144   : > { %3433 = vmatprep.subr.bf16.mxu1 %v5180_v14 }
 0x149   : > { %3288 = vmatmul.mubr.msk.bf16.gmra.mxu1 %vm964_vm3, %v1244_v7 }
 0x14a   : > { %3334 = vmatmul.mubr.msk.bf16.gmra.mxu0 %vm964_vm3, %v1250_v62  ;;  %3291 = vmatprep.mubr.msk.bf16.mxu1 %vm3699_vm2, %v5180_v14 }
 0x14b   : > { %3337 = vmatprep.mubr.msk.bf16.mxu0 %vm3699_vm2, %v5180_v14 }
 0x151   : > { %3292 = vmatmul.mubr.msk.bf16.gmra.mxu1 %vm964_vm3, %v1246_v29 }
 0x152   : > { %3338 = vmatmul.mubr.msk.bf16.gmra.mxu0 %vm964_vm3, %v1252_v11  ;;  %3295 = vmatprep.mubr.msk.bf16.mxu1 %vm3699_vm2, %v5180_v14 }
 0x153   : > { %3341 = vmatprep.mubr.msk.bf16.mxu0 %vm3699_vm2, %v5180_v14 }
 0x159   : > { %3296 = vmatmul.mubr.msk.bf16.gmra.mxu1 %vm964_vm3, %v1248_v12 }
 0x15a   : > { %3342 = vmatmul.mubr.msk.bf16.gmra.mxu0 %vm964_vm3, %v1254_v17  ;;  %3299 = vmatprep.mubr.msk.bf16.mxu1 %vm3699_vm2, %v5180_v14 }
 0x15b   : > { %3345 = vmatprep.mubr.msk.bf16.mxu0 %vm3699_vm2, %v5180_v14 }
 0x161   : > { %3300 = vmatmul.mubr.msk.bf16.gmra.mxu1 %vm964_vm3, %v1250_v62 }
 0x162   : > { %3346 = vmatmul.mubr.msk.bf16.gmra.mxu0 %vm964_vm3, %v1256_v36  ;;  %3303 = vmatprep.mubr.msk.bf16.mxu1 %vm3699_vm2, %v5180_v14 }
 0x163   : > { %3349 = vmatprep.mubr.msk.bf16.mxu0 %vm3699_vm2, %v5180_v14 }
 0x169   : > { %3304 = vmatmul.mubr.msk.bf16.gmra.mxu1 %vm964_vm3, %v1252_v11 }
 0x16a   : > { %3350 = vmatmul.mubr.msk.bf16.gmra.mxu0 %vm964_vm3, %v4152_v60  ;;  %3307 = vmatprep.mubr.msk.bf16.mxu1 %vm3699_vm2, %v5180_v14  ;;  %v3018_v60 = vld [vmem:[%s5157_s5 + $0x18] sm:$0xf] }
 0x16b   : > { %3353 = vmatprep.mubr.msk.bf16.mxu0 %vm3699_vm2, %v5180_v14 }
 0x171   : > { %3308 = vmatmul.mubr.msk.bf16.gmra.mxu1 %vm964_vm3, %v1254_v17 }
 0x172   : > { %3354 = vmatmul.mubr.msk.bf16.gmra.mxu0 %vm964_vm3, %v4155_v10  ;;  %3311 = vmatprep.mubr.msk.bf16.mxu1 %vm3699_vm2, %v5180_v14  ;;  %v1951_v10 = vsel %vm992_vm1, %v3018_v60, 0 }
 0x173   : > { %3397 = vmatprep.mubr.msk.bf16.mxu0 %vm3699_vm2, %v5180_v14 }
 0x179   : > { %3312 = vmatmul.mubr.msk.bf16.gmra.mxu1 %vm964_vm3, %v1256_v36 }
 0x17a   : > { %3398 = vmatmul.mubr.msk.bf16.vlgmr.msra.gmra.mxu0 %vm964_vm3, %v4176_v26  ;;  %3315 = vmatprep.mubr.msk.bf16.mxu1 %vm3699_vm2, %v5180_v14  ;;  %v5183_v26 = vld [vmem:[#allocation2_spill] sm:$0xff] }
 0x17b   : > { %3401 = vmatprep.mubr.msk.bf16.mxu0 %vm3699_vm2, %v5180_v14  ;;  %3472 = vmatpush3.bf16.msra.mxu0 %v2156_v49 }
 0x17c   : > { %3547 = vmatprep.subr.bf16.mxu0 %v5180_v14 }
 0x181   : > { %3316 = vmatmul.mubr.msk.bf16.gmra.mxu1 %vm964_vm3, %v4165_v1  ;;  %v5182_v1 = vld [vmem:[#allocation3_spill] sm:$0xff] }
 0x182   : > { %3402 = vmatmul.mubr.msk.bf16.gmra.mxu0 %vm964_vm3, %v4180_v37  ;;  %3359 = vmatprep.mubr.msk.bf16.mxu1 %vm3699_vm2, %v5180_v14 }
 0x183   : > { %3405 = vmatprep.mubr.msk.bf16.mxu0 %vm3699_vm2, %v5180_v14 }
 0x189   : > { %3360 = vmatmul.mubr.msk.bf16.vlgmr.msra.gmra.mxu1 %vm964_vm3, %v4189_v19 }
 0x18a   : > { %3406 = vmatmul.mubr.msk.bf16.gmra.mxu0 %vm964_vm3, %v4192_v53  ;;  %3434 = vmatpush3.bf16.msra.mxu1 %v1951_v10 }
 0x18b   : > { %3409 = vmatprep.mubr.msk.bf16.mxu0 %vm3699_vm2, %v5180_v14  ;;  %3363 = vmatprep.mubr.msk.bf16.mxu1 %vm3699_vm2, %v5180_v14 }
 0x18c   : > { %3509 = vmatprep.subr.bf16.mxu1 %v5180_v14 }
 0x191   : > { %3364 = vmatmul.mubr.msk.bf16.gmra.mxu1 %vm964_vm3, %v4201_v34  ;;  %v5184_v34 = vld [vmem:[#allocation5_spill] sm:$0xff] }
 0x192   : > { %3410 = vmatmul.mubr.msk.bf16.gmra.mxu0 %vm964_vm3, %v4196_v58  ;;  %3367 = vmatprep.mubr.msk.bf16.mxu1 %vm3699_vm2, %v5180_v14 }
 0x193   : > { %3413 = vmatprep.mubr.msk.bf16.mxu0 %vm3699_vm2, %v5180_v14 }
 0x199   : > { %3368 = vmatmul.mubr.msk.bf16.gmra.mxu1 %vm964_vm3, %v4208_v21  ;;  %v5185_v21 = vld [vmem:[#allocation4_spill] sm:$0xff] }
 0x19a   : > { %3414 = vmatmul.mubr.msk.bf16.gmra.mxu0 %vm964_vm3, %v4211_v8  ;;  %3371 = vmatprep.mubr.msk.bf16.mxu1 %vm3699_vm2, %v5180_v14 }
 0x19b   : > { %3417 = vmatprep.mubr.msk.bf16.mxu0 %vm3699_vm2, %v5180_v14 }
 0x1a1   : > { %3372 = vmatmul.mubr.msk.bf16.gmra.mxu1 %vm964_vm3, %v5183_v26  ;;  %v3038_v26 = vld [vmem:[%s5157_s5 + $0x20] sm:$0xf] }
 0x1a2   : > { %3418 = vmatmul.mubr.msk.bf16.gmra.mxu0 %vm964_vm3, %v5182_v1  ;;  %3375 = vmatprep.mubr.msk.bf16.mxu1 %vm3699_vm2, %v5180_v14 }
 0x1a3   : > { %3421 = vmatprep.mubr.msk.bf16.mxu0 %vm3699_vm2, %v5180_v14 }
 0x1a9   : > { %3376 = vmatmul.mubr.msk.bf16.gmra.mxu1 %vm964_vm3, %v5185_v21 }
 0x1aa   : > { %v1156_v19 = vpop.f32.mrf.mxu0  ;;  %3422 = vmatmul.mubr.msk.bf16.gmra.mxu0 %vm964_vm3, %v5184_v34  ;;  %3379 = vmatprep.mubr.msk.bf16.mxu1 %vm3699_vm2, %v5180_v14 }
 0x1ab   : > { %3425 = vmatprep.mubr.msk.bf16.mxu0 %vm3699_vm2, %v5180_v14 }
 0x1ac   : > { %v3247_v27 = vpop.f32.mrf.mxu0 }
 0x1ae   : > { %v1159_v32 = vpop.f32.mrf.mxu0 }
 0x1b0   : > { %v3248_v39 = vpop.f32.mrf.mxu0 }
 0x1b1   : > { %3380 = vmatmul.mubr.msk.bf16.gmra.mxu1 %vm964_vm3, %v5187_v20 }
 0x1b2   : > { %v1164_v61 = vpop.f32.mrf.mxu0  ;;  %3426 = vmatmul.mubr.msk.bf16.gmra.mxu0 %vm964_vm3, %v5186_v31  ;;  %3383 = vmatprep.mubr.msk.bf16.mxu1 %vm3699_vm2, %v5180_v14 }
 0x1b3   : > { %3429 = vmatprep.mubr.msk.bf16.mxu0 %vm3699_vm2, %v5180_v14 }
 0x1b4   : > { %v3251_v57 = vpop.f32.mrf.mxu0 }
 0x1b6   : > { %v1167_v7 = vpop.f32.mrf.mxu0 }
 0x1b8   : > { %v3252_v54 = vpop.f32.mrf.mxu0 }
 0x1b9   : > { %v1030_v46 = vpop.f32.mrf.mxu1  ;;  %3384 = vmatmul.mubr.msk.bf16.gmra.mxu1 %vm964_vm3, %v4248_v33 }
 0x1ba   : > { %v1172_v41 = vpop.f32.mrf.mxu0  ;;  %3430 = vmatmul.mubr.msk.bf16.gmra.mxu0 %vm964_vm3, %v4251_v38  ;;  %v4546_v3 = vadd.f32 %v1156_v19, %v1030_v46  ;;  %3387 = vmatprep.mubr.msk.bf16.mxu1 %vm3699_vm2, %v5180_v14 }
 0x1bb   : > { %3473 = vmatprep.mubr.msk.bf16.mxu0 %vm3699_vm2, %v5180_v14  ;;  %v3209_v25 = vpop.f32.mrf.mxu1 }
 0x1bc   : > { %v3255_v29 = vpop.f32.mrf.mxu0 }
 0x1bd   : > { %v1033_v51 = vpop.f32.mrf.mxu1 }
 0x1be   : > { %v1175_v48 = vpop.f32.mrf.mxu0  ;;  %v4550_v4 = vadd.f32 %v1159_v32, %v1033_v51  ;;  %v2331_v32 = vsel %vm992_vm1, %v3038_v26, 0 }
 0x1bf   : > { %v3210_v38 = vpop.f32.mrf.mxu1 }
 0x1c0   : > { %v3256_v12 = vpop.f32.mrf.mxu0 }
 0x1c1   : > { %v1038_v33 = vpop.f32.mrf.mxu1  ;;  %3388 = vmatmul.mubr.msk.bf16.gmra.mxu1 %vm964_vm3, %v4275_v6 }
 0x1c2   : > { %v1180_v45 = vpop.f32.mrf.mxu0  ;;  %3474 = vmatmul.mubr.msk.bf16.vlgmr.msra.gmra.mxu0 %vm964_vm3, %v4265_v56  ;;  %v4558_v5 = vadd.f32 %v1164_v61, %v1038_v33  ;;  %3391 = vmatprep.mubr.msk.bf16.mxu1 %vm3699_vm2, %v5180_v14 }
 0x1c3   : > { %3477 = vmatprep.mubr.msk.bf16.mxu0 %vm3699_vm2, %v5180_v14  ;;  %v3213_v35 = vpop.f32.mrf.mxu1 }
 0x1c4   : > { %v3259_v62 = vpop.f32.mrf.mxu0 }
 0x1c5   : > { %v1041_v55 = vpop.f32.mrf.mxu1 }
 0x1c6   : > { %v1183_v11 = vpop.f32.mrf.mxu0  ;;  %v4562_v17 = vadd.f32 %v1167_v7, %v1041_v55 }
 0x1c7   : > { %v3214_v56 = vpop.f32.mrf.mxu1 }
 0x1c8   : > { %v3260_v36 = vpop.f32.mrf.mxu0 }
 0x1c9   : > { %v1046_v6 = vpop.f32.mrf.mxu1  ;;  %3392 = vmatmul.mubr.msk.bf16.gmra.mxu1 %vm964_vm3, %v4284_v59 }
 0x1ca   : > { %v1188_v16 = vpop.f32.mrf.mxu0  ;;  %3478 = vmatmul.mubr.msk.bf16.gmra.mxu0 %vm964_vm3, %v4289_v30  ;;  %v4570_v49 = vadd.f32 %v1172_v41, %v1046_v6  ;;  %3435 = vmatprep.mubr.msk.bf16.mxu1 %vm3699_vm2, %v5180_v14 }
 0x1cb   : > { %3481 = vmatprep.mubr.msk.bf16.mxu0 %vm3699_vm2, %v5180_v14  ;;  %v3217_v10 = vpop.f32.mrf.mxu1 }
 0x1cc   : > { %v3263_v60 = vpop.f32.mrf.mxu0 }
 0x1cd   : > { %v1049_v30 = vpop.f32.mrf.mxu1 }
 0x1ce   : > { %v1191_v19 = vpop.f32.mrf.mxu0  ;;  %v4577_v21 = vadd.f32 %v1175_v48, %v1049_v30 }
 0x1cf   : > { %v3218_v59 = vpop.f32.mrf.mxu1 }
 0x1d0   : > { %v3264_v27 = vpop.f32.mrf.mxu0 }
 0x1d1   : > { %v1054_v61 = vpop.f32.mrf.mxu1  ;;  %3436 = vmatmul.mubr.msk.bf16.vlgmr.msra.gmra.mxu1 %vm964_vm3, %v4180_v37 }
 0x1d2   : > { %v1196_v39 = vpop.f32.mrf.mxu0  ;;  %3482 = vmatmul.mubr.msk.bf16.gmra.mxu0 %vm964_vm3, %v4292_v9  ;;  %v4586_v20 = vadd.f32 %v1180_v45, %v1054_v61  ;;  %3510 = vmatpush3.bf16.msra.mxu1 %v2331_v32 }
 0x1d3   : > { %3485 = vmatprep.mubr.msk.bf16.mxu0 %vm3699_vm2, %v5180_v14  ;;  %3439 = vmatprep.mubr.msk.bf16.mxu1 %vm3699_vm2, %v5180_v14  ;;  %v3221_v7 = vpop.f32.mrf.mxu1 }
 0x1d4   : > { %v3267_v57 = vpop.f32.mrf.mxu0 }
 0x1d5   : > { %v1057_v41 = vpop.f32.mrf.mxu1 }
 0x1d6   : > { %v1199_v54 = vpop.f32.mrf.mxu0  ;;  %v4590_v46 = vadd.f32 %v1183_v11, %v1057_v41 }
 0x1d7   : > { %v3222_v29 = vpop.f32.mrf.mxu1 }
 0x1d8   : > { %v3268_v9 = vpop.f32.mrf.mxu0 }
 0x1d9   : > { %v1062_v37 = vpop.f32.mrf.mxu1  ;;  %3440 = vmatmul.mubr.msk.bf16.gmra.mxu1 %vm964_vm3, %v4192_v53 }
 0x1da   : > { %v1204_v25 = vpop.f32.mrf.mxu0  ;;  %3486 = vmatmul.mubr.msk.bf16.gmra.mxu0 %vm964_vm3, %v4295_v43  ;;  %v4598_v48 = vadd.f32 %v1188_v16, %v1062_v37  ;;  %3443 = vmatprep.mubr.msk.bf16.mxu1 %vm3699_vm2, %v5180_v14 }
 0x1db   : > { %3489 = vmatprep.mubr.msk.bf16.mxu0 %vm3699_vm2, %v5180_v14  ;;  %v3225_v12 = vpop.f32.mrf.mxu1 }
 0x1dc   : > { %v3271_v51 = vpop.f32.mrf.mxu0 }
 0x1dd   : > { %v1065_v45 = vpop.f32.mrf.mxu1 }
 0x1de   : > { %v1207_v38 = vpop.f32.mrf.mxu0  ;;  %v4602_v33 = vadd.f32 %v1191_v19, %v1065_v45 }
 0x1df   : > { %v3226_v43 = vpop.f32.mrf.mxu1 }
 0x1e0   : > { %v3272_v62 = vpop.f32.mrf.mxu0 }
 0x1e1   : > { %v1070_v53 = vpop.f32.mrf.mxu1  ;;  %3444 = vmatmul.mubr.msk.bf16.gmra.mxu1 %vm964_vm3, %v4196_v58 }
 0x1e2   : > { %v1212_v35 = vpop.f32.mrf.mxu0  ;;  %3490 = vmatmul.mubr.msk.bf16.gmra.mxu0 %vm964_vm3, %v4299_v23  ;;  %v4610_v11 = vadd.f32 %v1196_v39, %v1070_v53  ;;  %3447 = vmatprep.mubr.msk.bf16.mxu1 %vm3699_vm2, %v5180_v14 }
 0x1e3   : > { %3493 = vmatprep.mubr.msk.bf16.mxu0 %vm3699_vm2, %v5180_v14  ;;  %v3229_v36 = vpop.f32.mrf.mxu1 }
 0x1e4   : > { %v3275_v55 = vpop.f32.mrf.mxu0 }
 0x1e5   : > { %v1073_v16 = vpop.f32.mrf.mxu1 }
 0x1e6   : > { %v1215_v56 = vpop.f32.mrf.mxu0  ;;  %v4614_v6 = vadd.f32 %v1199_v54, %v1073_v16 }
 0x1e7   : > { %v3230_v23 = vpop.f32.mrf.mxu1 }
 0x1e8   : > { %v3276_v60 = vpop.f32.mrf.mxu0 }
 0x1e9   : > { %v1078_v58 = vpop.f32.mrf.mxu1  ;;  %3448 = vmatmul.mubr.msk.bf16.gmra.mxu1 %vm964_vm3, %v4211_v8 }
 0x1ea   : > { %v1220_v10 = vpop.f32.mrf.mxu0  ;;  %3494 = vmatmul.mubr.msk.bf16.gmra.mxu0 %vm964_vm3, %v4305_v0  ;;  %v4622_v26 = vadd.f32 %v1204_v25, %v1078_v58  ;;  %3451 = vmatprep.mubr.msk.bf16.mxu1 %vm3699_vm2, %v5180_v14 }
 0x1eb   : > { %3497 = vmatprep.mubr.msk.bf16.mxu0 %vm3699_vm2, %v5180_v14  ;;  %v3233_v30 = vpop.f32.mrf.mxu1 }
 0x1ec   : > { %v3279_v19 = vpop.f32.mrf.mxu0 }
 0x1ed   : > { %v1081_v59 = vpop.f32.mrf.mxu1 }
 0x1ee   : > { %v1223_v27 = vpop.f32.mrf.mxu0  ;;  %v4626_v32 = vadd.f32 %v1207_v38, %v1081_v59 }
 0x1ef   : > { %v3234_v0 = vpop.f32.mrf.mxu1 }
 0x1f0   : > { %v3280_v39 = vpop.f32.mrf.mxu0 }
 0x1f1   : > { %v1086_v8 = vpop.f32.mrf.mxu1  ;;  %3452 = vmatmul.mubr.msk.bf16.gmra.mxu1 %vm964_vm3, %v5182_v1 }
 0x1f2   : > { %v1465_v61 = vpop.f32.mrf.mxu0  ;;  %3498 = vmatmul.mubr.msk.bf16.gmra.mxu0 %vm964_vm3, %v4319_v22  ;;  %v4634_v57 = vadd.f32 %v1212_v35, %v1086_v8  ;;  %3455 = vmatprep.mubr.msk.bf16.mxu1 %vm3699_vm2, %v5180_v14 }
 0x1f3   : > { %3501 = vmatprep.mubr.msk.bf16.mxu0 %vm3699_vm2, %v5180_v14  ;;  %v3237_v54 = vpop.f32.mrf.mxu1 }
 0x1f4   : > { %v3323_v7 = vpop.f32.mrf.mxu0 }
 0x1f5   : > { %v1089_v9 = vpop.f32.mrf.mxu1 }
 0x1f6   : > { %v1468_v41 = vpop.f32.mrf.mxu0  ;;  %v4638_v29 = vadd.f32 %v1215_v56, %v1089_v9 }
 0x1f7   : > { %v3238_v22 = vpop.f32.mrf.mxu1 }
 0x1f8   : > { %v3324_v25 = vpop.f32.mrf.mxu0 }
 0x1f9   : > { %v1094_v1 = vpop.f32.mrf.mxu1  ;;  %3456 = vmatmul.mubr.msk.bf16.gmra.mxu1 %vm964_vm3, %v5184_v34 }
 0x1fa   : > { %v1473_v37 = vpop.f32.mrf.mxu0  ;;  %3502 = vmatmul.mubr.msk.bf16.gmra.mxu0 %vm964_vm3, %v4336_v52  ;;  %v4646_v51 = vadd.f32 %v1220_v10, %v1094_v1  ;;  %3459 = vmatprep.mubr.msk.bf16.mxu1 %vm3699_vm2, %v5180_v14 }
 0x1fb   : > { %3505 = vmatprep.mubr.msk.bf16.mxu0 %vm3699_vm2, %v5180_v14  ;;  %v3241_v38 = vpop.f32.mrf.mxu1 }
 0x1fc   : > { %v3327_v12 = vpop.f32.mrf.mxu0 }
 0x1fd   : > { %v1097_v62 = vpop.f32.mrf.mxu1 }
 0x1fe   : > { %v1476_v45 = vpop.f32.mrf.mxu0  ;;  %v4650_v43 = vadd.f32 %v1223_v27, %v1097_v62 }
 0x1ff   : > { %v3242_v52 = vpop.f32.mrf.mxu1 }
 0x200   : > { %v3328_v35 = vpop.f32.mrf.mxu0 }
 0x201   : > { %v1323_v34 = vpop.f32.mrf.mxu1  ;;  %3460 = vmatmul.mubr.msk.bf16.gmra.mxu1 %vm964_vm3, %v5186_v31 }
 0x202   : > { %v1481_v53 = vpop.f32.mrf.mxu0  ;;  %3506 = vmatmul.mubr.msk.bf16.gmra.mxu0 %vm964_vm3, %v4346_v24  ;;  %v1394_v55 = vadd.f32 %v1323_v34, %v4546_v3  ;;  %3463 = vmatprep.mubr.msk.bf16.mxu1 %vm3699_vm2, %v5180_v14 }
 0x203   : > { %3549 = vmatprep.mubr.msk.bf16.mxu0 %vm3699_vm2, %v5180_v14  ;;  %v3285_v56 = vpop.f32.mrf.mxu1 }
 0x204   : > { %v3331_v36 = vpop.f32.mrf.mxu0  ;;  %v4661_v60 = vadd.f32 %v1465_v61, %v1394_v55 }
 0x205   : > { %v1326_v23 = vpop.f32.mrf.mxu1 }
 0x206   : > { %v1484_v16 = vpop.f32.mrf.mxu0  ;;  %v1395_v24 = vadd.f32 %v1326_v23, %v4550_v4 }
 0x207   : > { %v3286_v58 = vpop.f32.mrf.mxu1 }
 0x208   : > { %v3332_v10 = vpop.f32.mrf.mxu0  ;;  %v4664_v31 = vadd.f32 %v1468_v41, %v1395_v24 }
 0x209   : > { %v1331_v30 = vpop.f32.mrf.mxu1  ;;  %3464 = vmatmul.mubr.msk.bf16.gmra.mxu1 %vm964_vm3, %v4311_v15 }
 0x20a   : > { %v1489_v19 = vpop.f32.mrf.mxu0  ;;  %v1396_v3 = vadd.f32 %v1331_v30, %v4558_v5  ;;  %3467 = vmatprep.mubr.msk.bf16.mxu1 %vm3699_vm2, %v5180_v14 }
 0x20b   : > { %v3289_v59 = vpop.f32.mrf.mxu1 }
 0x20c   : > { %v3335_v27 = vpop.f32.mrf.mxu0  ;;  %v4671_v0 = vadd.f32 %v1473_v37, %v1396_v3 }
 0x20d   : > { %v1334_v4 = vpop.f32.mrf.mxu1 }
 0x20e   : > { %v1492_v39 = vpop.f32.mrf.mxu0  ;;  %v1397_v61 = vadd.f32 %v1334_v4, %v4562_v17 }
 0x20f   : > { %v3290_v7 = vpop.f32.mrf.mxu1 }
 0x210   : > { %v3336_v8 = vpop.f32.mrf.mxu0  ;;  %v4674_v41 = vadd.f32 %v1476_v45, %v1397_v61 }
 0x211   : > { %v1339_v9 = vpop.f32.mrf.mxu1  ;;  %3468 = vmatmul.mubr.msk.bf16.gmra.mxu1 %vm964_vm3, %v4326_v40 }
 0x212   : > { %v1497_v54 = vpop.f32.mrf.mxu0  ;;  %v1398_v15 = vadd.f32 %v1339_v9, %v4570_v49  ;;  %3511 = vmatprep.mubr.msk.bf16.mxu1 %vm3699_vm2, %v5180_v14 }
 0x213   : > { %v3293_v25 = vpop.f32.mrf.mxu1 }
 0x214   : > { %v3339_v5 = vpop.f32.mrf.mxu0  ;;  %v4681_v37 = vadd.f32 %v1481_v53, %v1398_v15 }
 0x215   : > { %v1342_v17 = vpop.f32.mrf.mxu1 }
 0x216   : > { %v1500_v22 = vpop.f32.mrf.mxu0  ;;  %v1399_v1 = vadd.f32 %v1342_v17, %v4577_v21 }
 0x217   : > { %v3294_v38 = vpop.f32.mrf.mxu1 }
 0x218   : > { %v3340_v12 = vpop.f32.mrf.mxu0  ;;  %v4684_v62 = vadd.f32 %v1484_v16, %v1399_v1  ;;  %v2533_v16 = vld [vmem:[%s5160_s8] sm:$0xf] }
 0x219   : > { %v1347_v35 = vpop.f32.mrf.mxu1  ;;  %3512 = vmatmul.mubr.msk.bf16.vlgmr.msra.gmra.mxu1 %vm964_vm3, %v4331_v18 }
 0x21a   : > { %v1505_v45 = vpop.f32.mrf.mxu0  ;;  %v1400_v40 = vadd.f32 %v1347_v35, %v4586_v20  ;;  %3515 = vmatprep.mubr.msk.bf16.mxu1 %vm3699_vm2, %v5180_v14  ;;  %v2562_v20 = vsel %vm992_vm1, %v2533_v16, 0 }
 0x21b   : > { %v3297_v52 = vpop.f32.mrf.mxu1  ;;  %3548 = vmatpush3.bf16.msra.mxu0 %v2562_v20 }
 0x21c   : > { %v3343_v49 = vpop.f32.mrf.mxu0  ;;  %v4691_v34 = vadd.f32 %v1489_v19, %v1400_v40 }
 0x21d   : > { %v1350_v21 = vpop.f32.mrf.mxu1 }
 0x21e   : > { %v1508_v53 = vpop.f32.mrf.mxu0  ;;  %v1401_v55 = vadd.f32 %v1350_v21, %v4590_v46 }
 0x21f   : > { %v3298_v56 = vpop.f32.mrf.mxu1 }
 0x220   : > { %v3344_v36 = vpop.f32.mrf.mxu0  ;;  %v4697_v23 = vadd.f32 %v1492_v39, %v1401_v55 }
 0x221   : > { %v1355_v24 = vpop.f32.mrf.mxu1  ;;  %3516 = vmatmul.mubr.msk.bf16.gmra.mxu1 %vm964_vm3, %v4339_v13 }
 0x222   : > { %v1513_v18 = vpop.f32.mrf.mxu0  ;;  %v1402_v10 = vadd.f32 %v1355_v24, %v4598_v48  ;;  %3519 = vmatprep.mubr.msk.bf16.mxu1 %vm3699_vm2, %v5180_v14 }
 0x223   : > { %v3301_v58 = vpop.f32.mrf.mxu1 }
 0x224   : > { %v3347_v46 = vpop.f32.mrf.mxu0  ;;  %v4705_v30 = vadd.f32 %v1497_v54, %v1402_v10 }
 0x225   : > { %v1358_v3 = vpop.f32.mrf.mxu1 }
 0x226   : > { %v1516_v19 = vpop.f32.mrf.mxu0  ;;  %v1403_v27 = vadd.f32 %v1358_v3, %v4602_v33 }
 0x227   : > { %v3302_v39 = vpop.f32.mrf.mxu1 }
 0x228   : > { %v3348_v59 = vpop.f32.mrf.mxu0  ;;  %v4708_v61 = vadd.f32 %v1500_v22, %v1403_v27 }
 0x229   : > { %v1363_v13 = vpop.f32.mrf.mxu1  ;;  %3520 = vmatmul.mubr.msk.bf16.gmra.mxu1 %vm964_vm3, %v4342_v2 }
 0x22a   : > { %v1521_v4 = vpop.f32.mrf.mxu0  ;;  %v1404_v48 = vadd.f32 %v1363_v13, %v4610_v11  ;;  %3523 = vmatprep.mubr.msk.bf16.mxu1 %vm3699_vm2, %v5180_v14 }
 0x22b   : > { %v3305_v7 = vpop.f32.mrf.mxu1 }
 0x22c   : > { %v3351_v8 = vpop.f32.mrf.mxu0  ;;  %v4715_v9 = vadd.f32 %v1505_v45, %v1404_v48 }
 0x22d   : > { %v1366_v33 = vpop.f32.mrf.mxu1 }
 0x22e   : > { %v1524_v54 = vpop.f32.mrf.mxu0  ;;  %v1405_v15 = vadd.f32 %v1366_v33, %v4614_v6 }
 0x22f   : > { %v3306_v25 = vpop.f32.mrf.mxu1 }
 0x230   : > { %v3352_v5 = vpop.f32.mrf.mxu0  ;;  %v4718_v17 = vadd.f32 %v1508_v53, %v1405_v15 }
 0x231   : > { %v1371_v1 = vpop.f32.mrf.mxu1  ;;  %3524 = vmatmul.mubr.msk.bf16.gmra.mxu1 %vm964_vm3, %v4349_v50 }
 0x232   : > { %v1529_v22 = vpop.f32.mrf.mxu0  ;;  %v1406_v2 = vadd.f32 %v1371_v1, %v4622_v26  ;;  %3527 = vmatprep.mubr.msk.bf16.mxu1 %vm3699_vm2, %v5180_v14 }
 0x233   : > { %v3309_v12 = vpop.f32.mrf.mxu1 }
 0x234   : > { %v3355_v11 = vpop.f32.mrf.mxu0  ;;  %v4725_v45 = vadd.f32 %v1513_v18, %v1406_v2 }
 0x235   : > { %v1374_v6 = vpop.f32.mrf.mxu1 }
 0x236   : > { %v1532_v38 = vpop.f32.mrf.mxu0  ;;  %v1407_v35 = vadd.f32 %v1374_v6, %v4626_v32 }
 0x237   : > { %v3310_v49 = vpop.f32.mrf.mxu1 }
 0x238   : > { %v3356_v40 = vpop.f32.mrf.mxu0  ;;  %v4728_v53 = vadd.f32 %v1516_v19, %v1407_v35 }
 0x239   : > { %v1379_v21 = vpop.f32.mrf.mxu1  ;;  %3528 = vmatmul.mubr.msk.bf16.gmra.mxu1 %vm964_vm3, %v4352_v63 }
 0x23a   : > { %v1845_v52 = vpop.f32.mrf.mxu0  ;;  %v1408_v50 = vadd.f32 %v1379_v21, %v4634_v57  ;;  %3531 = vmatprep.mubr.msk.bf16.mxu1 %vm3699_vm2, %v5180_v14 }
 0x23b   : > { %v3313_v55 = vpop.f32.mrf.mxu1 }
 0x23c   : > { %v3399_v26 = vpop.f32.mrf.mxu0  ;;  %v4735_v56 = vadd.f32 %v1521_v4, %v1408_v50 }
 0x23d   : > { %v1382_v32 = vpop.f32.mrf.mxu1 }
 0x23e   : > { %v1848_v36 = vpop.f32.mrf.mxu0  ;;  %v1409_v16 = vadd.f32 %v1382_v32, %v4638_v29 }
 0x23f   : > { %v3314_v20 = vpop.f32.mrf.mxu1 }
 0x240   : > { %v3400_v18 = vpop.f32.mrf.mxu0  ;;  %v4738_v10 = vadd.f32 %v1524_v54, %v1409_v16 }
 0x241   : > { %v1387_v46 = vpop.f32.mrf.mxu1  ;;  %3532 = vmatmul.mubr.msk.bf16.gmra.mxu1 %vm964_vm3, %v4357_v44 }
 0x242   : > { %v1853_v24 = vpop.f32.mrf.mxu0  ;;  %v1410_v63 = vadd.f32 %v1387_v46, %v4646_v51  ;;  %3535 = vmatprep.mubr.msk.bf16.mxu1 %vm3699_vm2, %v5180_v14 }
 0x243   : > { %v3317_v58 = vpop.f32.mrf.mxu1 }
 0x244   : > { %v3403_v57 = vpop.f32.mrf.mxu0  ;;  %v4745_v3 = vadd.f32 %v1529_v22, %v1410_v63 }
 0x245   : > { %v1390_v29 = vpop.f32.mrf.mxu1 }
 0x246   : > { %v1856_v19 = vpop.f32.mrf.mxu0  ;;  %v1411_v27 = vadd.f32 %v1390_v29, %v4650_v43 }
 0x247   : > { %v3318_v39 = vpop.f32.mrf.mxu1 }
 0x248   : > { %v3404_v59 = vpop.f32.mrf.mxu0  ;;  %v4748_v13 = vadd.f32 %v1532_v38, %v1411_v27 }
 0x249   : > { %v1670_v48 = vpop.f32.mrf.mxu1  ;;  %3536 = vmatmul.mubr.msk.bf16.gmra.mxu1 %vm964_vm3, %v4362_v42 }
 0x24a   : > { %v1861_v4 = vpop.f32.mrf.mxu0  ;;  %v1741_v44 = vadd.f32 %v1670_v48, %v4661_v60  ;;  %3539 = vmatprep.mubr.msk.bf16.mxu1 %vm3699_vm2, %v5180_v14 }
 0x24b   : > { %v3361_v8 = vpop.f32.mrf.mxu1 }
 0x24c   : > { %v3407_v51 = vpop.f32.mrf.mxu0  ;;  %v4755_v54 = vadd.f32 %v1845_v52, %v1741_v44 }
 0x24d   : > { %v1673_v43 = vpop.f32.mrf.mxu1 }
 0x24e   : > { %v1864_v7 = vpop.f32.mrf.mxu0  ;;  %v1742_v33 = vadd.f32 %v1673_v43, %v4664_v31 }
 0x24f   : > { %v3362_v5 = vpop.f32.mrf.mxu1 }
 0x250   : > { %v3408_v15 = vpop.f32.mrf.mxu0  ;;  %v4758_v22 = vadd.f32 %v1848_v36, %v1742_v33 }
 0x251   : > { %v1678_v1 = vpop.f32.mrf.mxu1  ;;  %3540 = vmatmul.mubr.msk.bf16.gmra.mxu1 %vm964_vm3, %v4369_v28 }
 0x252   : > { %v1869_v25 = vpop.f32.mrf.mxu0  ;;  %v1743_v42 = vadd.f32 %v1678_v1, %v4671_v0  ;;  %3543 = vmatprep.mubr.msk.bf16.mxu1 %vm3699_vm2, %v5180_v14 }
 0x253   : > { %v3365_v2 = vpop.f32.mrf.mxu1 }
 0x254   : > { %v3411_v60 = vpop.f32.mrf.mxu0  ;;  %v4765_v12 = vadd.f32 %v1853_v24, %v1743_v42 }
 0x255   : > { %v1681_v31 = vpop.f32.mrf.mxu1 }
 0x256   : > { %v1872_v11 = vpop.f32.mrf.mxu0  ;;  %v1744_v38 = vadd.f32 %v1681_v31, %v4674_v41 }
 0x257   : > { %v3366_v35 = vpop.f32.mrf.mxu1 }
 0x258   : > { %v3412_v6 = vpop.f32.mrf.mxu0  ;;  %v4768_v49 = vadd.f32 %v1856_v19, %v1744_v38 }
 0x259   : > { %v1686_v52 = vpop.f32.mrf.mxu1  ;;  %3544 = vmatmul.mubr.msk.bf16.gmra.mxu1 %vm964_vm3, %v4372_v47 }
 0x25a   : > { %v1877_v40 = vpop.f32.mrf.mxu0  ;;  %v1745_v28 = vadd.f32 %v1686_v52, %v4681_v37 }
 0x25b   : > { %v3369_v21 = vpop.f32.mrf.mxu1 }
 0x25c   : > { %v3415_v0 = vpop.f32.mrf.mxu0  ;;  %v4773_v26 = vadd.f32 %v1861_v4, %v1745_v28 }
 0x25d   : > { %v1689_v55 = vpop.f32.mrf.mxu1 }
 0x25e   : > { %v1880_v50 = vpop.f32.mrf.mxu0  ;;  %v1746_v36 = vadd.f32 %v1689_v55, %v4684_v62 }
 0x25f   : > { %v3370_v32 = vpop.f32.mrf.mxu1 }
 0x260   : > { %v3416_v41 = vpop.f32.mrf.mxu0  ;;  %v4776_v18 = vadd.f32 %v1864_v7, %v1746_v36 }
 0x261   : > { %v1694_v20 = vpop.f32.mrf.mxu1 }
 0x262   : > { %v1885_v16 = vpop.f32.mrf.mxu0  ;;  %v1747_v24 = vadd.f32 %v1694_v20, %v4691_v34 }
 0x263   : > { %v3373_v47 = vpop.f32.mrf.mxu1 }
 0x264   : > { %v3419_v46 = vpop.f32.mrf.mxu0  ;;  %v4779_v37 = vadd.f32 %v1869_v25, %v1747_v24 }
 0x265   : > { %v1697_v57 = vpop.f32.mrf.mxu1 }
 0x266   : > { %v1888_v63 = vpop.f32.mrf.mxu0  ;;  %v1748_v58 = vadd.f32 %v1697_v57, %v4697_v23 }
 0x267   : > { %v3374_v29 = vpop.f32.mrf.mxu1 }
 0x268   : > { %v3420_v19 = vpop.f32.mrf.mxu0  ;;  %v4782_v62 = vadd.f32 %v1872_v11, %v1748_v58 }
 0x269   : > { %v1702_v59 = vpop.f32.mrf.mxu1 }
 0x26a   : > { %v1893_v27 = vpop.f32.mrf.mxu0  ;;  %v1749_v39 = vadd.f32 %v1702_v59, %v4705_v30 }
 0x26b   : > { %v3377_v48 = vpop.f32.mrf.mxu1 }
 0x26c   : > { %v3423_v4 = vpop.f32.mrf.mxu0  ;;  %v4785_v34 = vadd.f32 %v1877_v40, %v1749_v39 }
 0x26d   : > { %v1705_v51 = vpop.f32.mrf.mxu1 }
 0x26e   : > { %v1896_v44 = vpop.f32.mrf.mxu0  ;;  %v1750_v8 = vadd.f32 %v1705_v51, %v4708_v61 }
 0x26f   : > { %v3378_v43 = vpop.f32.mrf.mxu1 }
 0x270   : > { %v3424_v7 = vpop.f32.mrf.mxu0  ;;  %v4788_v23 = vadd.f32 %v1880_v50, %v1750_v8 }
 0x271   : > { %v1710_v15 = vpop.f32.mrf.mxu1 }
 0x272   : > { %v1901_v33 = vpop.f32.mrf.mxu0  ;;  %v1751_v5 = vadd.f32 %v1710_v15, %v4715_v9 }
 0x273   : > { %v3381_v1 = vpop.f32.mrf.mxu1 }
 0x274   : > { %v3427_v25 = vpop.f32.mrf.mxu0  ;;  %v4791_v30 = vadd.f32 %v1885_v16, %v1751_v5 }
 0x275   : > { %v1713_v60 = vpop.f32.mrf.mxu1 }
 0x276   : > { %v1904_v42 = vpop.f32.mrf.mxu0  ;;  %v1752_v2 = vadd.f32 %v1713_v60, %v4718_v17 }
 0x277   : > { %v3382_v31 = vpop.f32.mrf.mxu1 }
 0x278   : > { %v3428_v11 = vpop.f32.mrf.mxu0  ;;  %v4794_v61 = vadd.f32 %v1888_v63, %v1752_v2 }
 0x279   : > { %v1718_v6 = vpop.f32.mrf.mxu1 }
 0x27a   : > { %v1909_v38 = vpop.f32.mrf.mxu0  ;;  %v1753_v35 = vadd.f32 %v1718_v6, %v4725_v45 }
 0x27b   : > { %v3385_v52 = vpop.f32.mrf.mxu1 }
 0x27c   : > { %v3431_v40 = vpop.f32.mrf.mxu0  ;;  %v4797_v9 = vadd.f32 %v1893_v27, %v1753_v35 }
 0x27d   : > { %v1721_v0 = vpop.f32.mrf.mxu1 }
 0x27e   : > { %v1912_v28 = vpop.f32.mrf.mxu0  ;;  %v1754_v21 = vadd.f32 %v1721_v0, %v4728_v53 }
 0x27f   : > { %v3386_v55 = vpop.f32.mrf.mxu1 }
 0x280   : > { %v3432_v50 = vpop.f32.mrf.mxu0  ;;  %v4800_v17 = vadd.f32 %v1896_v44, %v1754_v21 }
 0x281   : > { %v1726_v41 = vpop.f32.mrf.mxu1 }
 0x282   : > { %v2192_v36 = vpop.f32.mrf.mxu0  ;;  %v1755_v32 = vadd.f32 %v1726_v41, %v4735_v56 }
 0x283   : > { %v3389_v20 = vpop.f32.mrf.mxu1 }
 0x284   : > { %v3475_v16 = vpop.f32.mrf.mxu0  ;;  %v4803_v45 = vadd.f32 %v1901_v33, %v1755_v32 }
 0x285   : > { %v1729_v46 = vpop.f32.mrf.mxu1 }
 0x286   : > { %v2195_v24 = vpop.f32.mrf.mxu0  ;;  %v1756_v47 = vadd.f32 %v1729_v46, %v4738_v10 }
 0x287   : > { %v3390_v57 = vpop.f32.mrf.mxu1 }
 0x288   : > { %v3476_v63 = vpop.f32.mrf.mxu0  ;;  %v4806_v53 = vadd.f32 %v1904_v42, %v1756_v47 }
 0x289   : > { %v1734_v19 = vpop.f32.mrf.mxu1 }
 0x28a   : > { %v2200_v58 = vpop.f32.mrf.mxu0  ;;  %v1757_v29 = vadd.f32 %v1734_v19, %v4745_v3 }
 0x28b   : > { %v3393_v59 = vpop.f32.mrf.mxu1 }
 0x28c   : > { %v3479_v27 = vpop.f32.mrf.mxu0  ;;  %v4809_v56 = vadd.f32 %v1909_v38, %v1757_v29 }
 0x28d   : > { %v1737_v4 = vpop.f32.mrf.mxu1 }
 0x28e   : > { %v2203_v39 = vpop.f32.mrf.mxu0  ;;  %v1758_v48 = vadd.f32 %v1737_v4, %v4748_v13 }
 0x28f   : > { %v3394_v51 = vpop.f32.mrf.mxu1 }
 0x290   : > { %v3480_v44 = vpop.f32.mrf.mxu0  ;;  %v4812_v10 = vadd.f32 %v1912_v28, %v1758_v48 }
 0x291   : > { %v1987_v7 = vpop.f32.mrf.mxu1 }
 0x292   : > { %v2208_v8 = vpop.f32.mrf.mxu0  ;;  %v2058_v43 = vadd.f32 %v1987_v7, %v4755_v54 }
 0x293   : > { %v3437_v15 = vpop.f32.mrf.mxu1 }
 0x294   : > { %v3483_v33 = vpop.f32.mrf.mxu0  ;;  %v4815_v3 = vadd.f32 %v2192_v36, %v2058_v43 }
 0x295   : > { %v1990_v25 = vpop.f32.mrf.mxu1 }
 0x296   : > { %v2211_v5 = vpop.f32.mrf.mxu0  ;;  %v2059_v1 = vadd.f32 %v1990_v25, %v4758_v22 }
 0x297   : > { %v3438_v60 = vpop.f32.mrf.mxu1 }
 0x298   : > { %v3484_v42 = vpop.f32.mrf.mxu0  ;;  %v4818_v13 = vadd.f32 %v2195_v24, %v2059_v1 }
 0x299   : > { %v1995_v11 = vpop.f32.mrf.mxu1 }
 0x29a   : > { %v2216_v2 = vpop.f32.mrf.mxu0  ;;  %v2060_v31 = vadd.f32 %v1995_v11, %v4765_v12 }
 0x29b   : > { %v3441_v6 = vpop.f32.mrf.mxu1 }
 0x29c   : > { %v3487_v38 = vpop.f32.mrf.mxu0  ;;  %v4821_v54 = vadd.f32 %v2200_v58, %v2060_v31 }
 0x29d   : > { %v1998_v40 = vpop.f32.mrf.mxu1 }
 0x29e   : > { %v2219_v35 = vpop.f32.mrf.mxu0  ;;  %v2061_v52 = vadd.f32 %v1998_v40, %v4768_v49 }
 0x29f   : > { %v3442_v0 = vpop.f32.mrf.mxu1 }
 0x2a0   : > { %v3488_v28 = vpop.f32.mrf.mxu0  ;;  %v4824_v22 = vadd.f32 %v2203_v39, %v2061_v52 }
 0x2a1   : > { %v2003_v50 = vpop.f32.mrf.mxu1 }
 0x2a2   : > { %v2224_v21 = vpop.f32.mrf.mxu0  ;;  %v2062_v55 = vadd.f32 %v2003_v50, %v4773_v26 }
 0x2a3   : > { %v3445_v41 = vpop.f32.mrf.mxu1 }
 0x2a4   : > { %v3491_v36 = vpop.f32.mrf.mxu0  ;;  %v4827_v12 = vadd.f32 %v2208_v8, %v2062_v55 }
 0x2a5   : > { %v2006_v16 = vpop.f32.mrf.mxu1 }
 0x2a6   : > { %v2227_v32 = vpop.f32.mrf.mxu0  ;;  %v2063_v20 = vadd.f32 %v2006_v16, %v4776_v18 }
 0x2a7   : > { %v3446_v46 = vpop.f32.mrf.mxu1 }
 0x2a8   : > { %v3492_v24 = vpop.f32.mrf.mxu0  ;;  %v4830_v49 = vadd.f32 %v2211_v5, %v2063_v20 }
 0x2a9   : > { %v2011_v63 = vpop.f32.mrf.mxu1 }
 0x2aa   : > { %v2232_v47 = vpop.f32.mrf.mxu0  ;;  %v2064_v57 = vadd.f32 %v2011_v63, %v4779_v37 }
 0x2ab   : > { %v3449_v19 = vpop.f32.mrf.mxu1 }
 0x2ac   : > { %v3495_v58 = vpop.f32.mrf.mxu0  ;;  %v4833_v26 = vadd.f32 %v2216_v2, %v2064_v57 }
 0x2ad   : > { %v2014_v27 = vpop.f32.mrf.mxu1 }
 0x2ae   : > { %v2235_v29 = vpop.f32.mrf.mxu0  ;;  %v2065_v59 = vadd.f32 %v2014_v27, %v4782_v62 }
 0x2af   : > { %v3450_v4 = vpop.f32.mrf.mxu1 }
 0x2b0   : > { %v3496_v39 = vpop.f32.mrf.mxu0  ;;  %v4836_v18 = vadd.f32 %v2219_v35, %v2065_v59 }
 0x2b1   : > { %v2019_v44 = vpop.f32.mrf.mxu1 }
 0x2b2   : > { %v2240_v48 = vpop.f32.mrf.mxu0  ;;  %v2066_v51 = vadd.f32 %v2019_v44, %v4785_v34 }
 0x2b3   : > { %v3453_v7 = vpop.f32.mrf.mxu1 }
 0x2b4   : > { %v3499_v8 = vpop.f32.mrf.mxu0  ;;  %v4839_v37 = vadd.f32 %v2224_v21, %v2066_v51 }
 0x2b5   : > { %v2022_v33 = vpop.f32.mrf.mxu1  ;;  %v4878_v8 = vld [vmem:[%s5159_s7] ss:$0 sm:$0xff] }
 0x2b6   : > { %v2243_v43 = vpop.f32.mrf.mxu0  ;;  %v2067_v15 = vadd.f32 %v2022_v33, %v4788_v23 }
 0x2b7   : > { %v3454_v25 = vpop.f32.mrf.mxu1 }
 0x2b8   : > { %v3500_v5 = vpop.f32.mrf.mxu0  ;;  %v4842_v62 = vadd.f32 %v2227_v32, %v2067_v15 }
 0x2b9   : > { %v2027_v42 = vpop.f32.mrf.mxu1 }
 0x2ba   : > { %v2248_v1 = vpop.f32.mrf.mxu0  ;;  %v2068_v60 = vadd.f32 %v2027_v42, %v4791_v30 }
 0x2bb   : > { %v3457_v11 = vpop.f32.mrf.mxu1 }
 0x2bc   : > { %v3503_v2 = vpop.f32.mrf.mxu0  ;;  %v4845_v34 = vadd.f32 %v2232_v47, %v2068_v60 }
 0x2bd   : > { %v2030_v38 = vpop.f32.mrf.mxu1 }
 0x2be   : > { %v2251_v31 = vpop.f32.mrf.mxu0  ;;  %v2069_v6 = vadd.f32 %v2030_v38, %v4794_v61 }
 0x2bf   : > { %v3458_v40 = vpop.f32.mrf.mxu1 }
 0x2c0   : > { %v3504_v35 = vpop.f32.mrf.mxu0  ;;  %v4848_v23 = vadd.f32 %v2235_v29, %v2069_v6 }
 0x2c1   : > { %v2035_v28 = vpop.f32.mrf.mxu1 }
 0x2c2   : > { %v2256_v52 = vpop.f32.mrf.mxu0  ;;  %v2070_v0 = vadd.f32 %v2035_v28, %v4797_v9 }
 0x2c3   : > { %v3461_v50 = vpop.f32.mrf.mxu1 }
 0x2c4   : > { %v3507_v21 = vpop.f32.mrf.mxu0  ;;  %v4851_v30 = vadd.f32 %v2240_v48, %v2070_v0 }
 0x2c5   : > { %v2038_v36 = vpop.f32.mrf.mxu1 }
 0x2c6   : > { %v2259_v55 = vpop.f32.mrf.mxu0  ;;  %v2071_v41 = vadd.f32 %v2038_v36, %v4800_v17 }
 0x2c7   : > { %v3462_v16 = vpop.f32.mrf.mxu1 }
 0x2c8   : > { %v3508_v32 = vpop.f32.mrf.mxu0  ;;  %v4854_v20 = vadd.f32 %v2243_v43, %v2071_v41 }
 0x2c9   : > { %v2043_v61 = vpop.f32.mrf.mxu1 }
 0x2ca   : > { %v2072_v24 = vadd.f32 %v2043_v61, %v4803_v45 }
 0x2cb   : > { %v3465_v46 = vpop.f32.mrf.mxu1 }
 0x2cc   : > { %v4857_v47 = vadd.f32 %v2248_v1, %v2072_v24 }
 0x2cd   : > { %v2046_v63 = vpop.f32.mrf.mxu1 }
 0x2ce   : > { %v2073_v9 = vadd.f32 %v2046_v63, %v4806_v53  ;;  %v4871_v53 = vld [vmem:[%s5158_s6] ss:$0 sm:$0xff] }
 0x2cf   : > { %v3466_v57 = vpop.f32.mrf.mxu1 }
 0x2d0   : > { %v4860_v58 = vadd.f32 %v2251_v31, %v2073_v9 }
 0x2d1   : > { %v2051_v19 = vpop.f32.mrf.mxu1 }
 0x2d2   : > { %v2074_v29 = vadd.f32 %v2051_v19, %v4809_v56 }
 0x2d3   : > { %v3469_v17 = vpop.f32.mrf.mxu1 }
 0x2d4   : > { %v4863_v27 = vadd.f32 %v2256_v52, %v2074_v29 }
 0x2d5   : > { %v2054_v59 = vpop.f32.mrf.mxu1 }
 0x2d6   : > { %v2075_v39 = vadd.f32 %v2054_v59, %v4812_v10 }
 0x2d7   : > { %v3470_v4 = vpop.f32.mrf.mxu1 }
 0x2d8   : > { %v4866_v45 = vadd.f32 %v2259_v55, %v2075_v39 }
 0x2d9   : > { %v2367_v48 = vpop.f32.mrf.mxu1 }
 0x2da   : > { %v2438_v44 = vadd.f32 %v2367_v48, %v4815_v3 }
 0x2db   : > { %v3513_v51 = vpop.f32.mrf.mxu1 }
 0x2dc   : > { %v2463_v56 = vmul.f32 %v4871_v53, %v2438_v44 }
 0x2dd   : > { %v2370_v10 = vpop.f32.mrf.mxu1 }
 0x2de   : > { %v2439_v7 = vadd.f32 %v2370_v10, %v4818_v13  ;;  %v2488_v33 = vadd.f32 %v4878_v8, %v2463_v56 }
 0x2df   : > { %v3514_v43 = vpop.f32.mrf.mxu1 }
 0x2e0   : > { %v2464_v15 = vmul.f32 %v4871_v53, %v2439_v7  ;;  %v2506_v42 = vmax.f32 %v2488_v33, 0.0 }
 0x2e1   : > { %v2375_v5 = vpop.f32.mrf.mxu1 }
 0x2e2   : > { %v2489_v25 = vadd.f32 %v4878_v8, %v2464_v15  ;;  %v2440_v3 = vadd.f32 %v2375_v5, %v4821_v54 }
 0x2e3   : > { %v3517_v1 = vpop.f32.mrf.mxu1 }
 0x2e4   : > { %v2507_v60 = vmax.f32 %v2489_v25, 0.0  ;;  %v2465_v2 = vmul.f32 %v4871_v53, %v2440_v3 }
 0x2e5   : > { %v2378_v11 = vpop.f32.mrf.mxu1 }
 0x2e6   : > { %v2524_v31 = vpack.c.bf16 %v2507_v60, %v2506_v42  ;;  %v2441_v38 = vadd.f32 %v2378_v11, %v4824_v22  ;;  %v2490_v6 = vadd.f32 %v4878_v8, %v2465_v2 }
 0x2e7   : > { %v3518_v13 = vpop.f32.mrf.mxu1 }
 0x2e8   : > { %v2466_v35 = vmul.f32 %v4871_v53, %v2441_v38  ;;  %3550 = vmatmul.mubr.msk.bf16.vlgmr.msra.gmra.mxu0 %vm964_vm3, %v2524_v31  ;;  %v2508_v0 = vmax.f32 %v2490_v6, 0.0 }
 0x2e9   : > { %v2383_v40 = vpop.f32.mrf.mxu1  ;;  %3553 = vmatprep.mubr.msk.bf16.mxu0 %vm3699_vm2, %v5180_v14 }
 0x2ea   : > { %v2491_v54 = vadd.f32 %v4878_v8, %v2466_v35  ;;  %v2442_v52 = vadd.f32 %v2383_v40, %v4827_v12 }
 0x2eb   : > { %v3521_v28 = vpop.f32.mrf.mxu1 }
 0x2ec   : > { %v2509_v21 = vmax.f32 %v2491_v54, 0.0  ;;  %v2467_v22 = vmul.f32 %v4871_v53, %v2442_v52 }
 0x2ed   : > { %v2386_v50 = vpop.f32.mrf.mxu1 }
 0x2ee   : > { %v2525_v55 = vpack.c.bf16 %v2509_v21, %v2508_v0  ;;  %v2443_v36 = vadd.f32 %v2386_v50, %v4830_v49  ;;  %v2492_v32 = vadd.f32 %v4878_v8, %v2467_v22 }
 0x2ef   : > { %v3522_v41 = vpop.f32.mrf.mxu1 }
 0x2f0   : > { %v2468_v16 = vmul.f32 %v4871_v53, %v2443_v36  ;;  %3554 = vmatmul.mubr.msk.bf16.gmra.mxu0 %vm964_vm3, %v2525_v55  ;;  %v2510_v63 = vmax.f32 %v2492_v32, 0.0 }
 0x2f1   : > { %v2391_v61 = vpop.f32.mrf.mxu1  ;;  %3557 = vmatprep.mubr.msk.bf16.mxu0 %vm3699_vm2, %v5180_v14 }
 0x2f2   : > { %v2493_v12 = vadd.f32 %v4878_v8, %v2468_v16  ;;  %v2444_v24 = vadd.f32 %v2391_v61, %v4833_v26 }
 0x2f3   : > { %v3525_v46 = vpop.f32.mrf.mxu1 }
 0x2f4   : > { %v2511_v9 = vmax.f32 %v2493_v12, 0.0  ;;  %v2469_v49 = vmul.f32 %v4871_v53, %v2444_v24 }
 0x2f5   : > { %v2394_v57 = vpop.f32.mrf.mxu1 }
 0x2f6   : > { %v2526_v19 = vpack.c.bf16 %v2511_v9, %v2510_v63  ;;  %v2445_v29 = vadd.f32 %v2394_v57, %v4836_v18  ;;  %v2494_v59 = vadd.f32 %v4878_v8, %v2469_v49 }
 0x2f7   : > { %v3526_v17 = vpop.f32.mrf.mxu1 }
 0x2f8   : > { %v2470_v39 = vmul.f32 %v4871_v53, %v2445_v29  ;;  %3558 = vmatmul.mubr.msk.bf16.gmra.mxu0 %vm964_vm3, %v2526_v19  ;;  %v2512_v51 = vmax.f32 %v2494_v59, 0.0 }
 0x2f9   : > { %v2399_v4 = vpop.f32.mrf.mxu1  ;;  %3561 = vmatprep.mubr.msk.bf16.mxu0 %vm3699_vm2, %v5180_v14 }
 0x2fa   : > { %v2495_v26 = vadd.f32 %v4878_v8, %v2470_v39  ;;  %v2446_v48 = vadd.f32 %v2399_v4, %v4839_v37 }
 0x2fb   : > { %v3529_v44 = vpop.f32.mrf.mxu1 }
 0x2fc   : > { %v2513_v56 = vmax.f32 %v2495_v26, 0.0  ;;  %v2471_v18 = vmul.f32 %v4871_v53, %v2446_v48 }
 0x2fd   : > { %v2402_v10 = vpop.f32.mrf.mxu1 }
 0x2fe   : > { %v2527_v7 = vpack.c.bf16 %v2513_v56, %v2512_v51  ;;  %v2447_v43 = vadd.f32 %v2402_v10, %v4842_v62  ;;  %v2496_v15 = vadd.f32 %v4878_v8, %v2471_v18 }
 0x2ff   : > { %v3530_v33 = vpop.f32.mrf.mxu1 }
 0x300   : > { %v2472_v5 = vmul.f32 %v4871_v53, %v2447_v43  ;;  %3562 = vmatmul.mubr.msk.bf16.gmra.mxu0 %vm964_vm3, %v2527_v7  ;;  %v2514_v42 = vmax.f32 %v2496_v15, 0.0  ;;  %v3638_v43 = vld [vmem:[%s3812_s24 + $0x10] sm:$0xff] }
 0x301   : > { %v2407_v25 = vpop.f32.mrf.mxu1  ;;  %3565 = vmatprep.mubr.msk.bf16.mxu0 %vm3699_vm2, %v5180_v14  ;;  %v2739_v33 = vrot.slane %v3638_v43, 3 }
 0x302   : > { %v2497_v37 = vadd.f32 %v4878_v8, %v2472_v5  ;;  %v2448_v3 = vadd.f32 %v2407_v25, %v4845_v34  ;;  %v3640_v5 = vld [vmem:[%s3812_s24 + $0x20] sm:$0xff]  ;;  %v3641_v25 = vld [vmem:[%s3812_s24 + $0x28] sm:$0xff] }
 0x303   : > { %v3533_v1 = vpop.f32.mrf.mxu1 }
 0x304   : > { %v2515_v60 = vmax.f32 %v2497_v37, 0.0  ;;  %v2473_v62 = vmul.f32 %v4871_v53, %v2448_v3  ;;  %v3642_v3 = vld [vmem:[%s3812_s24 + $0x30] sm:$0xff] }
 0x305   : > { %v2410_v2 = vpop.f32.mrf.mxu1  ;;  %v2746_v1 = vrot.slane %v3642_v3, 3 }
 0x306   : > { %v2528_v11 = vpack.c.bf16 %v2515_v60, %v2514_v42  ;;  %v2449_v31 = vadd.f32 %v2410_v2, %v4848_v23  ;;  %v2498_v13 = vadd.f32 %v4878_v8, %v2473_v62  ;;  %v3643_v60 = vld [vmem:[%s3812_s24 + $0x38] sm:$0xff] }
 0x307   : > { %v3534_v38 = vpop.f32.mrf.mxu1  ;;  %v2748_v62 = vrot.slane %v3643_v60, 3 }
 0x308   : > { %v2474_v6 = vmul.f32 %v4871_v53, %v2449_v31  ;;  %3566 = vmatmul.mubr.msk.bf16.gmra.mxu0 %vm964_vm3, %v2528_v11  ;;  %v2516_v52 = vmax.f32 %v2498_v13, 0.0  ;;  %v3644_v11 = vld [vmem:[%s3812_s24 + $0x40] sm:$0xff]  ;;  %v3645_v13 = vld [vmem:[%s3812_s24 + $0x48] sm:$0xff] }
 0x309   : > { %v2415_v35 = vpop.f32.mrf.mxu1  ;;  %3569 = vmatprep.mubr.msk.bf16.mxu0 %vm3699_vm2, %v5180_v14  ;;  %v2750_v31 = vrot.slane %v3644_v11, 3  ;;  %v4977_v38 = vsel %vm2283_vm9, %v2746_v1, %v2748_v62 }
 0x30a   : > { %v2499_v34 = vadd.f32 %v4878_v8, %v2474_v6  ;;  %v2450_v40 = vadd.f32 %v2415_v35, %v4851_v30  ;;  %v2752_v6 = vrot.slane %v3645_v13, 3 }
 0x30b   : > { %v3537_v54 = vpop.f32.mrf.mxu1  ;;  %v4981_v35 = vsel %vm2283_vm9, %v2748_v62, %v2750_v31 }
 0x30c   : > { %v2517_v28 = vmax.f32 %v2499_v34, 0.0  ;;  %v2475_v23 = vmul.f32 %v4871_v53, %v2450_v40  ;;  %v3646_v34 = vld [vmem:[%s3812_s24 + $0x50] sm:$0xff]  ;;  %v4985_v54 = vsel %vm2283_vm9, %v2750_v31, %v2752_v6 }
 0x30d   : > { %v2418_v0 = vpop.f32.mrf.mxu1  ;;  %v2754_v40 = vrot.slane %v3646_v34, 3 }
 0x30e   : > { %v2529_v21 = vpack.c.bf16 %v2517_v28, %v2516_v52  ;;  %v2451_v22 = vadd.f32 %v2418_v0, %v4854_v20  ;;  %v2500_v55 = vadd.f32 %v4878_v8, %v2475_v23  ;;  %v3647_v52 = vld [vmem:[%s3812_s24 + $0x58] sm:$0xff]  ;;  %v3648_v0 = vld [vmem:[%s3812_s24 + $0x60] sm:$0xff] }
 0x30f   : > { %v3538_v50 = vpop.f32.mrf.mxu1  ;;  %v2756_v28 = vrot.slane %v3647_v52, 3  ;;  %v4989_v23 = vsel %vm2283_vm9, %v2752_v6, %v2754_v40 }
 0x310   : > { %v2476_v36 = vmul.f32 %v4871_v53, %v2451_v22  ;;  %3570 = vmatmul.mubr.msk.bf16.gmra.mxu0 %vm964_vm3, %v2529_v21  ;;  %v2518_v61 = vmax.f32 %v2500_v55, 0.0  ;;  %v2758_v21 = vrot.slane %v3648_v0, 3  ;;  %v3649_v50 = vld [vmem:[%s3812_s24 + $0x68] sm:$0xff] }
 0x311   : > { %v2423_v41 = vpop.f32.mrf.mxu1  ;;  %3573 = vmatprep.mubr.msk.bf16.mxu0 %vm3699_vm2, %v5180_v14  ;;  %v4993_v22 = vsel %vm2283_vm9, %v2754_v40, %v2756_v28  ;;  %v2760_v55 = vrot.slane %v3649_v50, 3 }
 0x312   : > { %v2501_v30 = vadd.f32 %v4878_v8, %v2476_v36  ;;  %v2452_v32 = vadd.f32 %v2423_v41, %v4857_v47  ;;  %v4997_v36 = vsel %vm2283_vm9, %v2756_v28, %v2758_v21  ;;  %v3650_v41 = vld [vmem:[%s3812_s24 + $0x70] sm:$0xff] }
 0x313   : > { %v3541_v16 = vpop.f32.mrf.mxu1 }
 0x314   : > { %v2519_v12 = vmax.f32 %v2501_v30, 0.0  ;;  %v2477_v20 = vmul.f32 %v4871_v53, %v2452_v32  ;;  %v2762_v30 = vrot.slane %v3650_v41, 3  ;;  %v5001_v32 = vsel %vm2283_vm9, %v2758_v21, %v2760_v55  ;;  %v3651_v16 = vld [vmem:[%s3812_s24 + $0x78] sm:$0xff] }
 0x315   : > { %v2426_v24 = vpop.f32.mrf.mxu1 }
 0x316   : > { %v2530_v46 = vpack.c.bf16 %v2519_v12, %v2518_v61  ;;  %v2453_v63 = vadd.f32 %v2426_v24, %v4860_v58  ;;  %v2502_v49 = vadd.f32 %v4878_v8, %v2477_v20  ;;  %v2764_v61 = vrot.slane %v3651_v16, 3  ;;  %v3652_v20 = vld [vmem:[%s3812_s24 + $0x80] sm:$0xff] }
 0x317   : > { %v3542_v9 = vpop.f32.mrf.mxu1  ;;  %v5005_v12 = vsel %vm2283_vm9, %v2760_v55, %v2762_v30  ;;  %v2766_v24 = vrot.slane %v3652_v20, 3 }
 0x318   : > { %v2478_v57 = vmul.f32 %v4871_v53, %v2453_v63  ;;  %3574 = vmatmul.mubr.msk.bf16.gmra.mxu0 %vm964_vm3, %v2530_v46  ;;  %v2520_v59 = vmax.f32 %v2502_v49, 0.0  ;;  %v5009_v46 = vsel %vm2283_vm9, %v2762_v30, %v2764_v61  ;;  %v3653_v63 = vld [vmem:[%s3812_s24 + $0x88] sm:$0xff] }
 0x319   : > { %v2431_v19 = vpop.f32.mrf.mxu1  ;;  %3577 = vmatprep.mubr.msk.bf16.mxu0 %vm3699_vm2, %v5180_v14  ;;  %v2768_v9 = vrot.slane %v3653_v63, 3  ;;  %v5013_v49 = vsel %vm2283_vm9, %v2764_v61, %v2766_v24 }
 0x31a   : > { %v2503_v47 = vadd.f32 %v4878_v8, %v2478_v57  ;;  %v2454_v29 = vadd.f32 %v2431_v19, %v4863_v27  ;;  %v3654_v57 = vld [vmem:[%s3812_s24 + $0x90] sm:$0xff] }
 0x31b   : > { %v3545_v17 = vpop.f32.mrf.mxu1  ;;  %v2770_v19 = vrot.slane %v3654_v57, 3 }
 0x31c   : > { %v2521_v39 = vmax.f32 %v2503_v47, 0.0  ;;  %v2479_v58 = vmul.f32 %v4871_v53, %v2454_v29  ;;  %v5017_v47 = vsel %vm2283_vm9, %v2766_v24, %v2768_v9  ;;  %v3655_v29 = vld [vmem:[%s3812_s24 + $0x98] sm:$0xff] }
 0x31d   : > { %v2434_v4 = vpop.f32.mrf.mxu1  ;;  %v2772_v17 = vrot.slane %v3655_v29, 3 }
 0x31e   : > { %v2531_v26 = vpack.c.bf16 %v2521_v39, %v2520_v59  ;;  %v2504_v48 = vadd.f32 %v4878_v8, %v2479_v58  ;;  %v2455_v44 = vadd.f32 %v2434_v4, %v4866_v45  ;;  %v3639_v45 = vld [vmem:[%s3812_s24 + $0x18] sm:$0xff]  ;;  %v5021_v59 = vsel %vm2283_vm9, %v2768_v9, %v2770_v19  ;;  %v3656_v39 = vld [vmem:[%s3812_s24 + $0xa0] sm:$0xff] }
 0x31f   : > { %v3546_v51 = vpop.f32.mrf.mxu1  ;;  %v2740_v15 = vrot.slane %v3639_v45, 3  ;;  %v2774_v58 = vrot.slane %v3656_v39, 3  ;;  %v5025_v4 = vsel %vm2283_vm9, %v2770_v19, %v2772_v17 }
 0x320   : > { %v2480_v56 = vmul.f32 %v4871_v53, %v2455_v44  ;;  %3578 = vmatmul.mubr.msk.bf16.gmra.mxu0 %vm964_vm3, %v2531_v26  ;;  %v2522_v18 = vmax.f32 %v2504_v48, 0.0  ;;  %v5035_v48 = vld [vmem:[%s5161_s9] ss:$0 sm:$0xff] }
 0x321   : > { %3581 = vmatprep.mubr.msk.bf16.mxu0 %vm3699_vm2, %v5180_v14  ;;  %v4960_v53 = vsel %vm2283_vm9, %v2739_v33, %v2740_v15  ;;  %v2742_v14 = vrot.slane %v3640_v5, 3  ;;  %v5028_v26 = vsel %vm2283_vm9, %v2772_v17, %v2774_v58  ;;  %v5040_v51 = vld [vmem:[%s5162_s10] ss:$0 sm:$0xff] }
 0x322   : > { %v2505_v27 = vadd.f32 %v4878_v8, %v2480_v56  ;;  %v2744_v8 = vrot.slane %v3641_v25, 3 }
 0x323   : > { %v4965_v37 = vsel %vm2283_vm9, %v2740_v15, %v2742_v14 }
 0x324   : > { %v2523_v10 = vmax.f32 %v2505_v27, 0.0  ;;  %v4969_v42 = vsel %vm2283_vm9, %v2742_v14, %v2744_v8  ;;  %v4973_v2 = vsel %vm2283_vm9, %v2744_v8, %v2746_v1 }
 0x326   : > { %v2532_v7 = vpack.c.bf16 %v2523_v10, %v2522_v18 }
 0x328   : > { %3582 = vmatmul.mubr.msk.bf16.gmra.mxu0 %vm964_vm3, %v2532_v7 }
 0x3a8   : > { %v2598_v44 = vpop.f32.mrf.mxu0 }
 0x3a9   : > { %v2676_v56 = vmul.f32 %v5035_v48, %v2598_v44 }
 0x3aa   : > { %v3551_v27 = vpop.f32.mrf.mxu0 }
 0x3ab   : > { %v2701_v18 = vadd.f32 %v5040_v51, %v2676_v56 }
 0x3ac   : > { %v2601_v10 = vpop.f32.mrf.mxu0 }
 0x3ad   : > { %v2794_v7 = vadd.f32 %v4960_v53, %v2701_v18  ;;  %v2677_v43 = vmul.f32 %v5035_v48, %v2601_v10 }
 0x3ae   : > { %v3552_v33 = vpop.f32.mrf.mxu0 }
 0x3af   : > { %v2812_v45 = vmax.f32 %v2794_v7, 0.0  ;;  %v2702_v15 = vadd.f32 %v5040_v51, %v2677_v43 }
 0x3b0   : > { %v2606_v5 = vpop.f32.mrf.mxu0 }
 0x3b1   : > { %2830 = vst.msk [vmem:[%s5049_s27] sm:$0xff] %vm488_vm0, %v2812_v45  ;;  %v2795_v14 = vadd.f32 %v4965_v37, %v2702_v15  ;;  %v2678_v53 = vmul.f32 %v5035_v48, %v2606_v5 }
 0x3b2   : > { %v3555_v25 = vpop.f32.mrf.mxu0 }
 0x3b3   : > { %v2813_v8 = vmax.f32 %v2795_v14, 0.0  ;;  %v2703_v3 = vadd.f32 %v5040_v51, %v2678_v53 }
 0x3b4   : > { %v2609_v1 = vpop.f32.mrf.mxu0 }
 0x3b5   : > { %2831 = vst.msk [vmem:[%s5049_s27 + $0x8] sm:$0xff] %vm488_vm0, %v2813_v8  ;;  %v2796_v60 = vadd.f32 %v4969_v42, %v2703_v3  ;;  %v2679_v62 = vmul.f32 %v5035_v48, %v2609_v1 }
 0x3b6   : > { %v3556_v11 = vpop.f32.mrf.mxu0 }
 0x3b7   : > { %v2814_v31 = vmax.f32 %v2796_v60, 0.0  ;;  %v2704_v13 = vadd.f32 %v5040_v51, %v2679_v62 }
 0x3b8   : > { %v2614_v37 = vpop.f32.mrf.mxu0 }
 0x3b9   : > { %2832 = vst.msk [vmem:[%s5049_s27 + $0x10] sm:$0xff] %vm488_vm0, %v2814_v31  ;;  %v2797_v6 = vadd.f32 %v4973_v2, %v2704_v13  ;;  %v2680_v34 = vmul.f32 %v5035_v48, %v2614_v37 }
 0x3ba   : > { %v3559_v40 = vpop.f32.mrf.mxu0 }
 0x3bb   : > { %v2815_v52 = vmax.f32 %v2797_v6, 0.0  ;;  %v2705_v28 = vadd.f32 %v5040_v51, %v2680_v34 }
 0x3bc   : > { %v2617_v42 = vpop.f32.mrf.mxu0 }
 0x3bd   : > { %2833 = vst.msk [vmem:[%s5049_s27 + $0x18] sm:$0xff] %vm488_vm0, %v2815_v52  ;;  %v2798_v0 = vadd.f32 %v4977_v38, %v2705_v28  ;;  %v2681_v21 = vmul.f32 %v5035_v48, %v2617_v42 }
 0x3be   : > { %v3560_v50 = vpop.f32.mrf.mxu0 }
 0x3bf   : > { %v2816_v55 = vmax.f32 %v2798_v0, 0.0  ;;  %v2706_v41 = vadd.f32 %v5040_v51, %v2681_v21 }
 0x3c0   : > { %v2622_v2 = vpop.f32.mrf.mxu0 }
 0x3c1   : > { %2834 = vst.msk [vmem:[%s5049_s27 + $0x20] sm:$0xff] %vm488_vm0, %v2816_v55  ;;  %v2799_v30 = vadd.f32 %v4981_v35, %v2706_v41  ;;  %v2682_v16 = vmul.f32 %v5035_v48, %v2622_v2 }
 0x3c2   : > { %v3563_v61 = vpop.f32.mrf.mxu0 }
 0x3c3   : > { %v2817_v20 = vmax.f32 %v2799_v30, 0.0  ;;  %v2707_v24 = vadd.f32 %v5040_v51, %v2682_v16 }
 0x3c4   : > { %v2625_v38 = vpop.f32.mrf.mxu0 }
 0x3c5   : > { %2835 = vst.msk [vmem:[%s5049_s27 + $0x28] sm:$0xff] %vm488_vm0, %v2817_v20  ;;  %v2800_v63 = vadd.f32 %v4985_v54, %v2707_v24  ;;  %v2683_v9 = vmul.f32 %v5035_v48, %v2625_v38 }
 0x3c6   : > { %v3564_v57 = vpop.f32.mrf.mxu0 }
 0x3c7   : > { %v2818_v19 = vmax.f32 %v2800_v63, 0.0  ;;  %v2708_v29 = vadd.f32 %v5040_v51, %v2683_v9 }
 0x3c8   : > { %v2630_v35 = vpop.f32.mrf.mxu0 }
 0x3c9   : > { %2836 = vst.msk [vmem:[%s5049_s27 + $0x30] sm:$0xff] %vm488_vm0, %v2818_v19  ;;  %v2801_v17 = vadd.f32 %v4989_v23, %v2708_v29  ;;  %v2684_v39 = vmul.f32 %v5035_v48, %v2630_v35 }
 0x3ca   : > { %v3567_v58 = vpop.f32.mrf.mxu0 }
 0x3cb   : > { %v2819_v44 = vmax.f32 %v2801_v17, 0.0  ;;  %v2709_v56 = vadd.f32 %v5040_v51, %v2684_v39 }
 0x3cc   : > { %v2633_v54 = vpop.f32.mrf.mxu0 }
 0x3cd   : > { %2837 = vst.msk [vmem:[%s5049_s27 + $0x38] sm:$0xff] %vm488_vm0, %v2819_v44  ;;  %v2802_v27 = vadd.f32 %v4993_v22, %v2709_v56  ;;  %v2685_v18 = vmul.f32 %v5035_v48, %v2633_v54 }
 0x3ce   : > { %v3568_v10 = vpop.f32.mrf.mxu0 }
 0x3cf   : > { %v2820_v7 = vmax.f32 %v2802_v27, 0.0  ;;  %v2710_v43 = vadd.f32 %v5040_v51, %v2685_v18 }
 0x3d0   : > { %v2638_v23 = vpop.f32.mrf.mxu0 }
 0x3d1   : > { %2838 = vst.msk [vmem:[%s5049_s27 + $0x40] sm:$0xff] %vm488_vm0, %v2820_v7  ;;  %v2803_v33 = vadd.f32 %v4997_v36, %v2710_v43  ;;  %v2686_v45 = vmul.f32 %v5035_v48, %v2638_v23 }
 0x3d2   : > { %v3571_v15 = vpop.f32.mrf.mxu0 }
 0x3d3   : > { %v2821_v5 = vmax.f32 %v2803_v33, 0.0  ;;  %v2711_v14 = vadd.f32 %v5040_v51, %v2686_v45 }
 0x3d4   : > { %v2641_v22 = vpop.f32.mrf.mxu0 }
 0x3d5   : > { %2839 = vst.msk [vmem:[%s5049_s27 + $0x48] sm:$0xff] %vm488_vm0, %v2821_v5  ;;  %v2804_v53 = vadd.f32 %v5001_v32, %v2711_v14  ;;  %v2687_v25 = vmul.f32 %v5035_v48, %v2641_v22 }
 0x3d6   : > { %v3572_v8 = vpop.f32.mrf.mxu0 }
 0x3d7   : > { %v2822_v3 = vmax.f32 %v2804_v53, 0.0  ;;  %v2712_v1 = vadd.f32 %v5040_v51, %v2687_v25 }
 0x3d8   : > { %v2646_v36 = vpop.f32.mrf.mxu0 }
 0x3d9   : > { %2840 = vst.msk [vmem:[%s5049_s27 + $0x50] sm:$0xff] %vm488_vm0, %v2822_v3  ;;  %v2805_v60 = vadd.f32 %v5005_v12, %v2712_v1  ;;  %v2688_v62 = vmul.f32 %v5035_v48, %v2646_v36 }
 0x3da   : > { %v3575_v11 = vpop.f32.mrf.mxu0 }
 0x3db   : > { %v2823_v31 = vmax.f32 %v2805_v60, 0.0  ;;  %v2713_v13 = vadd.f32 %v5040_v51, %v2688_v62 }
 0x3dc   : > { %v2649_v32 = vpop.f32.mrf.mxu0 }
 0x3dd   : > { %2841 = vst.msk [vmem:[%s5049_s27 + $0x58] sm:$0xff] %vm488_vm0, %v2823_v31  ;;  %v2806_v37 = vadd.f32 %v5009_v46, %v2713_v13  ;;  %v2689_v6 = vmul.f32 %v5035_v48, %v2649_v32 }
 0x3de   : > { %v3576_v34 = vpop.f32.mrf.mxu0 }
 0x3df   : > { %v2824_v40 = vmax.f32 %v2806_v37, 0.0  ;;  %v2714_v52 = vadd.f32 %v5040_v51, %v2689_v6 }
 0x3e0   : > { %v2654_v12 = vpop.f32.mrf.mxu0 }
 0x3e1   : > { %2842 = vst.msk [vmem:[%s5049_s27 + $0x60] sm:$0xff] %vm488_vm0, %v2824_v40  ;;  %v2807_v28 = vadd.f32 %v5013_v49, %v2714_v52  ;;  %v2690_v42 = vmul.f32 %v5035_v48, %v2654_v12 }
 0x3e2   : > { %v3579_v0 = vpop.f32.mrf.mxu0 }
 0x3e3   : > { %v2825_v21 = vmax.f32 %v2807_v28, 0.0  ;;  %v2715_v50 = vadd.f32 %v5040_v51, %v2690_v42 }
 0x3e4   : > { %v2657_v46 = vpop.f32.mrf.mxu0 }
 0x3e5   : > { %2843 = vst.msk [vmem:[%s5049_s27 + $0x68] sm:$0xff] %vm488_vm0, %v2825_v21  ;;  %v2808_v55 = vadd.f32 %v5017_v47, %v2715_v50  ;;  %v2691_v41 = vmul.f32 %v5035_v48, %v2657_v46 }
 0x3e6   : > { %v3580_v2 = vpop.f32.mrf.mxu0 }
 0x3e7   : > { %v2826_v30 = vmax.f32 %v2808_v55, 0.0  ;;  %v2716_v16 = vadd.f32 %v5040_v51, %v2691_v41 }
 0x3e8   : > { %v2662_v49 = vpop.f32.mrf.mxu0 }
 0x3e9   : > { %2844 = vst.msk [vmem:[%s5049_s27 + $0x70] sm:$0xff] %vm488_vm0, %v2826_v30  ;;  %v2809_v61 = vadd.f32 %v5021_v59, %v2716_v16  ;;  %v2692_v20 = vmul.f32 %v5035_v48, %v2662_v49 }
 0x3ea   : > { %v3583_v24 = vpop.f32.mrf.mxu0 }
 0x3eb   : > { %v2827_v38 = vmax.f32 %v2809_v61, 0.0  ;;  %v2717_v63 = vadd.f32 %v5040_v51, %v2692_v20 }
 0x3ec   : > { %v2665_v47 = vpop.f32.mrf.mxu0 }
 0x3ed   : > { %2845 = vst.msk [vmem:[%s5049_s27 + $0x78] sm:$0xff] %vm488_vm0, %v2827_v38  ;;  %v2810_v9 = vadd.f32 %v5025_v4, %v2717_v63  ;;  %v2693_v57 = vmul.f32 %v5035_v48, %v2665_v47 }
 0x3ee   : > { %v3584_v19 = vpop.f32.mrf.mxu0 }
 0x3ef   : > { %v2828_v29 = vmax.f32 %v2810_v9, 0.0  ;;  %v2718_v35 = vadd.f32 %v5040_v51, %v2693_v57 }
 0x3f1   : > { %2846 = vst.msk [vmem:[%s5049_s27 + $0x80] sm:$0xff] %vm488_vm0, %v2828_v29  ;;  %v2811_v59 = vadd.f32 %v5028_v26, %v2718_v35 }
 0x3f3   : > { %v2829_v17 = vmax.f32 %v2811_v59, 0.0 }
 0x3f5   : > { %2847 = vst.msk [vmem:[%s5049_s27 + $0x88] sm:$0xff] %vm488_vm0, %v2829_v17 }
 0x3f6 PF: > { %s21_s21 = sadd.s32 1, %s3695_s21   ;;  %s5188_s17 = smov %s3687_s19 }
 0x3f7   : > { %p18_p7 = scmp.ge.s32.totalorder %s21_s21, 6   ;;  %s5189_s18 = smov %s3691_s20 }
 0x3f8   : > { %s5190_s19 = smov %s5193_s22  ;;  %s5191_s20 = smov %s5197_s23 }
 0x3f9   :  { %20 = sbr.rel (!%p18_p7) target bundleno = 3 (0x3), region = 104 }

</bundles_post_ra>
